<compile_context>
chip_gen: v7x
topology: tpu7x:2x2x1
jax: 0.10.0
libtpu: 0.0.40
codegen_flags: <defaults>
</compile_context>

<pallas_src>
import math

import jax
import jax.numpy as jnp
from jax.experimental import pallas as pl

# ----- module hyper-parameters (small synthetic config) -----
NTOKEN  = 100
D_MODEL = 32
NHEAD   = 4
D_HID   = 64
NLAYERS = 2
SEQ     = 8
BATCH   = 2
MAX_LEN = 512
LN_EPS  = 1e-5
HEAD_D  = D_MODEL // NHEAD
BS      = BATCH * SEQ          # rows, s-major: row = s*BATCH + b
NEG_INF = -1e30

assert D_MODEL % NHEAD == 0


# ----------------------------------------------------------------------------
# Fused Pallas kernel: embed + PE + NLAYERS encoder layers + CLS pooling
# ----------------------------------------------------------------------------
def _layernorm(x, w, b):
    mu = jnp.mean(x, axis=-1, keepdims=True)
    var = jnp.mean((x - mu) ** 2, axis=-1, keepdims=True)
    return (x - mu) * jax.lax.rsqrt(var + LN_EPS) * w + b


def _fused_forward_kernel(ids_ref, table_ref, pe_ref, mask_ref,
                          wq_ref, wk_ref, wv_ref, bq_ref, bk_ref, bv_ref,
                          wo_ref, bo_ref,
                          ln1w_ref, ln1b_ref, w1_ref, b1_ref,
                          w2_ref, b2_ref, ln2w_ref, ln2b_ref,
                          out_ref):
    # --- embedding gather as a one-hot matmul (table pre-scaled by sqrt(D)) ---
    ids = ids_ref[...]                                             # (BS, 1) int32
    onehot = (jax.lax.broadcasted_iota(jnp.int32, (BS, NTOKEN), 1) == ids
              ).astype(jnp.float32)                                # (BS, NTOKEN)
    x = jnp.dot(onehot, table_ref[...],
                preferred_element_type=jnp.float32)                # (BS, D)

    # --- positional encoding (pre-repeated on the host to s-major (BS, D)) ---
    x = x + pe_ref[...]

    # block-diagonal additive attention mask, hoisted above the layer loop
    mask = mask_ref[...]                                           # (BS, BS)

    scale = 1.0 / math.sqrt(HEAD_D)
    for li in range(NLAYERS):                                      # static unroll
        # ---------- multi-head self attention (full-BS masked scores) --------
        attn = None
        for h in range(NHEAD):                                     # static unroll
            hi = li * NHEAD + h
            qh = jnp.dot(x, wq_ref[hi],
                         preferred_element_type=jnp.float32) + bq_ref[hi]
            kh = jnp.dot(x, wk_ref[hi],
                         preferred_element_type=jnp.float32) + bk_ref[hi]
            vh = jnp.dot(x, wv_ref[hi],
                         preferred_element_type=jnp.float32) + bv_ref[hi]
            # full (BS, BS) scores; cross-batch entries killed by the mask
            s = jnp.einsum('qd,kd->qk', qh, kh,
                           preferred_element_type=jnp.float32) * scale + mask
            s = s - jnp.max(s, axis=-1, keepdims=True)             # guarded softmax
            p = jnp.exp(s)
            p = p * pl.reciprocal(jnp.sum(p, axis=-1, keepdims=True),
                                  approx=True)
            pv = jnp.dot(p, vh, preferred_element_type=jnp.float32)   # (BS, hd)
            # accumulate straight into the output projection (no lane concat)
            contrib = jnp.dot(pv, wo_ref[hi],
                              preferred_element_type=jnp.float32)     # (BS, D)
            attn = contrib if attn is None else attn + contrib
        attn = attn + bo_ref[li]

        # residual + LayerNorm1 (post-norm)
        x = _layernorm(x + attn, ln1w_ref[li], ln1b_ref[li])

        # feed-forward: linear1 -> gelu (tanh approx, EUP) -> linear2
        hdn = jnp.dot(x, w1_ref[li], preferred_element_type=jnp.float32) + b1_ref[li]
        hdn = jax.nn.gelu(hdn, approximate=True)
        ff = jnp.dot(hdn, w2_ref[li], preferred_element_type=jnp.float32) + b2_ref[li]

        # residual + LayerNorm2
        x = _layernorm(x + ff, ln2w_ref[li], ln2b_ref[li])

    # torch.transpose(out,0,1)[:, 0] == s=0 rows == first BATCH rows (s-major)
    out_ref[...] = x[:BATCH, :]


# ----------------------------------------------------------------------------
# Wrapper: one pallas_call, whole problem resident in VMEM (no grid, no tiling)
# ----------------------------------------------------------------------------
@jax.jit
def transformer_embedding_forward(data, params):
    # data: (S, B) int32 token ids (PyTorch sequence-first convention).
    # s-major flatten is a contiguous reshape (no transpose / extra copy).
    ids = data.reshape(BS, 1).astype(jnp.int32)
    return pl.pallas_call(
        _fused_forward_kernel,
        out_shape=jax.ShapeDtypeStruct((BATCH, D_MODEL), jnp.float32),
    )(ids, params["table_scaled"], params["pe"], params["mask"],
      params["wq"], params["wk"], params["wv"],
      params["bq"], params["bk"], params["bv"],
      params["wo"], params["bo"],
      params["ln1w"], params["ln1b"], params["w1"], params["b1"],
      params["w2"], params["b2"], params["ln2w"], params["ln2b"])


# ----------------------------------------------------------------------------
# Parameter / buffer construction (deterministic, synthetic)
# ----------------------------------------------------------------------------
def make_pe(d_model, max_len):
    max_len = max_len + 1
    position = jnp.arange(max_len, dtype=jnp.float32)[:, None]          # (L, 1)
    div_term = jnp.exp(jnp.arange(0, d_model, 2, dtype=jnp.float32)
                       * (-math.log(10000.0) / d_model))                # (D/2,)
    ang = position * div_term                                           # (L, D/2)
    pe = jnp.zeros((max_len, d_model), jnp.float32)
    pe = pe.at[:, 0::2].set(jnp.sin(ang))
    pe = pe.at[:, 1::2].set(jnp.cos(ang))
    return pe                                                           # (L, D)


def init_params(key):
    initrange = 0.1
    keys = jax.random.split(key, 1 + NLAYERS)
    emb = jax.random.uniform(keys[0], (NTOKEN, D_MODEL), jnp.float32,
                             -initrange, initrange)

    def u(k, shape, bound):
        return jax.random.uniform(k, shape, jnp.float32, -bound, bound)

    D, H, hd = D_MODEL, NHEAD, HEAD_D
    wq, wk, wv, bq, bk, bv, wo = [], [], [], [], [], [], []
    bo, ln1w, ln1b, ln2w, ln2b = [], [], [], [], []
    w1, b1, w2, b2 = [], [], [], []
    for li in range(NLAYERS):
        ks = jax.random.split(keys[1 + li], 6)
        # fused in-projection (pre-transposed), then split per head so the
        # kernel never slices lanes
        win = u(ks[0], (D, 3 * D), 1.0 / math.sqrt(D))
        for h in range(H):
            lo = h * hd
            wq.append(win[:, lo:lo + hd])
            wk.append(win[:, D + lo:D + lo + hd])
            wv.append(win[:, 2 * D + lo:2 * D + lo + hd])
            bq.append(jnp.zeros((1, hd), jnp.float32))   # PyTorch default: zero bias
            bk.append(jnp.zeros((1, hd), jnp.float32))
            bv.append(jnp.zeros((1, hd), jnp.float32))
        # output projection (pre-transposed), split into sublane-aligned row slabs
        wof = u(ks[1], (D, D), 1.0 / math.sqrt(D))
        for h in range(H):
            wo.append(wof[h * hd:(h + 1) * hd, :])
        bo.append(jnp.zeros((1, D), jnp.float32))
        ln1w.append(jnp.ones((1, D), jnp.float32)); ln1b.append(jnp.zeros((1, D), jnp.float32))
        ln2w.append(jnp.ones((1, D), jnp.float32)); ln2b.append(jnp.zeros((1, D), jnp.float32))
        w1.append(u(ks[2], (D, D_HID), 1.0 / math.sqrt(D)))
        b1.append(u(ks[3], (1, D_HID), 1.0 / math.sqrt(D)))
        w2.append(u(ks[4], (D_HID, D), 1.0 / math.sqrt(D_HID)))
        b2.append(u(ks[5], (1, D), 1.0 / math.sqrt(D_HID)))

    params = dict(
        wq=jnp.stack(wq), wk=jnp.stack(wk), wv=jnp.stack(wv),      # (L*H, D, hd)
        bq=jnp.stack(bq), bk=jnp.stack(bk), bv=jnp.stack(bv),      # (L*H, 1, hd)
        wo=jnp.stack(wo),                                          # (L*H, hd, D)
        bo=jnp.stack(bo),                                          # (L, 1, D)
        ln1w=jnp.stack(ln1w), ln1b=jnp.stack(ln1b),
        ln2w=jnp.stack(ln2w), ln2b=jnp.stack(ln2b),
        w1=jnp.stack(w1), b1=jnp.stack(b1),
        w2=jnp.stack(w2), b2=jnp.stack(b2),
    )
    # fold "embedding(x) * sqrt(d_model)" into the table once at init
    params["table_scaled"] = emb * math.sqrt(D_MODEL)
    # positional encoding pre-broadcast to the kernel's s-major (BS, D) order
    params["pe"] = jnp.repeat(make_pe(D_MODEL, MAX_LEN)[:SEQ], BATCH, axis=0)
    # block-diagonal additive attention mask in s-major order (b = row % BATCH)
    bidx = jnp.arange(BS, dtype=jnp.int32) % BATCH
    params["mask"] = jnp.where(bidx[:, None] == bidx[None, :],
                               0.0, NEG_INF).astype(jnp.float32)
    return params


if __name__ == "__main__":
    key = jax.random.PRNGKey(0)
    k_data, k_params = jax.random.split(key)
    data = jax.random.randint(k_data, (SEQ, BATCH), 0, NTOKEN, dtype=jnp.int32)
    params = init_params(k_params)

    out = transformer_embedding_forward(data, params)
    out = jax.block_until_ready(out)
    assert out.shape == (BATCH, D_MODEL) and out.dtype == jnp.float32
    assert bool(jnp.all(jnp.isfinite(out)))
    print("KERNEL_OK")
</pallas_src>

<mosaic_0001>
module attributes {stable_mosaic.version = 11 : i64} {
  func.func @_fused_forward_kernel(%arg0: memref<16x1xi32, #tpu.memory_space<vmem>>, %arg1: memref<100x32xf32, #tpu.memory_space<vmem>>, %arg2: memref<16x32xf32, #tpu.memory_space<vmem>>, %arg3: memref<16x16xf32, #tpu.memory_space<vmem>>, %arg4: memref<8x32x8xf32, #tpu.memory_space<vmem>>, %arg5: memref<8x32x8xf32, #tpu.memory_space<vmem>>, %arg6: memref<8x32x8xf32, #tpu.memory_space<vmem>>, %arg7: memref<8x1x8xf32, #tpu.memory_space<vmem>>, %arg8: memref<8x1x8xf32, #tpu.memory_space<vmem>>, %arg9: memref<8x1x8xf32, #tpu.memory_space<vmem>>, %arg10: memref<8x8x32xf32, #tpu.memory_space<vmem>>, %arg11: memref<2x1x32xf32, #tpu.memory_space<vmem>>, %arg12: memref<2x1x32xf32, #tpu.memory_space<vmem>>, %arg13: memref<2x1x32xf32, #tpu.memory_space<vmem>>, %arg14: memref<2x32x64xf32, #tpu.memory_space<vmem>>, %arg15: memref<2x1x64xf32, #tpu.memory_space<vmem>>, %arg16: memref<2x64x32xf32, #tpu.memory_space<vmem>>, %arg17: memref<2x1x32xf32, #tpu.memory_space<vmem>>, %arg18: memref<2x1x32xf32, #tpu.memory_space<vmem>>, %arg19: memref<2x1x32xf32, #tpu.memory_space<vmem>>, %arg20: memref<2x32xf32, #tpu.memory_space<vmem>>) attributes {dimension_semantics = [], scalar_prefetch = 0 : i64, scratch_operands = 0 : i64, tpu.core_type = #tpu.core_type<tc>} {
    %c0 = arith.constant 0 : index
    %c0_0 = arith.constant 0 : index
    %0 = vector.load %arg0[%c0, %c0_0] : memref<16x1xi32, #tpu.memory_space<vmem>>, vector<16x1xi32>
    %1 = tpu.iota {dimensions = array<i32: 1>} : vector<16x100xi32>
    %2 = vector.broadcast %0 : vector<16x1xi32> to vector<16x100xi32>
    %3 = arith.cmpi eq, %1, %2 : vector<16x100xi32>
    %4 = arith.extui %3 : vector<16x100xi1> to vector<16x100xi32>
    %5 = arith.sitofp %4 : vector<16x100xi32> to vector<16x100xf32>
    %c0_1 = arith.constant 0 : index
    %c0_2 = arith.constant 0 : index
    %6 = vector.load %arg1[%c0_1, %c0_2] : memref<100x32xf32, #tpu.memory_space<vmem>>, vector<100x32xf32>
    %cst = arith.constant dense<0.000000e+00> : vector<16x32xf32>
    %7 = tpu.matmul %5, %6, %cst {dimension_numbers = #tpu.dot_dimension_numbers<[1], [0], [0], [1], [0, 0, 1, 1], [], []>} : vector<16x100xf32>, vector<100x32xf32>, vector<16x32xf32> -> vector<16x32xf32>
    %c0_3 = arith.constant 0 : index
    %c0_4 = arith.constant 0 : index
    %8 = vector.load %arg2[%c0_3, %c0_4] : memref<16x32xf32, #tpu.memory_space<vmem>>, vector<16x32xf32>
    %9 = arith.addf %7, %8 : vector<16x32xf32>
    %c0_5 = arith.constant 0 : index
    %c0_6 = arith.constant 0 : index
    %10 = vector.load %arg3[%c0_5, %c0_6] : memref<16x16xf32, #tpu.memory_space<vmem>>, vector<16x16xf32>
    %c0_7 = arith.constant 0 : index
    %c0_8 = arith.constant 0 : index
    %c0_9 = arith.constant 0 : index
    %11 = vector.load %arg4[%c0_7, %c0_8, %c0_9] : memref<8x32x8xf32, #tpu.memory_space<vmem>>, vector<1x32x8xf32>
    %12 = vector.shape_cast %11 : vector<1x32x8xf32> to vector<32x8xf32>
    %cst_10 = arith.constant dense<0.000000e+00> : vector<16x8xf32>
    %13 = tpu.matmul %9, %12, %cst_10 {dimension_numbers = #tpu.dot_dimension_numbers<[1], [0], [0], [1], [0, 0, 1, 1], [], []>} : vector<16x32xf32>, vector<32x8xf32>, vector<16x8xf32> -> vector<16x8xf32>
    %c0_11 = arith.constant 0 : index
    %c0_12 = arith.constant 0 : index
    %c0_13 = arith.constant 0 : index
    %14 = vector.load %arg7[%c0_11, %c0_12, %c0_13] : memref<8x1x8xf32, #tpu.memory_space<vmem>>, vector<1x1x8xf32>
    %15 = vector.shape_cast %14 : vector<1x1x8xf32> to vector<1x8xf32>
    %16 = vector.broadcast %15 : vector<1x8xf32> to vector<16x8xf32>
    %17 = arith.addf %13, %16 : vector<16x8xf32>
    %c0_14 = arith.constant 0 : index
    %c0_15 = arith.constant 0 : index
    %c0_16 = arith.constant 0 : index
    %18 = vector.load %arg5[%c0_14, %c0_15, %c0_16] : memref<8x32x8xf32, #tpu.memory_space<vmem>>, vector<1x32x8xf32>
    %19 = vector.shape_cast %18 : vector<1x32x8xf32> to vector<32x8xf32>
    %cst_17 = arith.constant dense<0.000000e+00> : vector<16x8xf32>
    %20 = tpu.matmul %9, %19, %cst_17 {dimension_numbers = #tpu.dot_dimension_numbers<[1], [0], [0], [1], [0, 0, 1, 1], [], []>} : vector<16x32xf32>, vector<32x8xf32>, vector<16x8xf32> -> vector<16x8xf32>
    %c0_18 = arith.constant 0 : index
    %c0_19 = arith.constant 0 : index
    %c0_20 = arith.constant 0 : index
    %21 = vector.load %arg8[%c0_18, %c0_19, %c0_20] : memref<8x1x8xf32, #tpu.memory_space<vmem>>, vector<1x1x8xf32>
    %22 = vector.shape_cast %21 : vector<1x1x8xf32> to vector<1x8xf32>
    %23 = vector.broadcast %22 : vector<1x8xf32> to vector<16x8xf32>
    %24 = arith.addf %20, %23 : vector<16x8xf32>
    %c0_21 = arith.constant 0 : index
    %c0_22 = arith.constant 0 : index
    %c0_23 = arith.constant 0 : index
    %25 = vector.load %arg6[%c0_21, %c0_22, %c0_23] : memref<8x32x8xf32, #tpu.memory_space<vmem>>, vector<1x32x8xf32>
    %26 = vector.shape_cast %25 : vector<1x32x8xf32> to vector<32x8xf32>
    %cst_24 = arith.constant dense<0.000000e+00> : vector<16x8xf32>
    %27 = tpu.matmul %9, %26, %cst_24 {dimension_numbers = #tpu.dot_dimension_numbers<[1], [0], [0], [1], [0, 0, 1, 1], [], []>} : vector<16x32xf32>, vector<32x8xf32>, vector<16x8xf32> -> vector<16x8xf32>
    %c0_25 = arith.constant 0 : index
    %c0_26 = arith.constant 0 : index
    %c0_27 = arith.constant 0 : index
    %28 = vector.load %arg9[%c0_25, %c0_26, %c0_27] : memref<8x1x8xf32, #tpu.memory_space<vmem>>, vector<1x1x8xf32>
    %29 = vector.shape_cast %28 : vector<1x1x8xf32> to vector<1x8xf32>
    %30 = vector.broadcast %29 : vector<1x8xf32> to vector<16x8xf32>
    %31 = arith.addf %27, %30 : vector<16x8xf32>
    "tpu.trace_start"() <{level = 10 : i32, message = "qd,kd->qk"}> : () -> ()
    %cst_28 = arith.constant dense<0.000000e+00> : vector<16x16xf32>
    %32 = tpu.matmul %17, %24, %cst_28 {dimension_numbers = #tpu.dot_dimension_numbers<[1], [1], [0], [0], [0, 0, 1, 0], [], []>} : vector<16x8xf32>, vector<16x8xf32>, vector<16x16xf32> -> vector<16x16xf32>
    "tpu.trace_stop"() : () -> ()
    %cst_29 = arith.constant 0.353553385 : f32
    %33 = vector.broadcast %cst_29 : f32 to vector<16x16xf32>
    %34 = arith.mulf %32, %33 : vector<16x16xf32>
    %35 = arith.addf %34, %10 : vector<16x16xf32>
    %cst_30 = arith.constant dense<0xFF800000> : vector<16xf32>
    %36 = vector.multi_reduction <maximumf>, %35, %cst_30 [1] : vector<16x16xf32> to vector<16xf32>
    %37 = vector.shape_cast %36 : vector<16xf32> to vector<16x1xf32>
    %38 = vector.broadcast %37 : vector<16x1xf32> to vector<16x16xf32>
    %39 = arith.subf %35, %38 : vector<16x16xf32>
    %40 = math.exp %39 : vector<16x16xf32>
    %cst_31 = arith.constant dense<0.000000e+00> : vector<16xf32>
    %41 = vector.multi_reduction <add>, %40, %cst_31 [1] : vector<16x16xf32> to vector<16xf32>
    %42 = vector.shape_cast %41 : vector<16xf32> to vector<16x1xf32>
    %43 = tpu.reciprocal %42 {approx = true} : vector<16x1xf32> -> vector<16x1xf32>
    %44 = vector.broadcast %43 : vector<16x1xf32> to vector<16x16xf32>
    %45 = arith.mulf %40, %44 : vector<16x16xf32>
    %cst_32 = arith.constant dense<0.000000e+00> : vector<16x8xf32>
    %46 = tpu.matmul %45, %31, %cst_32 {dimension_numbers = #tpu.dot_dimension_numbers<[1], [0], [0], [1], [0, 0, 1, 1], [], []>} : vector<16x16xf32>, vector<16x8xf32>, vector<16x8xf32> -> vector<16x8xf32>
    %c0_33 = arith.constant 0 : index
    %c0_34 = arith.constant 0 : index
    %c0_35 = arith.constant 0 : index
    %47 = vector.load %arg10[%c0_33, %c0_34, %c0_35] : memref<8x8x32xf32, #tpu.memory_space<vmem>>, vector<1x8x32xf32>
    %48 = vector.shape_cast %47 : vector<1x8x32xf32> to vector<8x32xf32>
    %cst_36 = arith.constant dense<0.000000e+00> : vector<16x32xf32>
    %49 = tpu.matmul %46, %48, %cst_36 {dimension_numbers = #tpu.dot_dimension_numbers<[1], [0], [0], [1], [0, 0, 1, 1], [], []>} : vector<16x8xf32>, vector<8x32xf32>, vector<16x32xf32> -> vector<16x32xf32>
    %c1 = arith.constant 1 : index
    %c0_37 = arith.constant 0 : index
    %c0_38 = arith.constant 0 : index
    %50 = vector.load %arg4[%c1, %c0_37, %c0_38] : memref<8x32x8xf32, #tpu.memory_space<vmem>>, vector<1x32x8xf32>
    %51 = vector.shape_cast %50 : vector<1x32x8xf32> to vector<32x8xf32>
    %cst_39 = arith.constant dense<0.000000e+00> : vector<16x8xf32>
    %52 = tpu.matmul %9, %51, %cst_39 {dimension_numbers = #tpu.dot_dimension_numbers<[1], [0], [0], [1], [0, 0, 1, 1], [], []>} : vector<16x32xf32>, vector<32x8xf32>, vector<16x8xf32> -> vector<16x8xf32>
    %c1_40 = arith.constant 1 : index
    %c0_41 = arith.constant 0 : index
    %c0_42 = arith.constant 0 : index
    %53 = vector.load %arg7[%c1_40, %c0_41, %c0_42] : memref<8x1x8xf32, #tpu.memory_space<vmem>>, vector<1x1x8xf32>
    %54 = vector.shape_cast %53 : vector<1x1x8xf32> to vector<1x8xf32>
    %55 = vector.broadcast %54 : vector<1x8xf32> to vector<16x8xf32>
    %56 = arith.addf %52, %55 : vector<16x8xf32>
    %c1_43 = arith.constant 1 : index
    %c0_44 = arith.constant 0 : index
    %c0_45 = arith.constant 0 : index
    %57 = vector.load %arg5[%c1_43, %c0_44, %c0_45] : memref<8x32x8xf32, #tpu.memory_space<vmem>>, vector<1x32x8xf32>
    %58 = vector.shape_cast %57 : vector<1x32x8xf32> to vector<32x8xf32>
    %cst_46 = arith.constant dense<0.000000e+00> : vector<16x8xf32>
    %59 = tpu.matmul %9, %58, %cst_46 {dimension_numbers = #tpu.dot_dimension_numbers<[1], [0], [0], [1], [0, 0, 1, 1], [], []>} : vector<16x32xf32>, vector<32x8xf32>, vector<16x8xf32> -> vector<16x8xf32>
    %c1_47 = arith.constant 1 : index
    %c0_48 = arith.constant 0 : index
    %c0_49 = arith.constant 0 : index
    %60 = vector.load %arg8[%c1_47, %c0_48, %c0_49] : memref<8x1x8xf32, #tpu.memory_space<vmem>>, vector<1x1x8xf32>
    %61 = vector.shape_cast %60 : vector<1x1x8xf32> to vector<1x8xf32>
    %62 = vector.broadcast %61 : vector<1x8xf32> to vector<16x8xf32>
    %63 = arith.addf %59, %62 : vector<16x8xf32>
    %c1_50 = arith.constant 1 : index
    %c0_51 = arith.constant 0 : index
    %c0_52 = arith.constant 0 : index
    %64 = vector.load %arg6[%c1_50, %c0_51, %c0_52] : memref<8x32x8xf32, #tpu.memory_space<vmem>>, vector<1x32x8xf32>
    %65 = vector.shape_cast %64 : vector<1x32x8xf32> to vector<32x8xf32>
    %cst_53 = arith.constant dense<0.000000e+00> : vector<16x8xf32>
    %66 = tpu.matmul %9, %65, %cst_53 {dimension_numbers = #tpu.dot_dimension_numbers<[1], [0], [0], [1], [0, 0, 1, 1], [], []>} : vector<16x32xf32>, vector<32x8xf32>, vector<16x8xf32> -> vector<16x8xf32>
    %c1_54 = arith.constant 1 : index
    %c0_55 = arith.constant 0 : index
    %c0_56 = arith.constant 0 : index
    %67 = vector.load %arg9[%c1_54, %c0_55, %c0_56] : memref<8x1x8xf32, #tpu.memory_space<vmem>>, vector<1x1x8xf32>
    %68 = vector.shape_cast %67 : vector<1x1x8xf32> to vector<1x8xf32>
    %69 = vector.broadcast %68 : vector<1x8xf32> to vector<16x8xf32>
    %70 = arith.addf %66, %69 : vector<16x8xf32>
    "tpu.trace_start"() <{level = 10 : i32, message = "qd,kd->qk"}> : () -> ()
    %cst_57 = arith.constant dense<0.000000e+00> : vector<16x16xf32>
    %71 = tpu.matmul %56, %63, %cst_57 {dimension_numbers = #tpu.dot_dimension_numbers<[1], [1], [0], [0], [0, 0, 1, 0], [], []>} : vector<16x8xf32>, vector<16x8xf32>, vector<16x16xf32> -> vector<16x16xf32>
    "tpu.trace_stop"() : () -> ()
    %cst_58 = arith.constant 0.353553385 : f32
    %72 = vector.broadcast %cst_58 : f32 to vector<16x16xf32>
    %73 = arith.mulf %71, %72 : vector<16x16xf32>
    %74 = arith.addf %73, %10 : vector<16x16xf32>
    %cst_59 = arith.constant dense<0xFF800000> : vector<16xf32>
    %75 = vector.multi_reduction <maximumf>, %74, %cst_59 [1] : vector<16x16xf32> to vector<16xf32>
    %76 = vector.shape_cast %75 : vector<16xf32> to vector<16x1xf32>
    %77 = vector.broadcast %76 : vector<16x1xf32> to vector<16x16xf32>
    %78 = arith.subf %74, %77 : vector<16x16xf32>
    %79 = math.exp %78 : vector<16x16xf32>
    %cst_60 = arith.constant dense<0.000000e+00> : vector<16xf32>
    %80 = vector.multi_reduction <add>, %79, %cst_60 [1] : vector<16x16xf32> to vector<16xf32>
    %81 = vector.shape_cast %80 : vector<16xf32> to vector<16x1xf32>
    %82 = tpu.reciprocal %81 {approx = true} : vector<16x1xf32> -> vector<16x1xf32>
    %83 = vector.broadcast %82 : vector<16x1xf32> to vector<16x16xf32>
    %84 = arith.mulf %79, %83 : vector<16x16xf32>
    %cst_61 = arith.constant dense<0.000000e+00> : vector<16x8xf32>
    %85 = tpu.matmul %84, %70, %cst_61 {dimension_numbers = #tpu.dot_dimension_numbers<[1], [0], [0], [1], [0, 0, 1, 1], [], []>} : vector<16x16xf32>, vector<16x8xf32>, vector<16x8xf32> -> vector<16x8xf32>
    %c1_62 = arith.constant 1 : index
    %c0_63 = arith.constant 0 : index
    %c0_64 = arith.constant 0 : index
    %86 = vector.load %arg10[%c1_62, %c0_63, %c0_64] : memref<8x8x32xf32, #tpu.memory_space<vmem>>, vector<1x8x32xf32>
    %87 = vector.shape_cast %86 : vector<1x8x32xf32> to vector<8x32xf32>
    %cst_65 = arith.constant dense<0.000000e+00> : vector<16x32xf32>
    %88 = tpu.matmul %85, %87, %cst_65 {dimension_numbers = #tpu.dot_dimension_numbers<[1], [0], [0], [1], [0, 0, 1, 1], [], []>} : vector<16x8xf32>, vector<8x32xf32>, vector<16x32xf32> -> vector<16x32xf32>
    %89 = arith.addf %49, %88 : vector<16x32xf32>
    %c2 = arith.constant 2 : index
    %c0_66 = arith.constant 0 : index
    %c0_67 = arith.constant 0 : index
    %90 = vector.load %arg4[%c2, %c0_66, %c0_67] : memref<8x32x8xf32, #tpu.memory_space<vmem>>, vector<1x32x8xf32>
    %91 = vector.shape_cast %90 : vector<1x32x8xf32> to vector<32x8xf32>
    %cst_68 = arith.constant dense<0.000000e+00> : vector<16x8xf32>
    %92 = tpu.matmul %9, %91, %cst_68 {dimension_numbers = #tpu.dot_dimension_numbers<[1], [0], [0], [1], [0, 0, 1, 1], [], []>} : vector<16x32xf32>, vector<32x8xf32>, vector<16x8xf32> -> vector<16x8xf32>
    %c2_69 = arith.constant 2 : index
    %c0_70 = arith.constant 0 : index
    %c0_71 = arith.constant 0 : index
    %93 = vector.load %arg7[%c2_69, %c0_70, %c0_71] : memref<8x1x8xf32, #tpu.memory_space<vmem>>, vector<1x1x8xf32>
    %94 = vector.shape_cast %93 : vector<1x1x8xf32> to vector<1x8xf32>
    %95 = vector.broadcast %94 : vector<1x8xf32> to vector<16x8xf32>
    %96 = arith.addf %92, %95 : vector<16x8xf32>
    %c2_72 = arith.constant 2 : index
    %c0_73 = arith.constant 0 : index
    %c0_74 = arith.constant 0 : index
    %97 = vector.load %arg5[%c2_72, %c0_73, %c0_74] : memref<8x32x8xf32, #tpu.memory_space<vmem>>, vector<1x32x8xf32>
    %98 = vector.shape_cast %97 : vector<1x32x8xf32> to vector<32x8xf32>
    %cst_75 = arith.constant dense<0.000000e+00> : vector<16x8xf32>
    %99 = tpu.matmul %9, %98, %cst_75 {dimension_numbers = #tpu.dot_dimension_numbers<[1], [0], [0], [1], [0, 0, 1, 1], [], []>} : vector<16x32xf32>, vector<32x8xf32>, vector<16x8xf32> -> vector<16x8xf32>
    %c2_76 = arith.constant 2 : index
    %c0_77 = arith.constant 0 : index
    %c0_78 = arith.constant 0 : index
    %100 = vector.load %arg8[%c2_76, %c0_77, %c0_78] : memref<8x1x8xf32, #tpu.memory_space<vmem>>, vector<1x1x8xf32>
    %101 = vector.shape_cast %100 : vector<1x1x8xf32> to vector<1x8xf32>
    %102 = vector.broadcast %101 : vector<1x8xf32> to vector<16x8xf32>
    %103 = arith.addf %99, %102 : vector<16x8xf32>
    %c2_79 = arith.constant 2 : index
    %c0_80 = arith.constant 0 : index
    %c0_81 = arith.constant 0 : index
    %104 = vector.load %arg6[%c2_79, %c0_80, %c0_81] : memref<8x32x8xf32, #tpu.memory_space<vmem>>, vector<1x32x8xf32>
    %105 = vector.shape_cast %104 : vector<1x32x8xf32> to vector<32x8xf32>
    %cst_82 = arith.constant dense<0.000000e+00> : vector<16x8xf32>
    %106 = tpu.matmul %9, %105, %cst_82 {dimension_numbers = #tpu.dot_dimension_numbers<[1], [0], [0], [1], [0, 0, 1, 1], [], []>} : vector<16x32xf32>, vector<32x8xf32>, vector<16x8xf32> -> vector<16x8xf32>
    %c2_83 = arith.constant 2 : index
    %c0_84 = arith.constant 0 : index
    %c0_85 = arith.constant 0 : index
    %107 = vector.load %arg9[%c2_83, %c0_84, %c0_85] : memref<8x1x8xf32, #tpu.memory_space<vmem>>, vector<1x1x8xf32>
    %108 = vector.shape_cast %107 : vector<1x1x8xf32> to vector<1x8xf32>
    %109 = vector.broadcast %108 : vector<1x8xf32> to vector<16x8xf32>
    %110 = arith.addf %106, %109 : vector<16x8xf32>
    "tpu.trace_start"() <{level = 10 : i32, message = "qd,kd->qk"}> : () -> ()
    %cst_86 = arith.constant dense<0.000000e+00> : vector<16x16xf32>
    %111 = tpu.matmul %96, %103, %cst_86 {dimension_numbers = #tpu.dot_dimension_numbers<[1], [1], [0], [0], [0, 0, 1, 0], [], []>} : vector<16x8xf32>, vector<16x8xf32>, vector<16x16xf32> -> vector<16x16xf32>
    "tpu.trace_stop"() : () -> ()
    %cst_87 = arith.constant 0.353553385 : f32
    %112 = vector.broadcast %cst_87 : f32 to vector<16x16xf32>
    %113 = arith.mulf %111, %112 : vector<16x16xf32>
    %114 = arith.addf %113, %10 : vector<16x16xf32>
    %cst_88 = arith.constant dense<0xFF800000> : vector<16xf32>
    %115 = vector.multi_reduction <maximumf>, %114, %cst_88 [1] : vector<16x16xf32> to vector<16xf32>
    %116 = vector.shape_cast %115 : vector<16xf32> to vector<16x1xf32>
    %117 = vector.broadcast %116 : vector<16x1xf32> to vector<16x16xf32>
    %118 = arith.subf %114, %117 : vector<16x16xf32>
    %119 = math.exp %118 : vector<16x16xf32>
    %cst_89 = arith.constant dense<0.000000e+00> : vector<16xf32>
    %120 = vector.multi_reduction <add>, %119, %cst_89 [1] : vector<16x16xf32> to vector<16xf32>
    %121 = vector.shape_cast %120 : vector<16xf32> to vector<16x1xf32>
    %122 = tpu.reciprocal %121 {approx = true} : vector<16x1xf32> -> vector<16x1xf32>
    %123 = vector.broadcast %122 : vector<16x1xf32> to vector<16x16xf32>
    %124 = arith.mulf %119, %123 : vector<16x16xf32>
    %cst_90 = arith.constant dense<0.000000e+00> : vector<16x8xf32>
    %125 = tpu.matmul %124, %110, %cst_90 {dimension_numbers = #tpu.dot_dimension_numbers<[1], [0], [0], [1], [0, 0, 1, 1], [], []>} : vector<16x16xf32>, vector<16x8xf32>, vector<16x8xf32> -> vector<16x8xf32>
    %c2_91 = arith.constant 2 : index
    %c0_92 = arith.constant 0 : index
    %c0_93 = arith.constant 0 : index
    %126 = vector.load %arg10[%c2_91, %c0_92, %c0_93] : memref<8x8x32xf32, #tpu.memory_space<vmem>>, vector<1x8x32xf32>
    %127 = vector.shape_cast %126 : vector<1x8x32xf32> to vector<8x32xf32>
    %cst_94 = arith.constant dense<0.000000e+00> : vector<16x32xf32>
    %128 = tpu.matmul %125, %127, %cst_94 {dimension_numbers = #tpu.dot_dimension_numbers<[1], [0], [0], [1], [0, 0, 1, 1], [], []>} : vector<16x8xf32>, vector<8x32xf32>, vector<16x32xf32> -> vector<16x32xf32>
    %129 = arith.addf %89, %128 : vector<16x32xf32>
    %c3 = arith.constant 3 : index
    %c0_95 = arith.constant 0 : index
    %c0_96 = arith.constant 0 : index
    %130 = vector.load %arg4[%c3, %c0_95, %c0_96] : memref<8x32x8xf32, #tpu.memory_space<vmem>>, vector<1x32x8xf32>
    %131 = vector.shape_cast %130 : vector<1x32x8xf32> to vector<32x8xf32>
    %cst_97 = arith.constant dense<0.000000e+00> : vector<16x8xf32>
    %132 = tpu.matmul %9, %131, %cst_97 {dimension_numbers = #tpu.dot_dimension_numbers<[1], [0], [0], [1], [0, 0, 1, 1], [], []>} : vector<16x32xf32>, vector<32x8xf32>, vector<16x8xf32> -> vector<16x8xf32>
    %c3_98 = arith.constant 3 : index
    %c0_99 = arith.constant 0 : index
    %c0_100 = arith.constant 0 : index
    %133 = vector.load %arg7[%c3_98, %c0_99, %c0_100] : memref<8x1x8xf32, #tpu.memory_space<vmem>>, vector<1x1x8xf32>
    %134 = vector.shape_cast %133 : vector<1x1x8xf32> to vector<1x8xf32>
    %135 = vector.broadcast %134 : vector<1x8xf32> to vector<16x8xf32>
    %136 = arith.addf %132, %135 : vector<16x8xf32>
    %c3_101 = arith.constant 3 : index
    %c0_102 = arith.constant 0 : index
    %c0_103 = arith.constant 0 : index
    %137 = vector.load %arg5[%c3_101, %c0_102, %c0_103] : memref<8x32x8xf32, #tpu.memory_space<vmem>>, vector<1x32x8xf32>
    %138 = vector.shape_cast %137 : vector<1x32x8xf32> to vector<32x8xf32>
    %cst_104 = arith.constant dense<0.000000e+00> : vector<16x8xf32>
    %139 = tpu.matmul %9, %138, %cst_104 {dimension_numbers = #tpu.dot_dimension_numbers<[1], [0], [0], [1], [0, 0, 1, 1], [], []>} : vector<16x32xf32>, vector<32x8xf32>, vector<16x8xf32> -> vector<16x8xf32>
    %c3_105 = arith.constant 3 : index
    %c0_106 = arith.constant 0 : index
    %c0_107 = arith.constant 0 : index
    %140 = vector.load %arg8[%c3_105, %c0_106, %c0_107] : memref<8x1x8xf32, #tpu.memory_space<vmem>>, vector<1x1x8xf32>
    %141 = vector.shape_cast %140 : vector<1x1x8xf32> to vector<1x8xf32>
    %142 = vector.broadcast %141 : vector<1x8xf32> to vector<16x8xf32>
    %143 = arith.addf %139, %142 : vector<16x8xf32>
    %c3_108 = arith.constant 3 : index
    %c0_109 = arith.constant 0 : index
    %c0_110 = arith.constant 0 : index
    %144 = vector.load %arg6[%c3_108, %c0_109, %c0_110] : memref<8x32x8xf32, #tpu.memory_space<vmem>>, vector<1x32x8xf32>
    %145 = vector.shape_cast %144 : vector<1x32x8xf32> to vector<32x8xf32>
    %cst_111 = arith.constant dense<0.000000e+00> : vector<16x8xf32>
    %146 = tpu.matmul %9, %145, %cst_111 {dimension_numbers = #tpu.dot_dimension_numbers<[1], [0], [0], [1], [0, 0, 1, 1], [], []>} : vector<16x32xf32>, vector<32x8xf32>, vector<16x8xf32> -> vector<16x8xf32>
    %c3_112 = arith.constant 3 : index
    %c0_113 = arith.constant 0 : index
    %c0_114 = arith.constant 0 : index
    %147 = vector.load %arg9[%c3_112, %c0_113, %c0_114] : memref<8x1x8xf32, #tpu.memory_space<vmem>>, vector<1x1x8xf32>
    %148 = vector.shape_cast %147 : vector<1x1x8xf32> to vector<1x8xf32>
    %149 = vector.broadcast %148 : vector<1x8xf32> to vector<16x8xf32>
    %150 = arith.addf %146, %149 : vector<16x8xf32>
    "tpu.trace_start"() <{level = 10 : i32, message = "qd,kd->qk"}> : () -> ()
    %cst_115 = arith.constant dense<0.000000e+00> : vector<16x16xf32>
    %151 = tpu.matmul %136, %143, %cst_115 {dimension_numbers = #tpu.dot_dimension_numbers<[1], [1], [0], [0], [0, 0, 1, 0], [], []>} : vector<16x8xf32>, vector<16x8xf32>, vector<16x16xf32> -> vector<16x16xf32>
    "tpu.trace_stop"() : () -> ()
    %cst_116 = arith.constant 0.353553385 : f32
    %152 = vector.broadcast %cst_116 : f32 to vector<16x16xf32>
    %153 = arith.mulf %151, %152 : vector<16x16xf32>
    %154 = arith.addf %153, %10 : vector<16x16xf32>
    %cst_117 = arith.constant dense<0xFF800000> : vector<16xf32>
    %155 = vector.multi_reduction <maximumf>, %154, %cst_117 [1] : vector<16x16xf32> to vector<16xf32>
    %156 = vector.shape_cast %155 : vector<16xf32> to vector<16x1xf32>
    %157 = vector.broadcast %156 : vector<16x1xf32> to vector<16x16xf32>
    %158 = arith.subf %154, %157 : vector<16x16xf32>
    %159 = math.exp %158 : vector<16x16xf32>
    %cst_118 = arith.constant dense<0.000000e+00> : vector<16xf32>
    %160 = vector.multi_reduction <add>, %159, %cst_118 [1] : vector<16x16xf32> to vector<16xf32>
    %161 = vector.shape_cast %160 : vector<16xf32> to vector<16x1xf32>
    %162 = tpu.reciprocal %161 {approx = true} : vector<16x1xf32> -> vector<16x1xf32>
    %163 = vector.broadcast %162 : vector<16x1xf32> to vector<16x16xf32>
    %164 = arith.mulf %159, %163 : vector<16x16xf32>
    %cst_119 = arith.constant dense<0.000000e+00> : vector<16x8xf32>
    %165 = tpu.matmul %164, %150, %cst_119 {dimension_numbers = #tpu.dot_dimension_numbers<[1], [0], [0], [1], [0, 0, 1, 1], [], []>} : vector<16x16xf32>, vector<16x8xf32>, vector<16x8xf32> -> vector<16x8xf32>
    %c3_120 = arith.constant 3 : index
    %c0_121 = arith.constant 0 : index
    %c0_122 = arith.constant 0 : index
    %166 = vector.load %arg10[%c3_120, %c0_121, %c0_122] : memref<8x8x32xf32, #tpu.memory_space<vmem>>, vector<1x8x32xf32>
    %167 = vector.shape_cast %166 : vector<1x8x32xf32> to vector<8x32xf32>
    %cst_123 = arith.constant dense<0.000000e+00> : vector<16x32xf32>
    %168 = tpu.matmul %165, %167, %cst_123 {dimension_numbers = #tpu.dot_dimension_numbers<[1], [0], [0], [1], [0, 0, 1, 1], [], []>} : vector<16x8xf32>, vector<8x32xf32>, vector<16x32xf32> -> vector<16x32xf32>
    %169 = arith.addf %129, %168 : vector<16x32xf32>
    %c0_124 = arith.constant 0 : index
    %c0_125 = arith.constant 0 : index
    %c0_126 = arith.constant 0 : index
    %170 = vector.load %arg11[%c0_124, %c0_125, %c0_126] : memref<2x1x32xf32, #tpu.memory_space<vmem>>, vector<1x1x32xf32>
    %171 = vector.shape_cast %170 : vector<1x1x32xf32> to vector<1x32xf32>
    %172 = vector.broadcast %171 : vector<1x32xf32> to vector<16x32xf32>
    %173 = arith.addf %169, %172 : vector<16x32xf32>
    %174 = arith.addf %9, %173 : vector<16x32xf32>
    %c0_127 = arith.constant 0 : index
    %c0_128 = arith.constant 0 : index
    %c0_129 = arith.constant 0 : index
    %175 = vector.load %arg12[%c0_127, %c0_128, %c0_129] : memref<2x1x32xf32, #tpu.memory_space<vmem>>, vector<1x1x32xf32>
    %176 = vector.shape_cast %175 : vector<1x1x32xf32> to vector<1x32xf32>
    %c0_130 = arith.constant 0 : index
    %c0_131 = arith.constant 0 : index
    %c0_132 = arith.constant 0 : index
    %177 = vector.load %arg13[%c0_130, %c0_131, %c0_132] : memref<2x1x32xf32, #tpu.memory_space<vmem>>, vector<1x1x32xf32>
    %178 = vector.shape_cast %177 : vector<1x1x32xf32> to vector<1x32xf32>
    %cst_133 = arith.constant dense<0.000000e+00> : vector<16xf32>
    %179 = vector.multi_reduction <add>, %174, %cst_133 [1] : vector<16x32xf32> to vector<16xf32>
    %180 = vector.shape_cast %179 : vector<16xf32> to vector<16x1xf32>
    %cst_134 = arith.constant 3.200000e+01 : f32
    %181 = vector.broadcast %cst_134 : f32 to vector<16x1xf32>
    %182 = arith.divf %180, %181 : vector<16x1xf32>
    %183 = vector.broadcast %182 : vector<16x1xf32> to vector<16x32xf32>
    %184 = arith.subf %174, %183 : vector<16x32xf32>
    %185 = arith.mulf %184, %184 : vector<16x32xf32>
    %cst_135 = arith.constant dense<0.000000e+00> : vector<16xf32>
    %186 = vector.multi_reduction <add>, %185, %cst_135 [1] : vector<16x32xf32> to vector<16xf32>
    %187 = vector.shape_cast %186 : vector<16xf32> to vector<16x1xf32>
    %cst_136 = arith.constant 3.200000e+01 : f32
    %188 = vector.broadcast %cst_136 : f32 to vector<16x1xf32>
    %189 = arith.divf %187, %188 : vector<16x1xf32>
    %190 = vector.broadcast %182 : vector<16x1xf32> to vector<16x32xf32>
    %191 = arith.subf %174, %190 : vector<16x32xf32>
    %cst_137 = arith.constant 9.99999974E-6 : f32
    %192 = vector.broadcast %cst_137 : f32 to vector<16x1xf32>
    %193 = arith.addf %189, %192 : vector<16x1xf32>
    %194 = math.rsqrt %193 : vector<16x1xf32>
    %195 = vector.broadcast %194 : vector<16x1xf32> to vector<16x32xf32>
    %196 = arith.mulf %191, %195 : vector<16x32xf32>
    %197 = vector.broadcast %176 : vector<1x32xf32> to vector<16x32xf32>
    %198 = arith.mulf %196, %197 : vector<16x32xf32>
    %199 = vector.broadcast %178 : vector<1x32xf32> to vector<16x32xf32>
    %200 = arith.addf %198, %199 : vector<16x32xf32>
    %c0_138 = arith.constant 0 : index
    %c0_139 = arith.constant 0 : index
    %c0_140 = arith.constant 0 : index
    %201 = vector.load %arg14[%c0_138, %c0_139, %c0_140] : memref<2x32x64xf32, #tpu.memory_space<vmem>>, vector<1x32x64xf32>
    %202 = vector.shape_cast %201 : vector<1x32x64xf32> to vector<32x64xf32>
    %cst_141 = arith.constant dense<0.000000e+00> : vector<16x64xf32>
    %203 = tpu.matmul %200, %202, %cst_141 {dimension_numbers = #tpu.dot_dimension_numbers<[1], [0], [0], [1], [0, 0, 1, 1], [], []>} : vector<16x32xf32>, vector<32x64xf32>, vector<16x64xf32> -> vector<16x64xf32>
    %c0_142 = arith.constant 0 : index
    %c0_143 = arith.constant 0 : index
    %c0_144 = arith.constant 0 : index
    %204 = vector.load %arg15[%c0_142, %c0_143, %c0_144] : memref<2x1x64xf32, #tpu.memory_space<vmem>>, vector<1x1x64xf32>
    %205 = vector.shape_cast %204 : vector<1x1x64xf32> to vector<1x64xf32>
    %206 = vector.broadcast %205 : vector<1x64xf32> to vector<16x64xf32>
    %207 = arith.addf %203, %206 : vector<16x64xf32>
    %208 = arith.mulf %207, %207 : vector<16x64xf32>
    %209 = arith.mulf %207, %208 : vector<16x64xf32>
    %cst_145 = arith.constant 4.471500e-02 : f32
    %210 = vector.broadcast %cst_145 : f32 to vector<16x64xf32>
    %211 = arith.mulf %210, %209 : vector<16x64xf32>
    %212 = arith.addf %207, %211 : vector<16x64xf32>
    %cst_146 = arith.constant 0.797884583 : f32
    %213 = vector.broadcast %cst_146 : f32 to vector<16x64xf32>
    %214 = arith.mulf %213, %212 : vector<16x64xf32>
    %215 = math.tanh %214 : vector<16x64xf32>
    %cst_147 = arith.constant 1.000000e+00 : f32
    %216 = vector.broadcast %cst_147 : f32 to vector<16x64xf32>
    %217 = arith.addf %216, %215 : vector<16x64xf32>
    %cst_148 = arith.constant 5.000000e-01 : f32
    %218 = vector.broadcast %cst_148 : f32 to vector<16x64xf32>
    %219 = arith.mulf %218, %217 : vector<16x64xf32>
    %220 = arith.mulf %207, %219 : vector<16x64xf32>
    %c0_149 = arith.constant 0 : index
    %c0_150 = arith.constant 0 : index
    %c0_151 = arith.constant 0 : index
    %221 = vector.load %arg16[%c0_149, %c0_150, %c0_151] : memref<2x64x32xf32, #tpu.memory_space<vmem>>, vector<1x64x32xf32>
    %222 = vector.shape_cast %221 : vector<1x64x32xf32> to vector<64x32xf32>
    %cst_152 = arith.constant dense<0.000000e+00> : vector<16x32xf32>
    %223 = tpu.matmul %220, %222, %cst_152 {dimension_numbers = #tpu.dot_dimension_numbers<[1], [0], [0], [1], [0, 0, 1, 1], [], []>} : vector<16x64xf32>, vector<64x32xf32>, vector<16x32xf32> -> vector<16x32xf32>
    %c0_153 = arith.constant 0 : index
    %c0_154 = arith.constant 0 : index
    %c0_155 = arith.constant 0 : index
    %224 = vector.load %arg17[%c0_153, %c0_154, %c0_155] : memref<2x1x32xf32, #tpu.memory_space<vmem>>, vector<1x1x32xf32>
    %225 = vector.shape_cast %224 : vector<1x1x32xf32> to vector<1x32xf32>
    %226 = vector.broadcast %225 : vector<1x32xf32> to vector<16x32xf32>
    %227 = arith.addf %223, %226 : vector<16x32xf32>
    %228 = arith.addf %200, %227 : vector<16x32xf32>
    %c0_156 = arith.constant 0 : index
    %c0_157 = arith.constant 0 : index
    %c0_158 = arith.constant 0 : index
    %229 = vector.load %arg18[%c0_156, %c0_157, %c0_158] : memref<2x1x32xf32, #tpu.memory_space<vmem>>, vector<1x1x32xf32>
    %230 = vector.shape_cast %229 : vector<1x1x32xf32> to vector<1x32xf32>
    %c0_159 = arith.constant 0 : index
    %c0_160 = arith.constant 0 : index
    %c0_161 = arith.constant 0 : index
    %231 = vector.load %arg19[%c0_159, %c0_160, %c0_161] : memref<2x1x32xf32, #tpu.memory_space<vmem>>, vector<1x1x32xf32>
    %232 = vector.shape_cast %231 : vector<1x1x32xf32> to vector<1x32xf32>
    %cst_162 = arith.constant dense<0.000000e+00> : vector<16xf32>
    %233 = vector.multi_reduction <add>, %228, %cst_162 [1] : vector<16x32xf32> to vector<16xf32>
    %234 = vector.shape_cast %233 : vector<16xf32> to vector<16x1xf32>
    %cst_163 = arith.constant 3.200000e+01 : f32
    %235 = vector.broadcast %cst_163 : f32 to vector<16x1xf32>
    %236 = arith.divf %234, %235 : vector<16x1xf32>
    %237 = vector.broadcast %236 : vector<16x1xf32> to vector<16x32xf32>
    %238 = arith.subf %228, %237 : vector<16x32xf32>
    %239 = arith.mulf %238, %238 : vector<16x32xf32>
    %cst_164 = arith.constant dense<0.000000e+00> : vector<16xf32>
    %240 = vector.multi_reduction <add>, %239, %cst_164 [1] : vector<16x32xf32> to vector<16xf32>
    %241 = vector.shape_cast %240 : vector<16xf32> to vector<16x1xf32>
    %cst_165 = arith.constant 3.200000e+01 : f32
    %242 = vector.broadcast %cst_165 : f32 to vector<16x1xf32>
    %243 = arith.divf %241, %242 : vector<16x1xf32>
    %244 = vector.broadcast %236 : vector<16x1xf32> to vector<16x32xf32>
    %245 = arith.subf %228, %244 : vector<16x32xf32>
    %cst_166 = arith.constant 9.99999974E-6 : f32
    %246 = vector.broadcast %cst_166 : f32 to vector<16x1xf32>
    %247 = arith.addf %243, %246 : vector<16x1xf32>
    %248 = math.rsqrt %247 : vector<16x1xf32>
    %249 = vector.broadcast %248 : vector<16x1xf32> to vector<16x32xf32>
    %250 = arith.mulf %245, %249 : vector<16x32xf32>
    %251 = vector.broadcast %230 : vector<1x32xf32> to vector<16x32xf32>
    %252 = arith.mulf %250, %251 : vector<16x32xf32>
    %253 = vector.broadcast %232 : vector<1x32xf32> to vector<16x32xf32>
    %254 = arith.addf %252, %253 : vector<16x32xf32>
    %c4 = arith.constant 4 : index
    %c0_167 = arith.constant 0 : index
    %c0_168 = arith.constant 0 : index
    %255 = vector.load %arg4[%c4, %c0_167, %c0_168] : memref<8x32x8xf32, #tpu.memory_space<vmem>>, vector<1x32x8xf32>
    %256 = vector.shape_cast %255 : vector<1x32x8xf32> to vector<32x8xf32>
    %cst_169 = arith.constant dense<0.000000e+00> : vector<16x8xf32>
    %257 = tpu.matmul %254, %256, %cst_169 {dimension_numbers = #tpu.dot_dimension_numbers<[1], [0], [0], [1], [0, 0, 1, 1], [], []>} : vector<16x32xf32>, vector<32x8xf32>, vector<16x8xf32> -> vector<16x8xf32>
    %c4_170 = arith.constant 4 : index
    %c0_171 = arith.constant 0 : index
    %c0_172 = arith.constant 0 : index
    %258 = vector.load %arg7[%c4_170, %c0_171, %c0_172] : memref<8x1x8xf32, #tpu.memory_space<vmem>>, vector<1x1x8xf32>
    %259 = vector.shape_cast %258 : vector<1x1x8xf32> to vector<1x8xf32>
    %260 = vector.broadcast %259 : vector<1x8xf32> to vector<16x8xf32>
    %261 = arith.addf %257, %260 : vector<16x8xf32>
    %c4_173 = arith.constant 4 : index
    %c0_174 = arith.constant 0 : index
    %c0_175 = arith.constant 0 : index
    %262 = vector.load %arg5[%c4_173, %c0_174, %c0_175] : memref<8x32x8xf32, #tpu.memory_space<vmem>>, vector<1x32x8xf32>
    %263 = vector.shape_cast %262 : vector<1x32x8xf32> to vector<32x8xf32>
    %cst_176 = arith.constant dense<0.000000e+00> : vector<16x8xf32>
    %264 = tpu.matmul %254, %263, %cst_176 {dimension_numbers = #tpu.dot_dimension_numbers<[1], [0], [0], [1], [0, 0, 1, 1], [], []>} : vector<16x32xf32>, vector<32x8xf32>, vector<16x8xf32> -> vector<16x8xf32>
    %c4_177 = arith.constant 4 : index
    %c0_178 = arith.constant 0 : index
    %c0_179 = arith.constant 0 : index
    %265 = vector.load %arg8[%c4_177, %c0_178, %c0_179] : memref<8x1x8xf32, #tpu.memory_space<vmem>>, vector<1x1x8xf32>
    %266 = vector.shape_cast %265 : vector<1x1x8xf32> to vector<1x8xf32>
    %267 = vector.broadcast %266 : vector<1x8xf32> to vector<16x8xf32>
    %268 = arith.addf %264, %267 : vector<16x8xf32>
    %c4_180 = arith.constant 4 : index
    %c0_181 = arith.constant 0 : index
    %c0_182 = arith.constant 0 : index
    %269 = vector.load %arg6[%c4_180, %c0_181, %c0_182] : memref<8x32x8xf32, #tpu.memory_space<vmem>>, vector<1x32x8xf32>
    %270 = vector.shape_cast %269 : vector<1x32x8xf32> to vector<32x8xf32>
    %cst_183 = arith.constant dense<0.000000e+00> : vector<16x8xf32>
    %271 = tpu.matmul %254, %270, %cst_183 {dimension_numbers = #tpu.dot_dimension_numbers<[1], [0], [0], [1], [0, 0, 1, 1], [], []>} : vector<16x32xf32>, vector<32x8xf32>, vector<16x8xf32> -> vector<16x8xf32>
    %c4_184 = arith.constant 4 : index
    %c0_185 = arith.constant 0 : index
    %c0_186 = arith.constant 0 : index
    %272 = vector.load %arg9[%c4_184, %c0_185, %c0_186] : memref<8x1x8xf32, #tpu.memory_space<vmem>>, vector<1x1x8xf32>
    %273 = vector.shape_cast %272 : vector<1x1x8xf32> to vector<1x8xf32>
    %274 = vector.broadcast %273 : vector<1x8xf32> to vector<16x8xf32>
    %275 = arith.addf %271, %274 : vector<16x8xf32>
    "tpu.trace_start"() <{level = 10 : i32, message = "qd,kd->qk"}> : () -> ()
    %cst_187 = arith.constant dense<0.000000e+00> : vector<16x16xf32>
    %276 = tpu.matmul %261, %268, %cst_187 {dimension_numbers = #tpu.dot_dimension_numbers<[1], [1], [0], [0], [0, 0, 1, 0], [], []>} : vector<16x8xf32>, vector<16x8xf32>, vector<16x16xf32> -> vector<16x16xf32>
    "tpu.trace_stop"() : () -> ()
    %cst_188 = arith.constant 0.353553385 : f32
    %277 = vector.broadcast %cst_188 : f32 to vector<16x16xf32>
    %278 = arith.mulf %276, %277 : vector<16x16xf32>
    %279 = arith.addf %278, %10 : vector<16x16xf32>
    %cst_189 = arith.constant dense<0xFF800000> : vector<16xf32>
    %280 = vector.multi_reduction <maximumf>, %279, %cst_189 [1] : vector<16x16xf32> to vector<16xf32>
    %281 = vector.shape_cast %280 : vector<16xf32> to vector<16x1xf32>
    %282 = vector.broadcast %281 : vector<16x1xf32> to vector<16x16xf32>
    %283 = arith.subf %279, %282 : vector<16x16xf32>
    %284 = math.exp %283 : vector<16x16xf32>
    %cst_190 = arith.constant dense<0.000000e+00> : vector<16xf32>
    %285 = vector.multi_reduction <add>, %284, %cst_190 [1] : vector<16x16xf32> to vector<16xf32>
    %286 = vector.shape_cast %285 : vector<16xf32> to vector<16x1xf32>
    %287 = tpu.reciprocal %286 {approx = true} : vector<16x1xf32> -> vector<16x1xf32>
    %288 = vector.broadcast %287 : vector<16x1xf32> to vector<16x16xf32>
    %289 = arith.mulf %284, %288 : vector<16x16xf32>
    %cst_191 = arith.constant dense<0.000000e+00> : vector<16x8xf32>
    %290 = tpu.matmul %289, %275, %cst_191 {dimension_numbers = #tpu.dot_dimension_numbers<[1], [0], [0], [1], [0, 0, 1, 1], [], []>} : vector<16x16xf32>, vector<16x8xf32>, vector<16x8xf32> -> vector<16x8xf32>
    %c4_192 = arith.constant 4 : index
    %c0_193 = arith.constant 0 : index
    %c0_194 = arith.constant 0 : index
    %291 = vector.load %arg10[%c4_192, %c0_193, %c0_194] : memref<8x8x32xf32, #tpu.memory_space<vmem>>, vector<1x8x32xf32>
    %292 = vector.shape_cast %291 : vector<1x8x32xf32> to vector<8x32xf32>
    %cst_195 = arith.constant dense<0.000000e+00> : vector<16x32xf32>
    %293 = tpu.matmul %290, %292, %cst_195 {dimension_numbers = #tpu.dot_dimension_numbers<[1], [0], [0], [1], [0, 0, 1, 1], [], []>} : vector<16x8xf32>, vector<8x32xf32>, vector<16x32xf32> -> vector<16x32xf32>
    %c5 = arith.constant 5 : index
    %c0_196 = arith.constant 0 : index
    %c0_197 = arith.constant 0 : index
    %294 = vector.load %arg4[%c5, %c0_196, %c0_197] : memref<8x32x8xf32, #tpu.memory_space<vmem>>, vector<1x32x8xf32>
    %295 = vector.shape_cast %294 : vector<1x32x8xf32> to vector<32x8xf32>
    %cst_198 = arith.constant dense<0.000000e+00> : vector<16x8xf32>
    %296 = tpu.matmul %254, %295, %cst_198 {dimension_numbers = #tpu.dot_dimension_numbers<[1], [0], [0], [1], [0, 0, 1, 1], [], []>} : vector<16x32xf32>, vector<32x8xf32>, vector<16x8xf32> -> vector<16x8xf32>
    %c5_199 = arith.constant 5 : index
    %c0_200 = arith.constant 0 : index
    %c0_201 = arith.constant 0 : index
    %297 = vector.load %arg7[%c5_199, %c0_200, %c0_201] : memref<8x1x8xf32, #tpu.memory_space<vmem>>, vector<1x1x8xf32>
    %298 = vector.shape_cast %297 : vector<1x1x8xf32> to vector<1x8xf32>
    %299 = vector.broadcast %298 : vector<1x8xf32> to vector<16x8xf32>
    %300 = arith.addf %296, %299 : vector<16x8xf32>
    %c5_202 = arith.constant 5 : index
    %c0_203 = arith.constant 0 : index
    %c0_204 = arith.constant 0 : index
    %301 = vector.load %arg5[%c5_202, %c0_203, %c0_204] : memref<8x32x8xf32, #tpu.memory_space<vmem>>, vector<1x32x8xf32>
    %302 = vector.shape_cast %301 : vector<1x32x8xf32> to vector<32x8xf32>
    %cst_205 = arith.constant dense<0.000000e+00> : vector<16x8xf32>
    %303 = tpu.matmul %254, %302, %cst_205 {dimension_numbers = #tpu.dot_dimension_numbers<[1], [0], [0], [1], [0, 0, 1, 1], [], []>} : vector<16x32xf32>, vector<32x8xf32>, vector<16x8xf32> -> vector<16x8xf32>
    %c5_206 = arith.constant 5 : index
    %c0_207 = arith.constant 0 : index
    %c0_208 = arith.constant 0 : index
    %304 = vector.load %arg8[%c5_206, %c0_207, %c0_208] : memref<8x1x8xf32, #tpu.memory_space<vmem>>, vector<1x1x8xf32>
    %305 = vector.shape_cast %304 : vector<1x1x8xf32> to vector<1x8xf32>
    %306 = vector.broadcast %305 : vector<1x8xf32> to vector<16x8xf32>
    %307 = arith.addf %303, %306 : vector<16x8xf32>
    %c5_209 = arith.constant 5 : index
    %c0_210 = arith.constant 0 : index
    %c0_211 = arith.constant 0 : index
    %308 = vector.load %arg6[%c5_209, %c0_210, %c0_211] : memref<8x32x8xf32, #tpu.memory_space<vmem>>, vector<1x32x8xf32>
    %309 = vector.shape_cast %308 : vector<1x32x8xf32> to vector<32x8xf32>
    %cst_212 = arith.constant dense<0.000000e+00> : vector<16x8xf32>
    %310 = tpu.matmul %254, %309, %cst_212 {dimension_numbers = #tpu.dot_dimension_numbers<[1], [0], [0], [1], [0, 0, 1, 1], [], []>} : vector<16x32xf32>, vector<32x8xf32>, vector<16x8xf32> -> vector<16x8xf32>
    %c5_213 = arith.constant 5 : index
    %c0_214 = arith.constant 0 : index
    %c0_215 = arith.constant 0 : index
    %311 = vector.load %arg9[%c5_213, %c0_214, %c0_215] : memref<8x1x8xf32, #tpu.memory_space<vmem>>, vector<1x1x8xf32>
    %312 = vector.shape_cast %311 : vector<1x1x8xf32> to vector<1x8xf32>
    %313 = vector.broadcast %312 : vector<1x8xf32> to vector<16x8xf32>
    %314 = arith.addf %310, %313 : vector<16x8xf32>
    "tpu.trace_start"() <{level = 10 : i32, message = "qd,kd->qk"}> : () -> ()
    %cst_216 = arith.constant dense<0.000000e+00> : vector<16x16xf32>
    %315 = tpu.matmul %300, %307, %cst_216 {dimension_numbers = #tpu.dot_dimension_numbers<[1], [1], [0], [0], [0, 0, 1, 0], [], []>} : vector<16x8xf32>, vector<16x8xf32>, vector<16x16xf32> -> vector<16x16xf32>
    "tpu.trace_stop"() : () -> ()
    %cst_217 = arith.constant 0.353553385 : f32
    %316 = vector.broadcast %cst_217 : f32 to vector<16x16xf32>
    %317 = arith.mulf %315, %316 : vector<16x16xf32>
    %318 = arith.addf %317, %10 : vector<16x16xf32>
    %cst_218 = arith.constant dense<0xFF800000> : vector<16xf32>
    %319 = vector.multi_reduction <maximumf>, %318, %cst_218 [1] : vector<16x16xf32> to vector<16xf32>
    %320 = vector.shape_cast %319 : vector<16xf32> to vector<16x1xf32>
    %321 = vector.broadcast %320 : vector<16x1xf32> to vector<16x16xf32>
    %322 = arith.subf %318, %321 : vector<16x16xf32>
    %323 = math.exp %322 : vector<16x16xf32>
    %cst_219 = arith.constant dense<0.000000e+00> : vector<16xf32>
    %324 = vector.multi_reduction <add>, %323, %cst_219 [1] : vector<16x16xf32> to vector<16xf32>
    %325 = vector.shape_cast %324 : vector<16xf32> to vector<16x1xf32>
    %326 = tpu.reciprocal %325 {approx = true} : vector<16x1xf32> -> vector<16x1xf32>
    %327 = vector.broadcast %326 : vector<16x1xf32> to vector<16x16xf32>
    %328 = arith.mulf %323, %327 : vector<16x16xf32>
    %cst_220 = arith.constant dense<0.000000e+00> : vector<16x8xf32>
    %329 = tpu.matmul %328, %314, %cst_220 {dimension_numbers = #tpu.dot_dimension_numbers<[1], [0], [0], [1], [0, 0, 1, 1], [], []>} : vector<16x16xf32>, vector<16x8xf32>, vector<16x8xf32> -> vector<16x8xf32>
    %c5_221 = arith.constant 5 : index
    %c0_222 = arith.constant 0 : index
    %c0_223 = arith.constant 0 : index
    %330 = vector.load %arg10[%c5_221, %c0_222, %c0_223] : memref<8x8x32xf32, #tpu.memory_space<vmem>>, vector<1x8x32xf32>
    %331 = vector.shape_cast %330 : vector<1x8x32xf32> to vector<8x32xf32>
    %cst_224 = arith.constant dense<0.000000e+00> : vector<16x32xf32>
    %332 = tpu.matmul %329, %331, %cst_224 {dimension_numbers = #tpu.dot_dimension_numbers<[1], [0], [0], [1], [0, 0, 1, 1], [], []>} : vector<16x8xf32>, vector<8x32xf32>, vector<16x32xf32> -> vector<16x32xf32>
    %333 = arith.addf %293, %332 : vector<16x32xf32>
    %c6 = arith.constant 6 : index
    %c0_225 = arith.constant 0 : index
    %c0_226 = arith.constant 0 : index
    %334 = vector.load %arg4[%c6, %c0_225, %c0_226] : memref<8x32x8xf32, #tpu.memory_space<vmem>>, vector<1x32x8xf32>
    %335 = vector.shape_cast %334 : vector<1x32x8xf32> to vector<32x8xf32>
    %cst_227 = arith.constant dense<0.000000e+00> : vector<16x8xf32>
    %336 = tpu.matmul %254, %335, %cst_227 {dimension_numbers = #tpu.dot_dimension_numbers<[1], [0], [0], [1], [0, 0, 1, 1], [], []>} : vector<16x32xf32>, vector<32x8xf32>, vector<16x8xf32> -> vector<16x8xf32>
    %c6_228 = arith.constant 6 : index
    %c0_229 = arith.constant 0 : index
    %c0_230 = arith.constant 0 : index
    %337 = vector.load %arg7[%c6_228, %c0_229, %c0_230] : memref<8x1x8xf32, #tpu.memory_space<vmem>>, vector<1x1x8xf32>
    %338 = vector.shape_cast %337 : vector<1x1x8xf32> to vector<1x8xf32>
    %339 = vector.broadcast %338 : vector<1x8xf32> to vector<16x8xf32>
    %340 = arith.addf %336, %339 : vector<16x8xf32>
    %c6_231 = arith.constant 6 : index
    %c0_232 = arith.constant 0 : index
    %c0_233 = arith.constant 0 : index
    %341 = vector.load %arg5[%c6_231, %c0_232, %c0_233] : memref<8x32x8xf32, #tpu.memory_space<vmem>>, vector<1x32x8xf32>
    %342 = vector.shape_cast %341 : vector<1x32x8xf32> to vector<32x8xf32>
    %cst_234 = arith.constant dense<0.000000e+00> : vector<16x8xf32>
    %343 = tpu.matmul %254, %342, %cst_234 {dimension_numbers = #tpu.dot_dimension_numbers<[1], [0], [0], [1], [0, 0, 1, 1], [], []>} : vector<16x32xf32>, vector<32x8xf32>, vector<16x8xf32> -> vector<16x8xf32>
    %c6_235 = arith.constant 6 : index
    %c0_236 = arith.constant 0 : index
    %c0_237 = arith.constant 0 : index
    %344 = vector.load %arg8[%c6_235, %c0_236, %c0_237] : memref<8x1x8xf32, #tpu.memory_space<vmem>>, vector<1x1x8xf32>
    %345 = vector.shape_cast %344 : vector<1x1x8xf32> to vector<1x8xf32>
    %346 = vector.broadcast %345 : vector<1x8xf32> to vector<16x8xf32>
    %347 = arith.addf %343, %346 : vector<16x8xf32>
    %c6_238 = arith.constant 6 : index
    %c0_239 = arith.constant 0 : index
    %c0_240 = arith.constant 0 : index
    %348 = vector.load %arg6[%c6_238, %c0_239, %c0_240] : memref<8x32x8xf32, #tpu.memory_space<vmem>>, vector<1x32x8xf32>
    %349 = vector.shape_cast %348 : vector<1x32x8xf32> to vector<32x8xf32>
    %cst_241 = arith.constant dense<0.000000e+00> : vector<16x8xf32>
    %350 = tpu.matmul %254, %349, %cst_241 {dimension_numbers = #tpu.dot_dimension_numbers<[1], [0], [0], [1], [0, 0, 1, 1], [], []>} : vector<16x32xf32>, vector<32x8xf32>, vector<16x8xf32> -> vector<16x8xf32>
    %c6_242 = arith.constant 6 : index
    %c0_243 = arith.constant 0 : index
    %c0_244 = arith.constant 0 : index
    %351 = vector.load %arg9[%c6_242, %c0_243, %c0_244] : memref<8x1x8xf32, #tpu.memory_space<vmem>>, vector<1x1x8xf32>
    %352 = vector.shape_cast %351 : vector<1x1x8xf32> to vector<1x8xf32>
    %353 = vector.broadcast %352 : vector<1x8xf32> to vector<16x8xf32>
    %354 = arith.addf %350, %353 : vector<16x8xf32>
    "tpu.trace_start"() <{level = 10 : i32, message = "qd,kd->qk"}> : () -> ()
    %cst_245 = arith.constant dense<0.000000e+00> : vector<16x16xf32>
    %355 = tpu.matmul %340, %347, %cst_245 {dimension_numbers = #tpu.dot_dimension_numbers<[1], [1], [0], [0], [0, 0, 1, 0], [], []>} : vector<16x8xf32>, vector<16x8xf32>, vector<16x16xf32> -> vector<16x16xf32>
    "tpu.trace_stop"() : () -> ()
    %cst_246 = arith.constant 0.353553385 : f32
    %356 = vector.broadcast %cst_246 : f32 to vector<16x16xf32>
    %357 = arith.mulf %355, %356 : vector<16x16xf32>
    %358 = arith.addf %357, %10 : vector<16x16xf32>
    %cst_247 = arith.constant dense<0xFF800000> : vector<16xf32>
    %359 = vector.multi_reduction <maximumf>, %358, %cst_247 [1] : vector<16x16xf32> to vector<16xf32>
    %360 = vector.shape_cast %359 : vector<16xf32> to vector<16x1xf32>
    %361 = vector.broadcast %360 : vector<16x1xf32> to vector<16x16xf32>
    %362 = arith.subf %358, %361 : vector<16x16xf32>
    %363 = math.exp %362 : vector<16x16xf32>
    %cst_248 = arith.constant dense<0.000000e+00> : vector<16xf32>
    %364 = vector.multi_reduction <add>, %363, %cst_248 [1] : vector<16x16xf32> to vector<16xf32>
    %365 = vector.shape_cast %364 : vector<16xf32> to vector<16x1xf32>
    %366 = tpu.reciprocal %365 {approx = true} : vector<16x1xf32> -> vector<16x1xf32>
    %367 = vector.broadcast %366 : vector<16x1xf32> to vector<16x16xf32>
    %368 = arith.mulf %363, %367 : vector<16x16xf32>
    %cst_249 = arith.constant dense<0.000000e+00> : vector<16x8xf32>
    %369 = tpu.matmul %368, %354, %cst_249 {dimension_numbers = #tpu.dot_dimension_numbers<[1], [0], [0], [1], [0, 0, 1, 1], [], []>} : vector<16x16xf32>, vector<16x8xf32>, vector<16x8xf32> -> vector<16x8xf32>
    %c6_250 = arith.constant 6 : index
    %c0_251 = arith.constant 0 : index
    %c0_252 = arith.constant 0 : index
    %370 = vector.load %arg10[%c6_250, %c0_251, %c0_252] : memref<8x8x32xf32, #tpu.memory_space<vmem>>, vector<1x8x32xf32>
    %371 = vector.shape_cast %370 : vector<1x8x32xf32> to vector<8x32xf32>
    %cst_253 = arith.constant dense<0.000000e+00> : vector<16x32xf32>
    %372 = tpu.matmul %369, %371, %cst_253 {dimension_numbers = #tpu.dot_dimension_numbers<[1], [0], [0], [1], [0, 0, 1, 1], [], []>} : vector<16x8xf32>, vector<8x32xf32>, vector<16x32xf32> -> vector<16x32xf32>
    %373 = arith.addf %333, %372 : vector<16x32xf32>
    %c7 = arith.constant 7 : index
    %c0_254 = arith.constant 0 : index
    %c0_255 = arith.constant 0 : index
    %374 = vector.load %arg4[%c7, %c0_254, %c0_255] : memref<8x32x8xf32, #tpu.memory_space<vmem>>, vector<1x32x8xf32>
    %375 = vector.shape_cast %374 : vector<1x32x8xf32> to vector<32x8xf32>
    %cst_256 = arith.constant dense<0.000000e+00> : vector<16x8xf32>
    %376 = tpu.matmul %254, %375, %cst_256 {dimension_numbers = #tpu.dot_dimension_numbers<[1], [0], [0], [1], [0, 0, 1, 1], [], []>} : vector<16x32xf32>, vector<32x8xf32>, vector<16x8xf32> -> vector<16x8xf32>
    %c7_257 = arith.constant 7 : index
    %c0_258 = arith.constant 0 : index
    %c0_259 = arith.constant 0 : index
    %377 = vector.load %arg7[%c7_257, %c0_258, %c0_259] : memref<8x1x8xf32, #tpu.memory_space<vmem>>, vector<1x1x8xf32>
    %378 = vector.shape_cast %377 : vector<1x1x8xf32> to vector<1x8xf32>
    %379 = vector.broadcast %378 : vector<1x8xf32> to vector<16x8xf32>
    %380 = arith.addf %376, %379 : vector<16x8xf32>
    %c7_260 = arith.constant 7 : index
    %c0_261 = arith.constant 0 : index
    %c0_262 = arith.constant 0 : index
    %381 = vector.load %arg5[%c7_260, %c0_261, %c0_262] : memref<8x32x8xf32, #tpu.memory_space<vmem>>, vector<1x32x8xf32>
    %382 = vector.shape_cast %381 : vector<1x32x8xf32> to vector<32x8xf32>
    %cst_263 = arith.constant dense<0.000000e+00> : vector<16x8xf32>
    %383 = tpu.matmul %254, %382, %cst_263 {dimension_numbers = #tpu.dot_dimension_numbers<[1], [0], [0], [1], [0, 0, 1, 1], [], []>} : vector<16x32xf32>, vector<32x8xf32>, vector<16x8xf32> -> vector<16x8xf32>
    %c7_264 = arith.constant 7 : index
    %c0_265 = arith.constant 0 : index
    %c0_266 = arith.constant 0 : index
    %384 = vector.load %arg8[%c7_264, %c0_265, %c0_266] : memref<8x1x8xf32, #tpu.memory_space<vmem>>, vector<1x1x8xf32>
    %385 = vector.shape_cast %384 : vector<1x1x8xf32> to vector<1x8xf32>
    %386 = vector.broadcast %385 : vector<1x8xf32> to vector<16x8xf32>
    %387 = arith.addf %383, %386 : vector<16x8xf32>
    %c7_267 = arith.constant 7 : index
    %c0_268 = arith.constant 0 : index
    %c0_269 = arith.constant 0 : index
    %388 = vector.load %arg6[%c7_267, %c0_268, %c0_269] : memref<8x32x8xf32, #tpu.memory_space<vmem>>, vector<1x32x8xf32>
    %389 = vector.shape_cast %388 : vector<1x32x8xf32> to vector<32x8xf32>
    %cst_270 = arith.constant dense<0.000000e+00> : vector<16x8xf32>
    %390 = tpu.matmul %254, %389, %cst_270 {dimension_numbers = #tpu.dot_dimension_numbers<[1], [0], [0], [1], [0, 0, 1, 1], [], []>} : vector<16x32xf32>, vector<32x8xf32>, vector<16x8xf32> -> vector<16x8xf32>
    %c7_271 = arith.constant 7 : index
    %c0_272 = arith.constant 0 : index
    %c0_273 = arith.constant 0 : index
    %391 = vector.load %arg9[%c7_271, %c0_272, %c0_273] : memref<8x1x8xf32, #tpu.memory_space<vmem>>, vector<1x1x8xf32>
    %392 = vector.shape_cast %391 : vector<1x1x8xf32> to vector<1x8xf32>
    %393 = vector.broadcast %392 : vector<1x8xf32> to vector<16x8xf32>
    %394 = arith.addf %390, %393 : vector<16x8xf32>
    "tpu.trace_start"() <{level = 10 : i32, message = "qd,kd->qk"}> : () -> ()
    %cst_274 = arith.constant dense<0.000000e+00> : vector<16x16xf32>
    %395 = tpu.matmul %380, %387, %cst_274 {dimension_numbers = #tpu.dot_dimension_numbers<[1], [1], [0], [0], [0, 0, 1, 0], [], []>} : vector<16x8xf32>, vector<16x8xf32>, vector<16x16xf32> -> vector<16x16xf32>
    "tpu.trace_stop"() : () -> ()
    %cst_275 = arith.constant 0.353553385 : f32
    %396 = vector.broadcast %cst_275 : f32 to vector<16x16xf32>
    %397 = arith.mulf %395, %396 : vector<16x16xf32>
    %398 = arith.addf %397, %10 : vector<16x16xf32>
    %cst_276 = arith.constant dense<0xFF800000> : vector<16xf32>
    %399 = vector.multi_reduction <maximumf>, %398, %cst_276 [1] : vector<16x16xf32> to vector<16xf32>
    %400 = vector.shape_cast %399 : vector<16xf32> to vector<16x1xf32>
    %401 = vector.broadcast %400 : vector<16x1xf32> to vector<16x16xf32>
    %402 = arith.subf %398, %401 : vector<16x16xf32>
    %403 = math.exp %402 : vector<16x16xf32>
    %cst_277 = arith.constant dense<0.000000e+00> : vector<16xf32>
    %404 = vector.multi_reduction <add>, %403, %cst_277 [1] : vector<16x16xf32> to vector<16xf32>
    %405 = vector.shape_cast %404 : vector<16xf32> to vector<16x1xf32>
    %406 = tpu.reciprocal %405 {approx = true} : vector<16x1xf32> -> vector<16x1xf32>
    %407 = vector.broadcast %406 : vector<16x1xf32> to vector<16x16xf32>
    %408 = arith.mulf %403, %407 : vector<16x16xf32>
    %cst_278 = arith.constant dense<0.000000e+00> : vector<16x8xf32>
    %409 = tpu.matmul %408, %394, %cst_278 {dimension_numbers = #tpu.dot_dimension_numbers<[1], [0], [0], [1], [0, 0, 1, 1], [], []>} : vector<16x16xf32>, vector<16x8xf32>, vector<16x8xf32> -> vector<16x8xf32>
    %c7_279 = arith.constant 7 : index
    %c0_280 = arith.constant 0 : index
    %c0_281 = arith.constant 0 : index
    %410 = vector.load %arg10[%c7_279, %c0_280, %c0_281] : memref<8x8x32xf32, #tpu.memory_space<vmem>>, vector<1x8x32xf32>
    %411 = vector.shape_cast %410 : vector<1x8x32xf32> to vector<8x32xf32>
    %cst_282 = arith.constant dense<0.000000e+00> : vector<16x32xf32>
    %412 = tpu.matmul %409, %411, %cst_282 {dimension_numbers = #tpu.dot_dimension_numbers<[1], [0], [0], [1], [0, 0, 1, 1], [], []>} : vector<16x8xf32>, vector<8x32xf32>, vector<16x32xf32> -> vector<16x32xf32>
    %413 = arith.addf %373, %412 : vector<16x32xf32>
    %c1_283 = arith.constant 1 : index
    %c0_284 = arith.constant 0 : index
    %c0_285 = arith.constant 0 : index
    %414 = vector.load %arg11[%c1_283, %c0_284, %c0_285] : memref<2x1x32xf32, #tpu.memory_space<vmem>>, vector<1x1x32xf32>
    %415 = vector.shape_cast %414 : vector<1x1x32xf32> to vector<1x32xf32>
    %416 = vector.broadcast %415 : vector<1x32xf32> to vector<16x32xf32>
    %417 = arith.addf %413, %416 : vector<16x32xf32>
    %418 = arith.addf %254, %417 : vector<16x32xf32>
    %c1_286 = arith.constant 1 : index
    %c0_287 = arith.constant 0 : index
    %c0_288 = arith.constant 0 : index
    %419 = vector.load %arg12[%c1_286, %c0_287, %c0_288] : memref<2x1x32xf32, #tpu.memory_space<vmem>>, vector<1x1x32xf32>
    %420 = vector.shape_cast %419 : vector<1x1x32xf32> to vector<1x32xf32>
    %c1_289 = arith.constant 1 : index
    %c0_290 = arith.constant 0 : index
    %c0_291 = arith.constant 0 : index
    %421 = vector.load %arg13[%c1_289, %c0_290, %c0_291] : memref<2x1x32xf32, #tpu.memory_space<vmem>>, vector<1x1x32xf32>
    %422 = vector.shape_cast %421 : vector<1x1x32xf32> to vector<1x32xf32>
    %cst_292 = arith.constant dense<0.000000e+00> : vector<16xf32>
    %423 = vector.multi_reduction <add>, %418, %cst_292 [1] : vector<16x32xf32> to vector<16xf32>
    %424 = vector.shape_cast %423 : vector<16xf32> to vector<16x1xf32>
    %cst_293 = arith.constant 3.200000e+01 : f32
    %425 = vector.broadcast %cst_293 : f32 to vector<16x1xf32>
    %426 = arith.divf %424, %425 : vector<16x1xf32>
    %427 = vector.broadcast %426 : vector<16x1xf32> to vector<16x32xf32>
    %428 = arith.subf %418, %427 : vector<16x32xf32>
    %429 = arith.mulf %428, %428 : vector<16x32xf32>
    %cst_294 = arith.constant dense<0.000000e+00> : vector<16xf32>
    %430 = vector.multi_reduction <add>, %429, %cst_294 [1] : vector<16x32xf32> to vector<16xf32>
    %431 = vector.shape_cast %430 : vector<16xf32> to vector<16x1xf32>
    %cst_295 = arith.constant 3.200000e+01 : f32
    %432 = vector.broadcast %cst_295 : f32 to vector<16x1xf32>
    %433 = arith.divf %431, %432 : vector<16x1xf32>
    %434 = vector.broadcast %426 : vector<16x1xf32> to vector<16x32xf32>
    %435 = arith.subf %418, %434 : vector<16x32xf32>
    %cst_296 = arith.constant 9.99999974E-6 : f32
    %436 = vector.broadcast %cst_296 : f32 to vector<16x1xf32>
    %437 = arith.addf %433, %436 : vector<16x1xf32>
    %438 = math.rsqrt %437 : vector<16x1xf32>
    %439 = vector.broadcast %438 : vector<16x1xf32> to vector<16x32xf32>
    %440 = arith.mulf %435, %439 : vector<16x32xf32>
    %441 = vector.broadcast %420 : vector<1x32xf32> to vector<16x32xf32>
    %442 = arith.mulf %440, %441 : vector<16x32xf32>
    %443 = vector.broadcast %422 : vector<1x32xf32> to vector<16x32xf32>
    %444 = arith.addf %442, %443 : vector<16x32xf32>
    %c1_297 = arith.constant 1 : index
    %c0_298 = arith.constant 0 : index
    %c0_299 = arith.constant 0 : index
    %445 = vector.load %arg14[%c1_297, %c0_298, %c0_299] : memref<2x32x64xf32, #tpu.memory_space<vmem>>, vector<1x32x64xf32>
    %446 = vector.shape_cast %445 : vector<1x32x64xf32> to vector<32x64xf32>
    %cst_300 = arith.constant dense<0.000000e+00> : vector<16x64xf32>
    %447 = tpu.matmul %444, %446, %cst_300 {dimension_numbers = #tpu.dot_dimension_numbers<[1], [0], [0], [1], [0, 0, 1, 1], [], []>} : vector<16x32xf32>, vector<32x64xf32>, vector<16x64xf32> -> vector<16x64xf32>
    %c1_301 = arith.constant 1 : index
    %c0_302 = arith.constant 0 : index
    %c0_303 = arith.constant 0 : index
    %448 = vector.load %arg15[%c1_301, %c0_302, %c0_303] : memref<2x1x64xf32, #tpu.memory_space<vmem>>, vector<1x1x64xf32>
    %449 = vector.shape_cast %448 : vector<1x1x64xf32> to vector<1x64xf32>
    %450 = vector.broadcast %449 : vector<1x64xf32> to vector<16x64xf32>
    %451 = arith.addf %447, %450 : vector<16x64xf32>
    %452 = arith.mulf %451, %451 : vector<16x64xf32>
    %453 = arith.mulf %451, %452 : vector<16x64xf32>
    %cst_304 = arith.constant 4.471500e-02 : f32
    %454 = vector.broadcast %cst_304 : f32 to vector<16x64xf32>
    %455 = arith.mulf %454, %453 : vector<16x64xf32>
    %456 = arith.addf %451, %455 : vector<16x64xf32>
    %cst_305 = arith.constant 0.797884583 : f32
    %457 = vector.broadcast %cst_305 : f32 to vector<16x64xf32>
    %458 = arith.mulf %457, %456 : vector<16x64xf32>
    %459 = math.tanh %458 : vector<16x64xf32>
    %cst_306 = arith.constant 1.000000e+00 : f32
    %460 = vector.broadcast %cst_306 : f32 to vector<16x64xf32>
    %461 = arith.addf %460, %459 : vector<16x64xf32>
    %cst_307 = arith.constant 5.000000e-01 : f32
    %462 = vector.broadcast %cst_307 : f32 to vector<16x64xf32>
    %463 = arith.mulf %462, %461 : vector<16x64xf32>
    %464 = arith.mulf %451, %463 : vector<16x64xf32>
    %c1_308 = arith.constant 1 : index
    %c0_309 = arith.constant 0 : index
    %c0_310 = arith.constant 0 : index
    %465 = vector.load %arg16[%c1_308, %c0_309, %c0_310] : memref<2x64x32xf32, #tpu.memory_space<vmem>>, vector<1x64x32xf32>
    %466 = vector.shape_cast %465 : vector<1x64x32xf32> to vector<64x32xf32>
    %cst_311 = arith.constant dense<0.000000e+00> : vector<16x32xf32>
    %467 = tpu.matmul %464, %466, %cst_311 {dimension_numbers = #tpu.dot_dimension_numbers<[1], [0], [0], [1], [0, 0, 1, 1], [], []>} : vector<16x64xf32>, vector<64x32xf32>, vector<16x32xf32> -> vector<16x32xf32>
    %c1_312 = arith.constant 1 : index
    %c0_313 = arith.constant 0 : index
    %c0_314 = arith.constant 0 : index
    %468 = vector.load %arg17[%c1_312, %c0_313, %c0_314] : memref<2x1x32xf32, #tpu.memory_space<vmem>>, vector<1x1x32xf32>
    %469 = vector.shape_cast %468 : vector<1x1x32xf32> to vector<1x32xf32>
    %470 = vector.broadcast %469 : vector<1x32xf32> to vector<16x32xf32>
    %471 = arith.addf %467, %470 : vector<16x32xf32>
    %472 = arith.addf %444, %471 : vector<16x32xf32>
    %c1_315 = arith.constant 1 : index
    %c0_316 = arith.constant 0 : index
    %c0_317 = arith.constant 0 : index
    %473 = vector.load %arg18[%c1_315, %c0_316, %c0_317] : memref<2x1x32xf32, #tpu.memory_space<vmem>>, vector<1x1x32xf32>
    %474 = vector.shape_cast %473 : vector<1x1x32xf32> to vector<1x32xf32>
    %c1_318 = arith.constant 1 : index
    %c0_319 = arith.constant 0 : index
    %c0_320 = arith.constant 0 : index
    %475 = vector.load %arg19[%c1_318, %c0_319, %c0_320] : memref<2x1x32xf32, #tpu.memory_space<vmem>>, vector<1x1x32xf32>
    %476 = vector.shape_cast %475 : vector<1x1x32xf32> to vector<1x32xf32>
    %cst_321 = arith.constant dense<0.000000e+00> : vector<16xf32>
    %477 = vector.multi_reduction <add>, %472, %cst_321 [1] : vector<16x32xf32> to vector<16xf32>
    %478 = vector.shape_cast %477 : vector<16xf32> to vector<16x1xf32>
    %cst_322 = arith.constant 3.200000e+01 : f32
    %479 = vector.broadcast %cst_322 : f32 to vector<16x1xf32>
    %480 = arith.divf %478, %479 : vector<16x1xf32>
    %481 = vector.broadcast %480 : vector<16x1xf32> to vector<16x32xf32>
    %482 = arith.subf %472, %481 : vector<16x32xf32>
    %483 = arith.mulf %482, %482 : vector<16x32xf32>
    %cst_323 = arith.constant dense<0.000000e+00> : vector<16xf32>
    %484 = vector.multi_reduction <add>, %483, %cst_323 [1] : vector<16x32xf32> to vector<16xf32>
    %485 = vector.shape_cast %484 : vector<16xf32> to vector<16x1xf32>
    %cst_324 = arith.constant 3.200000e+01 : f32
    %486 = vector.broadcast %cst_324 : f32 to vector<16x1xf32>
    %487 = arith.divf %485, %486 : vector<16x1xf32>
    %488 = vector.broadcast %480 : vector<16x1xf32> to vector<16x32xf32>
    %489 = arith.subf %472, %488 : vector<16x32xf32>
    %cst_325 = arith.constant 9.99999974E-6 : f32
    %490 = vector.broadcast %cst_325 : f32 to vector<16x1xf32>
    %491 = arith.addf %487, %490 : vector<16x1xf32>
    %492 = math.rsqrt %491 : vector<16x1xf32>
    %493 = vector.broadcast %492 : vector<16x1xf32> to vector<16x32xf32>
    %494 = arith.mulf %489, %493 : vector<16x32xf32>
    %495 = vector.broadcast %474 : vector<1x32xf32> to vector<16x32xf32>
    %496 = arith.mulf %494, %495 : vector<16x32xf32>
    %497 = vector.broadcast %476 : vector<1x32xf32> to vector<16x32xf32>
    %498 = arith.addf %496, %497 : vector<16x32xf32>
    %499 = vector.extract_strided_slice %498 {offsets = [0, 0], sizes = [2, 32], strides = [1, 1]} : vector<16x32xf32> to vector<2x32xf32>
    %c0_326 = arith.constant 0 : index
    %c0_327 = arith.constant 0 : index
    %500 = vector.load %arg20[%c0_326, %c0_327] : memref<2x32xf32, #tpu.memory_space<vmem>>, vector<2x32xf32>
    tpu.vector_store %arg20[%c0_326, %c0_327], %499 {strides = array<i32>} : memref<2x32xf32, #tpu.memory_space<vmem>>, vector<2x32xf32>,
    return
  }
}

</mosaic_0001>

<bundles_post_ra>
// kernel: transformer_embedding_forward.1
= control target key start
LH: loop header
LB: loop body
LE: loop exit
PB: predicated region body
PF: predicated region fallthrough
CT: control target
= control target key end

     0   :  { %s7668_s0 = inlined_call_operand.vmem [shape: s32[16,1], index: 0, kind: input, shape index: {}]   ;;  %s7669_s1 = inlined_call_operand.vmem [shape: f32[100,32], index: 1, kind: input, shape index: {}]   ;;  %s7670_s2 = inlined_call_operand.vmem [shape: f32[16,32], index: 2, kind: input, shape index: {}]   ;;  %s7671_s3 = inlined_call_operand.vmem [shape: f32[16,16], index: 3, kind: input, shape index: {}]   ;;  %s7672_s4 = inlined_call_operand.vmem [shape: f32[8,32,8], index: 4, kind: input, shape index: {}]   ;;  %s7673_s5 = inlined_call_operand.vmem [shape: f32[8,32,8], index: 5, kind: input, shape index: {}]   ;;  %s7674_s6 = inlined_call_operand.vmem [shape: f32[8,32,8], index: 6, kind: input, shape index: {}]   ;;  %s7675_s7 = inlined_call_operand.vmem [shape: f32[8,1,8], index: 7, kind: input, shape index: {}]   ;;  %s7676_s8 = inlined_call_operand.vmem [shape: f32[8,1,8], index: 8, kind: input, shape index: {}]   ;;  %s7677_s9 = inlined_call_operand.vmem [shape: f32[8,1,8], index: 9, kind: input, shape index: {}]   ;;  %s7678_s10 = inlined_call_operand.vmem [shape: f32[8,8,32], index: 10, kind: input, shape index: {}]   ;;  %s7679_s11 = inlined_call_operand.vmem [shape: f32[2,1,32], index: 11, kind: input, shape index: {}]   ;;  %s7680_s12 = inlined_call_operand.vmem [shape: f32[2,1,32], index: 12, kind: input, shape index: {}]   ;;  %s7681_s13 = inlined_call_operand.vmem [shape: f32[2,1,32], index: 13, kind: input, shape index: {}]   ;;  %s7682_s14 = inlined_call_operand.vmem [shape: f32[2,32,64], index: 14, kind: input, shape index: {}]   ;;  %s7683_s15 = inlined_call_operand.vmem [shape: f32[2,1,64], index: 15, kind: input, shape index: {}]   ;;  %s7684_s16 = inlined_call_operand.vmem [shape: f32[2,64,32], index: 16, kind: input, shape index: {}]   ;;  %s7685_s17 = inlined_call_operand.vmem [shape: f32[2,1,32], index: 17, kind: input, shape index: {}]   ;;  %s7686_s18 = inlined_call_operand.vmem [shape: f32[2,1,32], index: 18, kind: input, shape index: {}]   ;;  %s7687_s19 = inlined_call_operand.vmem [shape: f32[2,1,32], index: 19, kind: input, shape index: {}]   ;;  %s7688_s20 = inlined_call_operand.hbm [shape: f32[2,32], index: 20, kind: output, shape index: {}]  }
   0x1   :  { %7695 = sst [smem:[#allocation5_spill]] %s7668_s0 }
   0x2   :  { %7696 = sst [smem:[#allocation6_spill]] %s7669_s1 }
   0x3   :  { %7697 = sst [smem:[#allocation7_spill]] %s7670_s2 }
   0x4   :  { %7698 = sst [smem:[#allocation8_spill]] %s7671_s3 }
   0x5   :  { %7699 = sst [smem:[#allocation9_spill]] %s7672_s4 }
   0x6   :  { %7700 = sst [smem:[#allocation10_spill]] %s7683_s15 }
   0x7   :  { %s7701_s23 = sld [smem:[#allocation5_spill]]  ;;  %s7702_s15 = sld [smem:[#allocation6_spill]]  ;;  %v6703_v2 = vmov 0  }
   0x8   :  { %6590 = vset.pattern.permute.xlu0 %v6703_v2 }
   0xd   :  { %v66_v0 = vld [vmem:[%s7701_s23] sm:$0xff]  ;;  %v83_v3 = vld [vmem:[%s7702_s15 + $0x8] sm:$0xff]  ;;  %v84_v4 = vld [vmem:[%s7702_s15 + $0x10] sm:$0xff] }
   0xe   :  { %v82_v1 = vld [vmem:[%s7702_s15] sm:$0xff]  ;;  %v85_v5 = vld [vmem:[%s7702_s15 + $0x18] sm:$0xff]  ;;  %71 = vperm.xlu0 %6590, %v66_v0   ;;  %v67_v8 = vld [vmem:[%s7701_s23 + $0x8] sm:$0xff] }
   0xf   :  { %v6231_v6 = vpack.c.bf16 %v83_v3, %v82_v1  ;;  %v6235_v7 = vpack.c.bf16 %v85_v5, %v84_v4  ;;  %v86_v9 = vld [vmem:[%s7702_s15 + $0x20] sm:$0xff]  ;;  %v87_v10 = vld [vmem:[%s7702_s15 + $0x28] sm:$0xff] }
  0x11   :  { %6232 = vmatprep.subr.bf16.mxu0 %v6231_v6 }
  0x12   :  { %25 = vsyncpa [#allocation3], 0  ;;  %6234 = vmatpush3.bf16.msra.mxu0 %v6231_v6  ;;  %74 = vperm.xlu0 %6590, %v67_v8   ;;  %v6239_v11 = vpack.c.bf16 %v87_v10, %v86_v9  ;;  %v88_v12 = vld [vmem:[%s7702_s15 + $0x30] sm:$0xff]  ;;  %v89_v13 = vld [vmem:[%s7702_s15 + $0x38] sm:$0xff]  ;;  %vm104_vm0 = vcmask 1043456   ;;  %s7703_s26 = sld [smem:[#allocation9_spill]]  ;;  %v68_v28 = vlaneseq }
  0x13   :  { %6236 = vmatprep.subr.bf16.mxu0 %v6235_v7  ;;  %v278_v14 = vld [vmem:[%s7673_s5] sm:$0xff]  ;;  %v279_v15 = vld [vmem:[%s7673_s5 + $0x8] sm:$0xff]  ;;  %v6243_v17 = vpack.c.bf16 %v89_v13, %v88_v12  ;;  %v92_v21 = vld [vmem:[%s7702_s15 + $0x50] sm:$0xff]  ;;  %vm97_vm1 = vcmask 818176   ;;  %v6704_v31 = vmov 0.0   ;;  %s7704_s28 = sld [smem:[#allocation7_spill]] }
  0x14   :  { %v6263_v16 = vpack.c.bf16 %v279_v15, %v278_v14  ;;  %v90_v18 = vld [vmem:[%s7702_s15 + $0x40] sm:$0xff]  ;;  %v91_v19 = vld [vmem:[%s7702_s15 + $0x48] sm:$0xff]  ;;  %v93_v22 = vld [vmem:[%s7702_s15 + $0x58] sm:$0xff]  ;;  %v69_v29 = vand.u32 127, %v68_v28  ;;  %vm196_vm4 = vcmask 261120   ;;  %vm450_vm5 = vcmask 64512  }
  0x15   :  { %v6247_v20 = vpack.c.bf16 %v91_v19, %v90_v18  ;;  %v6251_v23 = vpack.c.bf16 %v93_v22, %v92_v21  ;;  %v94_v24 = vld [vmem:[%s7702_s15 + $0x60] sm:$0xf]  ;;  %v280_v35 = vld [vmem:[%s7673_s5 + $0x10] sm:$0xff]  ;;  %v281_v36 = vld [vmem:[%s7673_s5 + $0x18] sm:$0xff]  ;;  %s7707_s22 = sld [smem:[#allocation8_spill]]  ;;  %vm542_vm7 = vcmask 130048  }
  0x16   :  { %6238 = vmatpush3.bf16.msra.mxu0 %v6235_v7  ;;  %6264 = vmatprep.subr.bf16.mxu1 %v6263_v16  ;;  %v6267_v37 = vpack.c.bf16 %v281_v36, %v280_v35  ;;  %v364_v41 = vld [vmem:[%s7674_s6] sm:$0xff]  ;;  %v365_v42 = vld [vmem:[%s7674_s6 + $0x8] sm:$0xff]  ;;  %v366_v47 = vld [vmem:[%s7674_s6 + $0x10] sm:$0xff]  ;;  %s7708_s21 = sld [smem:[#allocation10_spill]]  ;;  %vm2536_vm8 = vcmask 523264   ;;  %s6705_s2 = smov [#allocation2]  }
  0x17   :  { %6240 = vmatprep.subr.bf16.mxu0 %v6239_v11  ;;  %6266 = vmatpush3.bf16.msra.mxu1 %v6263_v16  ;;  %v6271_v43 = vpack.c.bf16 %v365_v42, %v364_v41  ;;  %v367_v48 = vld [vmem:[%s7674_s6 + $0x18] sm:$0xff]  ;;  %v5161_v53 = vld [vmem:[%s7676_s8] ss:$0 sm:$0xff]  ;;  %v5182_v61 = vld [vmem:[%s7673_s5 + $0x28] sm:$0xff]  ;;  %s5145_s25 = sshll.u32 %s6705_s2, 4  ;;  %vm5137_vm9 = vcmask 254976   ;;  %s5146_s25 = int_to_ptr.vmem [resolvable:$true] %s5145_s25 }
  0x18   :  { %v185_v25 = vld [vmem:[%s7703_s26] sm:$0xff]  ;;  %v186_v26 = vld [vmem:[%s7703_s26 + $0x8] sm:$0xff]  ;;  %v187_v38 = vld [vmem:[%s7703_s26 + $0x10] sm:$0xff]  ;;  %6268 = vmatprep.subr.bf16.mxu1 %v6267_v37  ;;  %v6275_v52 = vpack.c.bf16 %v367_v48, %v366_v47  ;;  %p6684_p1 = scmp.lt.s32.totalorder %s5146_s25, %s5146_s25 }
  0x19   :  { %v6255_v27 = vpack.c.bf16 %v186_v26, %v185_v25  ;;  %v188_v39 = vld [vmem:[%s7703_s26 + $0x18] sm:$0xff]  ;;  %v95_v44 = vld [vmem:[%s7704_s28] sm:$0xff]  ;;  %v96_v45 = vld [vmem:[%s7704_s28 + $0x8] sm:$0xff] }
  0x1a   :  { %6242 = vmatpush3.bf16.msra.mxu0 %v6239_v11  ;;  %v6259_v40 = vpack.c.bf16 %v188_v39, %v187_v38  ;;  %v5158_v54 = vld [vmem:[%s7675_s7] ss:$0 sm:$0xff]  ;;  %vm6928_vm6 = vmpackc.low %vm450_vm5, %vm450_vm5  ;;  %v5183_v7 = vld [vmem:[%s7673_s5 + $0x30] sm:$0xff] }
  0x1b   :  { %6244 = vmatprep.subr.bf16.mxu0 %v6243_v17  ;;  %6270 = vmatpush3.bf16.msra.mxu1 %v6267_v37  ;;  %v5181_v60 = vld [vmem:[%s7673_s5 + $0x20] sm:$0xff]  ;;  %v5184_v8 = vld [vmem:[%s7673_s5 + $0x38] sm:$0xff]  ;;  %v6959_v18 = vld [vmem:[%s7707_s22 + $0x8] sm:$0xff] }
  0x1c   :  { %6272 = vmatprep.subr.bf16.mxu1 %v6271_v43  ;;  %v6297_v2 = vpack.c.bf16 %v5182_v61, %v5181_v60  ;;  %v5164_v3 = vld [vmem:[%s7677_s9] ss:$0 sm:$0xff]  ;;  %v6301_v12 = vpack.c.bf16 %v5184_v8, %v5183_v7  ;;  %v5186_v21 = vld [vmem:[%s7676_s8 + $0x1] ss:$0 sm:$0xff]  ;;  %v5176_v47 = vld [vmem:[%s7703_s26 + $0x38] sm:$0xff] }
  0x1d   :  { %v6954_v15 = vld [vmem:[%s7707_s22] sm:$0xff] }
  0x1e   :  { %6246 = vmatpush3.bf16.msra.mxu0 %v6243_v17  ;;  %v5173_v39 = vld [vmem:[%s7703_s26 + $0x20] sm:$0xff] }
  0x1f   :  { %6248 = vmatprep.subr.bf16.mxu0 %v6247_v20  ;;  %v5178_v61 = vld [vmem:[%s7675_s7 + $0x1] ss:$0 sm:$0xff] }
  0x22   :  { %6250 = vmatpush3.bf16.msra.mxu0 %v6247_v20 }
  0x23   :  { %6252 = vmatprep.subr.bf16.mxu0 %v6251_v23 }
  0x26   :  { %6254 = vmatpush3.bf16.msra.mxu0 %v6251_v23 }
  0x27   :  { %5750 = vmatprep.subr.msk.mxu0 %vm104_vm0, %v94_v24 }
  0x2a   :  { %5751 = vmatpush3.msk.msra.mxu0 %vm104_vm0, %v94_v24 }
  0x2b   :  { %6256 = vmatprep.subr.bf16.mxu0 %v6255_v27 }
  0x8d   :  { %v72_v30 = vpop.permute.xlu0 %71 }
  0x8e   :  { %vm76_vm2 = vcmp.eq.s32.totalorder %v69_v29, %v72_v30 }
  0x8f   :  { %v5153_v32 = vsel %vm76_vm2, 1.0, %v6704_v31 }
  0x90   :  { %5752 = vmatprep.mubr.msk.f32.mxu0 %vm97_vm1, %v5153_v32 }
  0x91   :  { %v75_v33 = vpop.permute.xlu0 %74 }
  0x92   :  { %vm77_vm3 = vcmp.eq.s32.totalorder %v69_v29, %v75_v33 }
  0x93   :  { %v5154_v34 = vsel %vm77_vm3, 1.0, %v6704_v31 }
  0x94   :  { %5753 = vmatmul.mubr.msk.f32.vlgmr.msra.gmra.mrb[0].mxu0 %vm97_vm1, %v5154_v34 }
  0x95   :  { %6258 = vmatpush3.bf16.msra.mxu0 %v6255_v27 }
  0x96   :  { %6260 = vmatprep.subr.bf16.mxu0 %v6259_v40 }
  0x99   :  { %6262 = vmatpush3.bf16.msra.mxu0 %v6259_v40  ;;  %v5174_v40 = vld [vmem:[%s7703_s26 + $0x28] sm:$0xff] }
  0x9a   :  { %v6289_v41 = vpack.c.bf16 %v5174_v40, %v5173_v39 }
 0x167   :  { %v5754_v46 = vpop.f32.mrb[0].mxu0 }
 0x168   :  { %v174_v49 = vpop.f32.mrb[1].mxu0  ;;  %v6900_v51 = vadd.f32 %v5754_v46, %v96_v45  ;;  %v5175_v46 = vld [vmem:[%s7703_s26 + $0x30] sm:$0xff] }
 0x169   :  { %v6898_v50 = vadd.f32 %v174_v49, %v95_v44 }
 0x16b   :  { %5763 = vmatprep.mubr.msk.f32.mxu0 %vm196_vm4, %v6898_v50  ;;  %5774 = vmatprep.mubr.msk.f32.mxu1 %vm196_vm4, %v6898_v50 }
 0x16c   :  { %5764 = vmatmul.mubr.msk.f32.vlgmr.msra.gmra.mrb[2].mxu0 %vm196_vm4, %v6900_v51  ;;  %5775 = vmatmul.mubr.msk.f32.vlgmr.msra.gmra.mrb[0].mxu1 %vm196_vm4, %v6900_v51 }
 0x16d   :  { %6274 = vmatpush3.bf16.msra.mxu1 %v6271_v43  ;;  %5785 = vmatprep.mubr.msk.f32.mxu1 %vm196_vm4, %v6898_v50 }
 0x16e   :  { %6276 = vmatprep.subr.bf16.mxu1 %v6275_v52 }
 0x171   :  { %6278 = vmatpush3.bf16.msra.mxu1 %v6275_v52  ;;  %v6293_v52 = vpack.c.bf16 %v5176_v47, %v5175_v46  ;;  %v5227_v46 = vld [vmem:[%s7674_s6 + $0x58] sm:$0xff] }
 0x174   :  { %5786 = vmatmul.mubr.msk.f32.vlgmr.msra.gmra.mrb[2].mxu1 %vm196_vm4, %v6900_v51 }
 0x23f   :  { %v5765_v55 = vpop.f32.mrb[2].mxu0  ;;  %v5776_v56 = vpop.f32.mrb[0].mxu1 }
 0x240   :  { %v361_v57 = vadd.f32 %v5776_v56, %v5161_v53  ;;  %v269_v58 = vpop.f32.mrb[3].mxu0  ;;  %v355_v59 = vpop.f32.mrb[1].mxu1  ;;  %v275_v10 = vadd.f32 %v5765_v55, %v5158_v54  ;;  %v5191_v56 = vld [vmem:[%s7674_s6 + $0x30] sm:$0xff] }
 0x241   :  { %v270_v62 = vadd.f32 %v5158_v54, %v269_v58  ;;  %v356_v63 = vadd.f32 %v5161_v53, %v355_v59  ;;  %v5189_v53 = vld [vmem:[%s7674_s6 + $0x20] sm:$0xff]  ;;  %v5190_v54 = vld [vmem:[%s7674_s6 + $0x28] sm:$0xff] }
 0x242   :  { %v6305_v55 = vpack.c.bf16 %v5190_v54, %v5189_v53 }
 0x243   :  { %v6279_v1 = vpack.c.bf16 %v361_v57, %v356_v63  ;;  %5792 = vmatprep.mubr.msk.f32.mxu1 %vm450_vm5, %v270_v62  ;;  %v5192_v57 = vld [vmem:[%s7674_s6 + $0x38] sm:$0xff] }
 0x244   :  { %v6309_v58 = vpack.c.bf16 %v5192_v57, %v5191_v56  ;;  %v5213_v56 = vld [vmem:[%s7675_s7 + $0x2] ss:$0 sm:$0xff]  ;;  %v5218_v57 = vld [vmem:[%s7673_s5 + $0x50] sm:$0xff] }
 0x245   :  { %6281 = vmatprep.subr.msk.bf16.mxu1 %vm6928_vm6, %v6279_v1 }
 0x246   :  { %6284 = vmatpush3.bf16.xpose.msk.msra.mxu1 %vm6928_vm6, %v6279_v1 }
 0x247   :  { %v5787_v4 = vpop.f32.mrb[2].mxu1  ;;  %6298 = vmatprep.subr.bf16.mxu1 %v6297_v2 }
 0x248   :  { %v447_v5 = vadd.f32 %v5787_v4, %v5164_v3  ;;  %v441_v6 = vpop.f32.mrb[3].mxu1 }
 0x249   :  { %v442_v9 = vadd.f32 %v5164_v3, %v441_v6  ;;  %v5194_v3 = vld [vmem:[%s7677_s9 + $0x1] ss:$0 sm:$0xff] }
 0x24b   :  { %v6285_v11 = vpack.c.bf16 %v447_v5, %v442_v9 }
 0x24d   :  { %6286 = vmatprep.subr.bf16.mxu0 %v6285_v11  ;;  %5793 = vmatmul.mubr.msk.f32.vlgmr.msra.gmra.mrb[4].mxu1 %vm450_vm5, %v275_v10 }
 0x24e   :  { %6288 = vmatpush3.bf16.msra.mxu0 %v6285_v11  ;;  %6300 = vmatpush3.bf16.msra.mxu1 %v6297_v2 }
 0x24f   :  { %5821 = vmatprep.mubr.msk.f32.mxu1 %vm196_vm4, %v6898_v50  ;;  %6302 = vmatprep.subr.bf16.mxu1 %v6301_v12 }
 0x250   :  { %6290 = vmatprep.subr.bf16.mxu0 %v6289_v41 }
 0x252   :  { %6304 = vmatpush3.bf16.msra.mxu1 %v6301_v12 }
 0x255   :  { %5822 = vmatmul.mubr.msk.f32.vlgmr.msra.gmra.mrb[6].mxu1 %vm196_vm4, %v6900_v51 }
 0x320   :  { %v5794_v13 = vpop.f32.mrb[4].mxu1 }
 0x321   :  { %v529_v14 = vpop.f32.mrb[5].mxu1  ;;  %v539_v16 = vmul.f32 0.35355338, %v5794_v13 }
 0x322   :  { %v538_v17 = vmul.f32 0.35355338, %v529_v14 }
 0x323   :  { %v541_v22 = vadd.f32 %v539_v16, %v6959_v18 }
 0x324   :  { %v540_v19 = vadd.f32 %v538_v17, %v6954_v15 }
 0x325   :  { %v546_v27 = vsel %vm542_vm7, %v541_v22, -inf }
 0x326   :  { %v543_v20 = vsel %vm542_vm7, %v540_v19, -inf }
 0x327   :  { %544 = vmax.xlane.f32.xlu1 %v543_v20 }
 0x328   :  { %v5823_v23 = vpop.f32.mrb[6].mxu1 }
 0x329   :  { %v820_v24 = vadd.f32 %v5823_v23, %v5186_v21  ;;  %v814_v25 = vpop.f32.mrb[7].mxu1 }
 0x32a   :  { %v815_v26 = vadd.f32 %v5186_v21, %v814_v25 }
 0x32b   :  { %547 = vmax.xlane.f32.xlu1 %v546_v27 }
 0x32c   :  { %v6313_v28 = vpack.c.bf16 %v820_v24, %v815_v26 }
 0x32e   :  { %6315 = vmatprep.subr.msk.bf16.mxu1 %vm6928_vm6, %v6313_v28 }
 0x32f   :  { %6318 = vmatpush3.bf16.xpose.msk.msra.mxu1 %vm6928_vm6, %v6313_v28 }
 0x3b4   :  { %v545_v29 = vpop.xlane.xlu1 %544 }
 0x3b5   :  { %v549_v30 = vsub.f32 %v540_v19, %v545_v29  ;;  %v5208_v29 = vld [vmem:[%s7703_s26 + $0x40] sm:$0xff] }
 0x3b7   :  { %v551_v31 = vmul.f32 1.442695, %v549_v30  ;;  %v5209_v30 = vld [vmem:[%s7703_s26 + $0x48] sm:$0xff] }
 0x3b8   :  { %v548_v32 = vpop.xlane.xlu1 %547 }
 0x3b9   :  { %6591 = vpow2.f32 %v551_v31  ;;  %v550_v33 = vsub.f32 %v541_v22, %v548_v32  ;;  %v6323_v31 = vpack.c.bf16 %v5209_v30, %v5208_v29  ;;  %v5203_v32 = vld [vmem:[%s7678_s10 + $0x8] sm:$0xff] }
 0x3ba   :  { %5849 = vmatprep.subr.mxu1 %v5203_v32 }
 0x3bb   :  { %v553_v34 = vmul.f32 1.442695, %v550_v33 }
 0x3bd   :  { %6593 = vpow2.f32 %v553_v34 }
 0x3c3   :  { %v6592_v35 = vpop.eup %6591 }
 0x3c4   :  { %v555_v36 = vsel %vm542_vm7, %v6592_v35, 0.0 }
 0x3c5   :  { %556 = vadd.xlane.f32.xlu0 %v555_v36 }
 0x3c7   :  { %v6594_v37 = vpop.eup %6593 }
 0x3c8   :  { %v558_v38 = vsel %vm542_vm7, %v6594_v37, 0.0 }
 0x3c9   :  { %559 = vadd.xlane.f32.xlu1 %v558_v38  ;;  %v5211_v38 = vld [vmem:[%s7703_s26 + $0x58] sm:$0xff] }
 0x452   :  { %v557_v42 = vpop.xlane.xlu0 %556 }
 0x453   :  { %6595 = vrcp.f32 %v557_v42  ;;  %v5224_v42 = vld [vmem:[%s7674_s6 + $0x40] sm:$0xff] }
 0x456   :  { %v560_v43 = vpop.xlane.xlu1 %559 }
 0x457   :  { %6597 = vrcp.f32 %v560_v43  ;;  %v5225_v43 = vld [vmem:[%s7674_s6 + $0x48] sm:$0xff] }
 0x45d   :  { %v6596_v44 = vpop.eup %6595 }
 0x45e   :  { %v563_v45 = vmul.f32 %v6596_v44, %v6592_v35  ;;  %v6339_v44 = vpack.c.bf16 %v5225_v43, %v5224_v42  ;;  %v5244_v42 = vld [vmem:[%s7703_s26 + $0x78] sm:$0xff] }
 0x460   :  { %5799 = vmatprep.mubr.msk.f32.mxu0 %vm542_vm7, %v563_v45  ;;  %v5226_v45 = vld [vmem:[%s7674_s6 + $0x50] sm:$0xff] }
 0x461   :  { %v6598_v48 = vpop.eup %6597  ;;  %v6343_v47 = vpack.c.bf16 %v5227_v46, %v5226_v45  ;;  %v5257_v46 = vld [vmem:[%s7674_s6 + $0x60] sm:$0xff] }
 0x462   :  { %v564_v49 = vmul.f32 %v6598_v48, %v6594_v37  ;;  %v5210_v37 = vld [vmem:[%s7703_s26 + $0x50] sm:$0xff]  ;;  %v646_v48 = vld [vmem:[%s7678_s10] sm:$0xff] }
 0x464   :  { %5800 = vmatmul.mubr.msk.f32.vlgmr.msra.gmra.mrb[4].mxu0 %vm542_vm7, %v564_v49  ;;  %v5216_v49 = vld [vmem:[%s7673_s5 + $0x40] sm:$0xff] }
 0x465   :  { %6292 = vmatpush3.bf16.msra.mxu0 %v6289_v41  ;;  %5810 = vmatprep.mubr.msk.f32.mxu0 %vm196_vm4, %v6898_v50  ;;  %v6327_v41 = vpack.c.bf16 %v5211_v38, %v5210_v37 }
 0x466   :  { %6294 = vmatprep.subr.bf16.mxu0 %v6293_v52 }
 0x469   :  { %6296 = vmatpush3.bf16.msra.mxu0 %v6293_v52  ;;  %v5217_v52 = vld [vmem:[%s7673_s5 + $0x48] sm:$0xff] }
 0x46a   :  { %6306 = vmatprep.subr.bf16.mxu0 %v6305_v55 }
 0x46c   :  { %5811 = vmatmul.mubr.msk.f32.vlgmr.msra.gmra.mrb[6].mxu0 %vm196_vm4, %v6900_v51 }
 0x46d   :  { %6308 = vmatpush3.bf16.msra.mxu0 %v6305_v55  ;;  %5832 = vmatprep.mubr.msk.f32.mxu0 %vm196_vm4, %v6898_v50  ;;  %v6331_v55 = vpack.c.bf16 %v5217_v52, %v5216_v49  ;;  %v5259_v49 = vld [vmem:[%s7674_s6 + $0x70] sm:$0xff]  ;;  %v5260_v52 = vld [vmem:[%s7674_s6 + $0x78] sm:$0xff] }
 0x46e   :  { %6310 = vmatprep.subr.bf16.mxu0 %v6309_v58 }
 0x471   :  { %6312 = vmatpush3.bf16.msra.mxu0 %v6309_v58  ;;  %v5219_v58 = vld [vmem:[%s7673_s5 + $0x58] sm:$0xff] }
 0x474   :  { %5833 = vmatmul.mubr.msk.f32.vlgmr.msra.gmra.mrb[8].mxu0 %vm196_vm4, %v6900_v51 }
 0x537   :  { %v7008_v59 = vpop.f32.mrb[4].mxu0 }
 0x538   :  { %v7010_v60 = vpop.f32.mrb[5].mxu0 }
 0x53f   :  { %v5812_v62 = vpop.f32.mrb[6].mxu0 }
 0x540   :  { %v726_v63 = vpop.f32.mrb[7].mxu0  ;;  %v732_v2 = vadd.f32 %v5812_v62, %v5178_v61 }
 0x541   :  { %v727_v1 = vadd.f32 %v5178_v61, %v726_v63 }
 0x543   :  { %5839 = vmatprep.mubr.msk.f32.mxu1 %vm450_vm5, %v727_v1  ;;  %v6335_v1 = vpack.c.bf16 %v5219_v58, %v5218_v57  ;;  %v5251_v57 = vld [vmem:[%s7673_s5 + $0x70] sm:$0xff]  ;;  %v5252_v58 = vld [vmem:[%s7673_s5 + $0x78] sm:$0xff] }
 0x544   :  { %5840 = vmatmul.mubr.msk.f32.vlgmr.msra.gmra.mrb[8].mxu1 %vm450_vm5, %v732_v2 }
 0x545   :  { %5850 = vmatpush3.msra.mxu1 %v5203_v32 }
 0x546   :  { %5854 = vmatprep.subr.mxu1 %v646_v48 }
 0x547   :  { %v5834_v4 = vpop.f32.mrb[8].mxu0 }
 0x548   :  { %v908_v5 = vadd.f32 %v5834_v4, %v5194_v3  ;;  %v902_v6 = vpop.f32.mrb[9].mxu0 }
 0x549   :  { %v903_v7 = vadd.f32 %v5194_v3, %v902_v6 }
 0x54b   :  { %v6319_v8 = vpack.c.bf16 %v908_v5, %v903_v7 }
 0x54d   :  { %6320 = vmatprep.subr.bf16.mxu0 %v6319_v8 }
 0x54e   :  { %6322 = vmatpush3.bf16.msra.mxu0 %v6319_v8 }
 0x54f   :  { %6324 = vmatprep.subr.bf16.mxu0 %v6323_v31 }
 0x617   :  { %v5841_v9 = vpop.f32.mrb[8].mxu1 }
 0x618   :  { %v989_v10 = vpop.f32.mrb[9].mxu1  ;;  %v999_v11 = vmul.f32 0.35355338, %v5841_v9 }
 0x619   :  { %v998_v12 = vmul.f32 0.35355338, %v989_v10 }
 0x61a   :  { %v1001_v16 = vadd.f32 %v999_v11, %v6959_v18 }
 0x61b   :  { %v1000_v13 = vadd.f32 %v998_v12, %v6954_v15 }
 0x61c   :  { %v1005_v17 = vsel %vm542_vm7, %v1001_v16, -inf }
 0x61d   :  { %v1002_v14 = vsel %vm542_vm7, %v1000_v13, -inf }
 0x61e   :  { %1003 = vmax.xlane.f32.xlu1 %v1002_v14 }
 0x622   :  { %1006 = vmax.xlane.f32.xlu1 %v1005_v17 }
 0x6ab   :  { %v1004_v19 = vpop.xlane.xlu1 %1003 }
 0x6ac   :  { %v1008_v20 = vsub.f32 %v1000_v13, %v1004_v19 }
 0x6ae   :  { %v1010_v21 = vmul.f32 1.442695, %v1008_v20 }
 0x6af   :  { %v1007_v22 = vpop.xlane.xlu1 %1006 }
 0x6b0   :  { %6599 = vpow2.f32 %v1010_v21  ;;  %v1009_v23 = vsub.f32 %v1001_v16, %v1007_v22 }
 0x6b2   :  { %v1012_v24 = vmul.f32 1.442695, %v1009_v23 }
 0x6b4   :  { %6601 = vpow2.f32 %v1012_v24 }
 0x6ba   :  { %v6600_v25 = vpop.eup %6599 }
 0x6bb   :  { %v1014_v26 = vsel %vm542_vm7, %v6600_v25, 0.0 }
 0x6bc   :  { %1015 = vadd.xlane.f32.xlu1 %v1014_v26 }
 0x6be   :  { %v6602_v27 = vpop.eup %6601 }
 0x6bf   :  { %v1017_v28 = vsel %vm542_vm7, %v6602_v27, 0.0 }
 0x6c0   :  { %1018 = vadd.xlane.f32.xlu1 %v1017_v28 }
 0x749   :  { %v1016_v33 = vpop.xlane.xlu1 %1015 }
 0x74a   :  { %6603 = vrcp.f32 %v1016_v33  ;;  %v5241_v33 = vld [vmem:[%s7703_s26 + $0x60] sm:$0xff] }
 0x74d   :  { %v1019_v34 = vpop.xlane.xlu1 %1018 }
 0x74e   :  { %6605 = vrcp.f32 %v1019_v34  ;;  %v5242_v34 = vld [vmem:[%s7703_s26 + $0x68] sm:$0xff] }
 0x754   :  { %v6604_v35 = vpop.eup %6603 }
 0x755   :  { %v1022_v36 = vmul.f32 %v6604_v35, %v6600_v25  ;;  %v6357_v35 = vpack.c.bf16 %v5242_v34, %v5241_v33  ;;  %v5271_v34 = vld [vmem:[%s7678_s10 + $0x18] sm:$0xff] }
 0x757   :  { %5846 = vmatprep.mubr.msk.f32.mxu0 %vm542_vm7, %v1022_v36  ;;  %v5238_v36 = vld [vmem:[%s7678_s10 + $0x10] sm:$0xff] }
 0x758   :  { %v6606_v39 = vpop.eup %6605 }
 0x759   :  { %v1023_v40 = vmul.f32 %v6606_v39, %v6602_v27 }
 0x75b   :  { %5847 = vmatmul.mubr.msk.f32.vlgmr.msra.gmra.mrb[10].mxu0 %vm542_vm7, %v1023_v40 }
 0x75c   :  { %6326 = vmatpush3.bf16.msra.mxu0 %v6323_v31  ;;  %5867 = vmatprep.mubr.msk.f32.mxu0 %vm196_vm4, %v6898_v50 }
 0x75d   :  { %6328 = vmatprep.subr.bf16.mxu0 %v6327_v41 }
 0x760   :  { %6330 = vmatpush3.bf16.msra.mxu0 %v6327_v41  ;;  %v5243_v41 = vld [vmem:[%s7703_s26 + $0x70] sm:$0xff] }
 0x761   :  { %6340 = vmatprep.subr.bf16.mxu0 %v6339_v44  ;;  %v6361_v45 = vpack.c.bf16 %v5244_v42, %v5243_v41 }
 0x763   :  { %5868 = vmatmul.mubr.msk.f32.vlgmr.msra.gmra.mrb[12].mxu0 %vm196_vm4, %v6900_v51 }
 0x764   :  { %6342 = vmatpush3.bf16.msra.mxu0 %v6339_v44  ;;  %5889 = vmatprep.mubr.msk.f32.mxu0 %vm196_vm4, %v6898_v50 }
 0x765   :  { %6344 = vmatprep.subr.bf16.mxu0 %v6343_v47 }
 0x768   :  { %6346 = vmatpush3.bf16.msra.mxu0 %v6343_v47  ;;  %v5258_v47 = vld [vmem:[%s7674_s6 + $0x68] sm:$0xff] }
 0x76b   :  { %5890 = vmatmul.mubr.msk.f32.vlgmr.msra.gmra.mrb[14].mxu0 %vm196_vm4, %v6900_v51 }
 0x82e   :  { %v5848_v53 = vpop.f32.mrb[10].mxu0 }
 0x82f   :  { %v1096_v54 = vpop.f32.mrb[11].mxu0 }
 0x830   :  { %5851 = vmatprep.mubr.msk.f32.mxu1 %vm450_vm5, %v1096_v54  ;;  %v5249_v54 = vld [vmem:[%s7673_s5 + $0x60] sm:$0xff] }
 0x831   :  { %5852 = vmatmul.mubr.msk.f32.vlgmr.msra.gmra.mrb[10].mxu1 %vm450_vm5, %v5848_v53  ;;  %v6377_v53 = vpack.c.bf16 %v5260_v52, %v5259_v49 }
 0x832   :  { %5855 = vmatpush3.msra.mxu1 %v646_v48  ;;  %5856 = vmatprep.mubr.msk.f32.mxu1 %vm450_vm5, %v7010_v60  ;;  %v5229_v60 = vld [vmem:[%s7677_s9 + $0x2] ss:$0 sm:$0xff]  ;;  %v6373_v48 = vpack.c.bf16 %v5258_v47, %v5257_v46 }
 0x833   :  { %6332 = vmatprep.subr.bf16.mxu1 %v6331_v55 }
 0x836   :  { %v5869_v61 = vpop.f32.mrb[12].mxu0 }
 0x837   :  { %v1354_v62 = vadd.f32 %v5869_v61, %v5213_v56  ;;  %v1348_v63 = vpop.f32.mrb[13].mxu0 }
 0x838   :  { %v1349_v5 = vadd.f32 %v5213_v56, %v1348_v63  ;;  %v6369_v63 = vpack.c.bf16 %v5252_v58, %v5251_v57 }
 0x839   :  { %5857 = vmatmul.mubr.msk.f32.vlgmr.msra.gmra.mrb[10].mxu1 %vm450_vm5, %v7008_v59  ;;  %v5221_v59 = vld [vmem:[%s7676_s8 + $0x2] ss:$0 sm:$0xff] }
 0x83a   :  { %6334 = vmatpush3.bf16.msra.mxu1 %v6331_v55  ;;  %5878 = vmatprep.mubr.msk.f32.mxu1 %vm196_vm4, %v6898_v50  ;;  %v5250_v55 = vld [vmem:[%s7673_s5 + $0x68] sm:$0xff] }
 0x83b   :  { %6336 = vmatprep.subr.bf16.mxu1 %v6335_v1  ;;  %v6365_v56 = vpack.c.bf16 %v5250_v55, %v5249_v54 }
 0x83e   :  { %6338 = vmatpush3.bf16.msra.mxu1 %v6335_v1  ;;  %v5891_v2 = vpop.f32.mrb[14].mxu0  ;;  %v5246_v1 = vld [vmem:[%s7675_s7 + $0x3] ss:$0 sm:$0xff] }
 0x83f   :  { %v1530_v3 = vadd.f32 %v5891_v2, %v5229_v60  ;;  %v1524_v4 = vpop.f32.mrb[15].mxu0 }
 0x840   :  { %v1525_v6 = vadd.f32 %v5229_v60, %v1524_v4 }
 0x841   :  { %5879 = vmatmul.mubr.msk.f32.vlgmr.msra.gmra.mrb[12].mxu1 %vm196_vm4, %v6900_v51 }
 0x842   :  { %v6353_v7 = vpack.c.bf16 %v1530_v3, %v1525_v6  ;;  %5896 = vmatprep.mubr.msk.f32.mxu1 %vm450_vm5, %v1349_v5  ;;  %v5262_v5 = vld [vmem:[%s7677_s9 + $0x3] ss:$0 sm:$0xff] }
 0x844   :  { %6354 = vmatprep.subr.bf16.mxu0 %v6353_v7 }
 0x845   :  { %6356 = vmatpush3.bf16.msra.mxu0 %v6353_v7 }
 0x846   :  { %6358 = vmatprep.subr.bf16.mxu0 %v6357_v35 }
 0x914   :  { %v5880_v8 = vpop.f32.mrb[12].mxu1 }
 0x915   :  { %v1442_v9 = vadd.f32 %v5880_v8, %v5221_v59  ;;  %v1436_v10 = vpop.f32.mrb[13].mxu1 }
 0x916   :  { %v1437_v11 = vadd.f32 %v5221_v59, %v1436_v10  ;;  %v5254_v10 = vld [vmem:[%s7676_s8 + $0x3] ss:$0 sm:$0xff] }
 0x918   :  { %v6347_v12 = vpack.c.bf16 %v1442_v9, %v1437_v11 }
 0x91a   :  { %6349 = vmatprep.subr.msk.bf16.mxu1 %vm6928_vm6, %v6347_v12 }
 0x91b   :  { %6352 = vmatpush3.bf16.xpose.msk.msra.mxu1 %vm6928_vm6, %v6347_v12 }
 0x91c   :  { %5906 = vmatprep.subr.mxu1 %v5238_v36 }
 0x922   :  { %5897 = vmatmul.mubr.msk.f32.vlgmr.msra.gmra.mrb[14].mxu1 %vm450_vm5, %v1354_v62 }
 0x923   :  { %5907 = vmatpush3.msra.mxu1 %v5238_v36 }
 0x924   :  { %6366 = vmatprep.subr.bf16.mxu1 %v6365_v56 }
 0x9f5   :  { %v5898_v13 = vpop.f32.mrb[14].mxu1 }
 0x9f6   :  { %v1611_v14 = vpop.f32.mrb[15].mxu1  ;;  %v1621_v16 = vmul.f32 0.35355338, %v5898_v13 }
 0x9f7   :  { %v1620_v17 = vmul.f32 0.35355338, %v1611_v14 }
 0x9f8   :  { %v1623_v21 = vadd.f32 %v1621_v16, %v6959_v18 }
 0x9f9   :  { %v1622_v19 = vadd.f32 %v1620_v17, %v6954_v15 }
 0x9fa   :  { %v1627_v22 = vsel %vm542_vm7, %v1623_v21, -inf }
 0x9fb   :  { %v1624_v20 = vsel %vm542_vm7, %v1622_v19, -inf }
 0x9fc   :  { %1625 = vmax.xlane.f32.xlu1 %v1624_v20 }
 0xa00   :  { %1628 = vmax.xlane.f32.xlu1 %v1627_v22 }
 0xa89   :  { %v1626_v23 = vpop.xlane.xlu1 %1625 }
 0xa8a   :  { %v1630_v24 = vsub.f32 %v1622_v19, %v1626_v23 }
 0xa8c   :  { %v1632_v25 = vmul.f32 1.442695, %v1630_v24 }
 0xa8d   :  { %v1629_v26 = vpop.xlane.xlu1 %1628 }
 0xa8e   :  { %6607 = vpow2.f32 %v1632_v25  ;;  %v1631_v27 = vsub.f32 %v1623_v21, %v1629_v26 }
 0xa90   :  { %v1634_v28 = vmul.f32 1.442695, %v1631_v27 }
 0xa92   :  { %6609 = vpow2.f32 %v1634_v28 }
 0xa98   :  { %v6608_v29 = vpop.eup %6607 }
 0xa99   :  { %v1636_v30 = vsel %vm542_vm7, %v6608_v29, 0.0 }
 0xa9a   :  { %1637 = vadd.xlane.f32.xlu1 %v1636_v30 }
 0xa9c   :  { %v6610_v31 = vpop.eup %6609 }
 0xa9d   :  { %v1639_v32 = vsel %vm542_vm7, %v6610_v31, 0.0 }
 0xa9e   :  { %1640 = vadd.xlane.f32.xlu0 %v1639_v32 }
 0xb27   :  { %v1638_v37 = vpop.xlane.xlu1 %1637 }
 0xb28   :  { %6611 = vrcp.f32 %v1638_v37 }
 0xb2b   :  { %v1641_v38 = vpop.xlane.xlu0 %1640 }
 0xb2c   :  { %6613 = vrcp.f32 %v1641_v38 }
 0xb32   :  { %v6612_v39 = vpop.eup %6611 }
 0xb33   :  { %v1644_v40 = vmul.f32 %v6612_v39, %v6608_v29 }
 0xb35   :  { %5903 = vmatprep.mubr.msk.f32.mxu0 %vm542_vm7, %v1644_v40 }
 0xb36   :  { %v6614_v43 = vpop.eup %6613 }
 0xb37   :  { %v1645_v44 = vmul.f32 %v6614_v43, %v6610_v31  ;;  %v5274_v43 = vld [vmem:[%s7679_s11] ss:$0 sm:$0xff] }
 0xb39   :  { %5904 = vmatmul.mubr.msk.f32.vlgmr.msra.gmra.mrb[16].mxu0 %vm542_vm7, %v1645_v44 }
 0xb3a   :  { %6360 = vmatpush3.bf16.msra.mxu0 %v6357_v35  ;;  %5919 = vmatprep.mubr.msk.f32.mxu0 %vm196_vm4, %v6898_v50 }
 0xb3b   :  { %6362 = vmatprep.subr.bf16.mxu0 %v6361_v45 }
 0xb3e   :  { %6364 = vmatpush3.bf16.msra.mxu0 %v6361_v45 }
 0xb3f   :  { %6374 = vmatprep.subr.bf16.mxu0 %v6373_v48 }
 0xb41   :  { %5920 = vmatmul.mubr.msk.f32.vlgmr.msra.gmra.mrb[18].mxu0 %vm196_vm4, %v6900_v51 }
 0xb42   :  { %6376 = vmatpush3.bf16.msra.mxu0 %v6373_v48  ;;  %5941 = vmatprep.mubr.msk.f32.mxu0 %vm196_vm4, %v6898_v50 }
 0xb43   :  { %6378 = vmatprep.subr.bf16.mxu0 %v6377_v53 }
 0xb46   :  { %6380 = vmatpush3.bf16.msra.mxu0 %v6377_v53 }
 0xb49   :  { %5942 = vmatmul.mubr.msk.f32.vlgmr.msra.gmra.mrb[20].mxu0 %vm196_vm4, %v6900_v51 }
 0xc0c   :  { %v5905_v61 = vpop.f32.mrb[16].mxu0 }
 0xc0d   :  { %v1718_v62 = vpop.f32.mrb[17].mxu0 }
 0xc0e   :  { %5908 = vmatprep.mubr.msk.f32.mxu1 %vm450_vm5, %v1718_v62 }
 0xc0f   :  { %5909 = vmatmul.mubr.msk.f32.vlgmr.msra.gmra.mrb[10].mxu1 %vm450_vm5, %v5905_v61 }
 0xc10   :  { %6368 = vmatpush3.bf16.msra.mxu1 %v6365_v56  ;;  %5930 = vmatprep.mubr.msk.f32.mxu1 %vm196_vm4, %v6898_v50 }
 0xc11   :  { %6370 = vmatprep.subr.bf16.mxu1 %v6369_v63 }
 0xc14   :  { %v5921_v60 = vpop.f32.mrb[18].mxu0  ;;  %6372 = vmatpush3.bf16.msra.mxu1 %v6369_v63 }
 0xc15   :  { %v1897_v2 = vadd.f32 %v5921_v60, %v5246_v1  ;;  %v1891_v3 = vpop.f32.mrb[19].mxu0  ;;  %v2412_v60 = vld [vmem:[%s7682_s14 + $0x8] sm:$0xff] }
 0xc16   :  { %v1892_v4 = vadd.f32 %v5246_v1, %v1891_v3  ;;  %v2413_v3 = vld [vmem:[%s7682_s14 + $0x10] sm:$0xff] }
 0xc17   :  { %5931 = vmatmul.mubr.msk.f32.vlgmr.msra.gmra.mrb[16].mxu1 %vm196_vm4, %v6900_v51 }
 0xc18   :  { %5948 = vmatprep.mubr.msk.f32.mxu1 %vm450_vm5, %v1892_v4  ;;  %v2414_v4 = vld [vmem:[%s7682_s14 + $0x18] sm:$0xff] }
 0xc1c   :  { %v5943_v6 = vpop.f32.mrb[20].mxu0 }
 0xc1d   :  { %v2073_v7 = vadd.f32 %v5943_v6, %v5262_v5  ;;  %v2067_v59 = vpop.f32.mrb[21].mxu0 }
 0xc1e   :  { %v2068_v8 = vadd.f32 %v5262_v5, %v2067_v59  ;;  %v6395_v5 = vpack.c.bf16 %v2414_v4, %v2413_v3 }
 0xc20   :  { %v6387_v9 = vpack.c.bf16 %v2073_v7, %v2068_v8 }
 0xc22   :  { %6388 = vmatprep.subr.bf16.mxu0 %v6387_v9 }
 0xc23   :  { %6390 = vmatpush3.bf16.msra.mxu0 %v6387_v9 }
 0xcea   :  { %v5932_v11 = vpop.f32.mrb[16].mxu1 }
 0xceb   :  { %v1985_v12 = vadd.f32 %v5932_v11, %v5254_v10  ;;  %v1979_v13 = vpop.f32.mrb[17].mxu1 }
 0xcec   :  { %v1980_v14 = vadd.f32 %v5254_v10, %v1979_v13 }
 0xcee   :  { %v6381_v16 = vpack.c.bf16 %v1985_v12, %v1980_v14  ;;  %v5275_v12 = vld [vmem:[%s7680_s12] ss:$0 sm:$0xff] }
 0xcf0   :  { %6383 = vmatprep.subr.msk.bf16.mxu1 %vm6928_vm6, %v6381_v16 }
 0xcf1   :  { %6386 = vmatpush3.bf16.xpose.msk.msra.mxu1 %vm6928_vm6, %v6381_v16 }
 0xcf2   :  { %5958 = vmatprep.subr.mxu1 %v5271_v34 }
 0xcf8   :  { %5949 = vmatmul.mubr.msk.f32.vlgmr.msra.gmra.mrb[18].mxu1 %vm450_vm5, %v1897_v2 }
 0xcf9   :  { %5959 = vmatpush3.msra.mxu1 %v5271_v34 }
 0xdcb   :  { %v5950_v17 = vpop.f32.mrb[18].mxu1 }
 0xdcc   :  { %v2164_v19 = vmul.f32 0.35355338, %v5950_v17  ;;  %v2154_v20 = vpop.f32.mrb[19].mxu1  ;;  %v5276_v17 = vld [vmem:[%s7681_s13] ss:$0 sm:$0xff] }
 0xdcd   :  { %v2163_v21 = vmul.f32 0.35355338, %v2154_v20 }
 0xdce   :  { %v2166_v22 = vadd.f32 %v2164_v19, %v6959_v18 }
 0xdcf   :  { %v2165_v23 = vadd.f32 %v2163_v21, %v6954_v15 }
 0xdd0   :  { %v2170_v24 = vsel %vm542_vm7, %v2166_v22, -inf }
 0xdd1   :  { %2171 = vmax.xlane.f32.xlu0 %v2170_v24  ;;  %v2167_v25 = vsel %vm542_vm7, %v2165_v23, -inf  ;;  %v2522_v24 = vld [vmem:[%s7684_s16 + $0x8] sm:$0xff] }
 0xdd2   :  { %2168 = vmax.xlane.f32.xlu1 %v2167_v25 }
 0xe5e   :  { %v2172_v26 = vpop.xlane.xlu0 %2171 }
 0xe5f   :  { %v2174_v27 = vsub.f32 %v2166_v22, %v2172_v26  ;;  %v2169_v28 = vpop.xlane.xlu1 %2168  ;;  %v2523_v26 = vld [vmem:[%s7684_s16 + $0x10] sm:$0xff] }
 0xe60   :  { %v2173_v29 = vsub.f32 %v2165_v23, %v2169_v28  ;;  %v2521_v23 = vld [vmem:[%s7684_s16] sm:$0xff] }
 0xe61   :  { %v2177_v30 = vmul.f32 1.442695, %v2174_v27  ;;  %v6399_v25 = vpack.c.bf16 %v2522_v24, %v2521_v23  ;;  %v2524_v27 = vld [vmem:[%s7684_s16 + $0x18] sm:$0xff]  ;;  %v5303_v23 = vld [vmem:[%s7674_s6 + $0x90] sm:$0xff] }
 0xe62   :  { %v2175_v31 = vmul.f32 1.442695, %v2173_v29  ;;  %v6403_v28 = vpack.c.bf16 %v2524_v27, %v2523_v26  ;;  %v2525_v29 = vld [vmem:[%s7684_s16 + $0x20] sm:$0xff]  ;;  %v5304_v24 = vld [vmem:[%s7674_s6 + $0x98] sm:$0xff]  ;;  %v5294_v27 = vld [vmem:[%s7673_s5 + $0x88] sm:$0xff] }
 0xe63   :  { %6615 = vpow2.f32 %v2177_v30  ;;  %6400 = vmatprep.subr.bf16.mxu1 %v6399_v25  ;;  %v2526_v30 = vld [vmem:[%s7684_s16 + $0x28] sm:$0xff]  ;;  %v5293_v26 = vld [vmem:[%s7673_s5 + $0x80] sm:$0xff] }
 0xe64   :  { %6617 = vpow2.f32 %v2175_v31  ;;  %v6407_v31 = vpack.c.bf16 %v2526_v30, %v2525_v29 }
 0xe6d   :  { %v6616_v32 = vpop.eup %6615 }
 0xe6e   :  { %v6618_v33 = vpop.eup %6617  ;;  %v2182_v18 = vsel %vm542_vm7, %v6616_v32, 0.0 }
 0xe6f   :  { %2183 = vadd.xlane.f32.xlu0 %v2182_v18  ;;  %v2179_v15 = vsel %vm542_vm7, %v6618_v33, 0.0 }
 0xe70   :  { %2180 = vadd.xlane.f32.xlu1 %v2179_v15  ;;  %v5277_v15 = vld [vmem:[%s7708_s21] ss:$0 sm:$0xff] }
 0xefc   :  { %v2184_v35 = vpop.xlane.xlu0 %2183 }
 0xefd   :  { %6619 = vrcp.f32 %v2184_v35  ;;  %v2181_v36 = vpop.xlane.xlu1 %2180 }
 0xefe   :  { %6621 = vrcp.f32 %v2181_v36 }
 0xf07   :  { %v6620_v37 = vpop.eup %6619 }
 0xf08   :  { %v6622_v38 = vpop.eup %6621  ;;  %v2188_v40 = vmul.f32 %v6620_v37, %v6616_v32  ;;  %v2527_v32 = vld [vmem:[%s7684_s16 + $0x30] sm:$0xff] }
 0xf09   :  { %v2187_v39 = vmul.f32 %v6622_v38, %v6618_v33  ;;  %v2528_v33 = vld [vmem:[%s7684_s16 + $0x38] sm:$0xff] }
 0xf0a   :  { %v6411_v18 = vpack.c.bf16 %v2528_v33, %v2527_v32 }
 0xf0b   :  { %5955 = vmatprep.mubr.msk.f32.mxu0 %vm542_vm7, %v2187_v39 }
 0xf0c   :  { %5956 = vmatmul.mubr.msk.f32.vlgmr.msra.gmra.mrb[22].mxu0 %vm542_vm7, %v2188_v40 }
 0xfdf   :  { %v5957_v41 = vpop.f32.mrb[22].mxu0 }
 0xfe0   :  { %v2261_v42 = vpop.f32.mrb[23].mxu0 }
 0xfe1   :  { %5960 = vmatprep.mubr.msk.f32.mxu1 %vm450_vm5, %v2261_v42 }
 0xfe2   :  { %5961 = vmatmul.mubr.msk.f32.vlgmr.msra.gmra.mrb[10].mxu1 %vm450_vm5, %v5957_v41 }
 0xfe3   :  { %6402 = vmatpush3.bf16.msra.mxu1 %v6399_v25  ;;  %v6435_v25 = vpack.c.bf16 %v5304_v24, %v5303_v23  ;;  %v5321_v24 = vld [vmem:[%s7675_s7 + $0x5] ss:$0 sm:$0xff] }
 0xfe4   :  { %6404 = vmatprep.subr.bf16.mxu1 %v6403_v28 }
 0xfe7   :  { %6406 = vmatpush3.bf16.msra.mxu1 %v6403_v28  ;;  %v6423_v28 = vpack.c.bf16 %v5294_v27, %v5293_v26 }
 0xfe8   :  { %6408 = vmatprep.subr.bf16.mxu1 %v6407_v31 }
 0xfeb   :  { %6410 = vmatpush3.bf16.msra.mxu1 %v6407_v31 }
 0xfec   :  { %6412 = vmatprep.subr.bf16.mxu1 %v6411_v18 }
 0xfef   :  { %6414 = vmatpush3.bf16.msra.mxu1 %v6411_v18 }
0x10b5   :  { %v5962_v44 = vpop.f32.mrb[10].mxu1 }
0x10b6   :  { %v2363_v45 = vadd.f32 %v5962_v44, %v5274_v43  ;;  %v2344_v46 = vpop.f32.mrb[11].mxu1 }
0x10b7   :  { %v2362_v47 = vadd.f32 %v5274_v43, %v2344_v46 }
0x10b8   :  { %v2365_v48 = vadd.f32 %v2363_v45, %v6900_v51 }
0x10b9   :  { %v2364_v49 = vadd.f32 %v2362_v47, %v6898_v50  ;;  %v2411_v50 = vld [vmem:[%s7682_s14] sm:$0xff] }
0x10ba   :  { %v2371_v52 = vsel %vm196_vm4, %v2365_v48, 0.0  ;;  %v6391_v2 = vpack.c.bf16 %v2412_v60, %v2411_v50 }
0x10bb   :  { %2372 = vadd.xlane.f32.xlu0 %v2371_v52  ;;  %v2368_v53 = vsel %vm196_vm4, %v2364_v49, 0.0 }
0x10bc   :  { %2369 = vadd.xlane.f32.xlu1 %v2368_v53  ;;  %6392 = vmatprep.subr.bf16.mxu0 %v6391_v2 }
0x10bd   :  { %6394 = vmatpush3.bf16.msra.mxu0 %v6391_v2 }
0x10be   :  { %6396 = vmatprep.subr.bf16.mxu0 %v6395_v5 }
0x10c1   :  { %6398 = vmatpush3.bf16.msra.mxu0 %v6395_v5 }
0x1148   :  { %v2373_v54 = vpop.xlane.xlu0 %2372 }
0x1149   :  { %v2376_v55 = vmul.f32 0.03125, %v2373_v54  ;;  %v2370_v56 = vpop.xlane.xlu1 %2369 }
0x114a   :  { %v2375_v57 = vmul.f32 0.03125, %v2370_v56 }
0x114b   :  { %v2378_v58 = vsub.f32 %v2365_v48, %v2376_v55 }
0x114c   :  { %v2377_v61 = vsub.f32 %v2364_v49, %v2375_v57 }
0x114d   :  { %v2380_v62 = vmul.f32 %v2378_v58, %v2378_v58 }
0x114e   :  { %v2379_v63 = vmul.f32 %v2377_v61, %v2377_v61 }
0x114f   :  { %v2384_v1 = vsel %vm196_vm4, %v2380_v62, 0.0 }
0x1150   :  { %2385 = vadd.xlane.f32.xlu0 %v2384_v1  ;;  %v2381_v51 = vsel %vm196_vm4, %v2379_v63, 0.0 }
0x1151   :  { %2382 = vadd.xlane.f32.xlu1 %v2381_v51 }
0x11dd   :  { %v2386_v6 = vpop.xlane.xlu0 %2385 }
0x11de   :  { %v2388_v7 = vmul.f32 0.03125, %v2386_v6  ;;  %v2383_v59 = vpop.xlane.xlu1 %2382 }
0x11df   :  { %v2387_v8 = vmul.f32 0.03125, %v2383_v59 }
0x11e0   :  { %v2390_v9 = vadd.f32 1e-05, %v2388_v7 }
0x11e1   :  { %v2389_v10 = vadd.f32 1e-05, %v2387_v8 }
0x11e2   :  { %6623 = vrsqrt.f32 %v2390_v9 }
0x11e3   :  { %6625 = vrsqrt.f32 %v2389_v10 }
0x11ec   :  { %v6624_v11 = vpop.eup %6623 }
0x11ed   :  { %v6626_v13 = vpop.eup %6625  ;;  %v2394_v14 = vmul.f32 %v6624_v11, %v2378_v58  ;;  %v5280_v58 = vld [vmem:[%s7685_s17] ss:$0 sm:$0xff] }
0x11ee   :  { %v2393_v16 = vmul.f32 %v6626_v13, %v2377_v61  ;;  %v5286_v13 = vld [vmem:[%s7703_s26 + $0x88] sm:$0xff] }
0x11ef   :  { %v2402_v19 = vmul.f32 %v5275_v12, %v2394_v14 }
0x11f0   :  { %v2401_v20 = vmul.f32 %v5275_v12, %v2393_v16  ;;  %v5285_v12 = vld [vmem:[%s7703_s26 + $0x80] sm:$0xff] }
0x11f1   :  { %v2410_v22 = vadd.f32 %v5276_v17, %v2402_v19  ;;  %v6415_v14 = vpack.c.bf16 %v5286_v13, %v5285_v12  ;;  %v5301_v16 = vld [vmem:[%s7674_s6 + $0x80] sm:$0xff] }
0x11f2   :  { %v2409_v21 = vadd.f32 %v5276_v17, %v2401_v20  ;;  %v5302_v17 = vld [vmem:[%s7674_s6 + $0x88] sm:$0xff]  ;;  %v5287_v20 = vld [vmem:[%s7703_s26 + $0x90] sm:$0xff] }
0x11f3   :  { %v6431_v19 = vpack.c.bf16 %v5302_v17, %v5301_v16  ;;  %6416 = vmatprep.subr.bf16.mxu0 %v6415_v14  ;;  %v7365_v17 = vld [vmem:[%s7707_s22 + $0x8] sm:$0xff] }
0x11f4   :  { %5971 = vmatprep.mubr.msk.f32.mxu0 %vm196_vm4, %v2409_v21 }
0x11f5   :  { %5972 = vmatmul.mubr.msk.f32.vlgmr.msra.gmra.mrb[24].mxu0 %vm196_vm4, %v2410_v22  ;;  %6432 = vmatprep.subr.bf16.mxu1 %v6431_v19 }
0x11f6   :  { %6418 = vmatpush3.bf16.msra.mxu0 %v6415_v14 }
0x12c8   :  { %v5973_v34 = vpop.f32.mrb[24].mxu0 }
0x12c9   :  { %v2500_v35 = vadd.f32 %v5973_v34, %v5277_v15  ;;  %v2494_v36 = vpop.f32.mrb[25].mxu0  ;;  %v5283_v34 = vld [vmem:[%s7686_s18] ss:$0 sm:$0xff] }
0x12ca   :  { %v2495_v37 = vadd.f32 %v5277_v15, %v2494_v36 }
0x12cb   :  { %v2504_v38 = vmul.f32 %v2500_v35, %v2500_v35 }
0x12cc   :  { %v2503_v39 = vmul.f32 %v2495_v37, %v2495_v37 }
0x12cd   :  { %v2506_v40 = vmul.f32 %v2504_v38, %v2500_v35  ;;  %v5284_v38 = vld [vmem:[%s7687_s19] ss:$0 sm:$0xff] }
0x12ce   :  { %v2505_v41 = vmul.f32 %v2503_v39, %v2495_v37 }
0x12cf   :  { %v2508_v42 = vmul.f32 0.044715, %v2506_v40 }
0x12d0   :  { %v2507_v43 = vmul.f32 0.044715, %v2505_v41  ;;  %v5295_v41 = vld [vmem:[%s7673_s5 + $0x90] sm:$0xff] }
0x12d1   :  { %v2510_v44 = vadd.f32 %v2508_v42, %v2500_v35  ;;  %v5296_v42 = vld [vmem:[%s7673_s5 + $0x98] sm:$0xff] }
0x12d2   :  { %v2509_v45 = vadd.f32 %v2507_v43, %v2495_v37 }
0x12d3   :  { %v2512_v46 = vmul.f32 0.7978846, %v2510_v44 }
0x12d4   :  { %v2511_v47 = vmul.f32 0.7978846, %v2509_v45  ;;  %v6427_v45 = vpack.c.bf16 %v5296_v42, %v5295_v41  ;;  %v5324_v42 = vld [vmem:[%s7673_s5 + $0xa0] sm:$0xff] }
0x12d5   :  { %6627 = vtanh.f32 %v2512_v46  ;;  %v5306_v46 = vld [vmem:[%s7677_s9 + $0x4] ss:$0 sm:$0xff] }
0x12d6   :  { %6629 = vtanh.f32 %v2511_v47  ;;  %v5290_v47 = vld [vmem:[%s7675_s7 + $0x4] ss:$0 sm:$0xff] }
0x12df   :  { %v6628_v48 = vpop.eup %6627 }
0x12e0   :  { %v6630_v49 = vpop.eup %6629  ;;  %v2516_v52 = vadd.f32 1.0, %v6628_v48 }
0x12e1   :  { %v2515_v53 = vadd.f32 1.0, %v6630_v49 }
0x12e2   :  { %v2518_v54 = vmul.f32 0.5, %v2516_v52 }
0x12e3   :  { %v2517_v55 = vmul.f32 0.5, %v2515_v53 }
0x12e4   :  { %v2520_v57 = vmul.f32 %v2518_v54, %v2500_v35 }
0x12e5   :  { %v2519_v56 = vmul.f32 %v2517_v55, %v2495_v37 }
0x12e7   :  { %5990 = vmatprep.mubr.msk.f32.mxu1 %vm2536_vm8, %v2519_v56 }
0x12e8   :  { %5991 = vmatmul.mubr.msk.f32.vlgmr.msra.gmra.mrb[20].mxu1 %vm2536_vm8, %v2520_v57 }
0x12e9   :  { %6434 = vmatpush3.bf16.msra.mxu1 %v6431_v19 }
0x12ea   :  { %6436 = vmatprep.subr.bf16.mxu1 %v6435_v25 }
0x12ed   :  { %6438 = vmatpush3.bf16.msra.mxu1 %v6435_v25 }
0x13bb   :  { %v5992_v61 = vpop.f32.mrb[20].mxu1 }
0x13bc   :  { %v2615_v62 = vadd.f32 %v5992_v61, %v5280_v58  ;;  %v2609_v63 = vpop.f32.mrb[21].mxu1 }
0x13bd   :  { %v2610_v1 = vadd.f32 %v5280_v58, %v2609_v63  ;;  %v5298_v58 = vld [vmem:[%s7676_s8 + $0x4] ss:$0 sm:$0xff] }
0x13be   :  { %v2619_v51 = vadd.f32 %v2615_v62, %v2410_v22 }
0x13bf   :  { %v2618_v50 = vadd.f32 %v2610_v1, %v2409_v21  ;;  %v5288_v21 = vld [vmem:[%s7703_s26 + $0x98] sm:$0xff]  ;;  %v5316_v1 = vld [vmem:[%s7703_s26 + $0xa0] sm:$0xff] }
0x13c0   :  { %v2625_v60 = vsel %vm196_vm4, %v2619_v51, 0.0  ;;  %v6419_v22 = vpack.c.bf16 %v5288_v21, %v5287_v20  ;;  %v7371_v20 = vld [vmem:[%s7707_s22] sm:$0xff] }
0x13c1   :  { %2626 = vadd.xlane.f32.xlu0 %v2625_v60  ;;  %v2622_v2 = vsel %vm196_vm4, %v2618_v50, 0.0 }
0x13c2   :  { %2623 = vadd.xlane.f32.xlu1 %v2622_v2  ;;  %6420 = vmatprep.subr.bf16.mxu0 %v6419_v22 }
0x13c3   :  { %6422 = vmatpush3.bf16.msra.mxu0 %v6419_v22 }
0x13c4   :  { %6424 = vmatprep.subr.bf16.mxu0 %v6423_v28 }
0x144e   :  { %v2627_v3 = vpop.xlane.xlu0 %2626 }
0x144f   :  { %v2629_v4 = vmul.f32 0.03125, %v2627_v3  ;;  %v2624_v5 = vpop.xlane.xlu1 %2623  ;;  %v5318_v3 = vld [vmem:[%s7703_s26 + $0xb0] sm:$0xff] }
0x1450   :  { %v2628_v6 = vmul.f32 0.03125, %v2624_v5 }
0x1451   :  { %v2631_v7 = vsub.f32 %v2619_v51, %v2629_v4  ;;  %v5317_v51 = vld [vmem:[%s7703_s26 + $0xa8] sm:$0xff]  ;;  %v5319_v4 = vld [vmem:[%s7703_s26 + $0xb8] sm:$0xff] }
0x1452   :  { %v2630_v59 = vsub.f32 %v2618_v50, %v2628_v6  ;;  %v6449_v2 = vpack.c.bf16 %v5317_v51, %v5316_v1  ;;  %v6453_v6 = vpack.c.bf16 %v5319_v4, %v5318_v3 }
0x1453   :  { %v2633_v8 = vmul.f32 %v2631_v7, %v2631_v7 }
0x1454   :  { %v2632_v9 = vmul.f32 %v2630_v59, %v2630_v59 }
0x1455   :  { %v2637_v10 = vsel %vm196_vm4, %v2633_v8, 0.0 }
0x1456   :  { %2638 = vadd.xlane.f32.xlu0 %v2637_v10  ;;  %v2634_v11 = vsel %vm196_vm4, %v2632_v9, 0.0  ;;  %v5334_v9 = vld [vmem:[%s7674_s6 + $0xb0] sm:$0xff]  ;;  %v5335_v10 = vld [vmem:[%s7674_s6 + $0xb8] sm:$0xff] }
0x1457   :  { %2635 = vadd.xlane.f32.xlu1 %v2634_v11  ;;  %v6469_v11 = vpack.c.bf16 %v5335_v10, %v5334_v9 }
0x14e3   :  { %v2639_v29 = vpop.xlane.xlu0 %2638 }
0x14e4   :  { %v2641_v30 = vmul.f32 0.03125, %v2639_v29  ;;  %v2636_v31 = vpop.xlane.xlu1 %2635 }
0x14e5   :  { %v2640_v32 = vmul.f32 0.03125, %v2636_v31 }
0x14e6   :  { %v2643_v33 = vadd.f32 1e-05, %v2641_v30 }
0x14e7   :  { %v2642_v18 = vadd.f32 1e-05, %v2640_v32 }
0x14e8   :  { %6631 = vrsqrt.f32 %v2643_v33 }
0x14e9   :  { %6633 = vrsqrt.f32 %v2642_v18 }
0x14f2   :  { %v6632_v15 = vpop.eup %6631 }
0x14f3   :  { %v6634_v35 = vpop.eup %6633  ;;  %v2647_v36 = vmul.f32 %v6632_v15, %v2631_v7  ;;  %v5332_v7 = vld [vmem:[%s7674_s6 + $0xa0] sm:$0xff] }
0x14f4   :  { %v2646_v37 = vmul.f32 %v6634_v35, %v2630_v59  ;;  %v5333_v59 = vld [vmem:[%s7674_s6 + $0xa8] sm:$0xff] }
0x14f5   :  { %v2655_v39 = vmul.f32 %v5283_v34, %v2647_v36  ;;  %v6465_v8 = vpack.c.bf16 %v5333_v59, %v5332_v7 }
0x14f6   :  { %v2654_v40 = vmul.f32 %v5283_v34, %v2646_v37 }
0x14f7   :  { %v7301_v44 = vadd.f32 %v5284_v38, %v2655_v39 }
0x14f8   :  { %v7299_v43 = vadd.f32 %v5284_v38, %v2654_v40 }
0x14fa   :  { %6001 = vmatprep.mubr.msk.f32.mxu0 %vm196_vm4, %v7299_v43  ;;  %6023 = vmatprep.mubr.msk.f32.mxu1 %vm196_vm4, %v7299_v43 }
0x14fb   :  { %6002 = vmatmul.mubr.msk.f32.vlgmr.msra.gmra.mrb[26].mxu0 %vm196_vm4, %v7301_v44  ;;  %6024 = vmatmul.mubr.msk.f32.vlgmr.msra.gmra.mrb[22].mxu1 %vm196_vm4, %v7301_v44 }
0x14fc   :  { %6426 = vmatpush3.bf16.msra.mxu0 %v6423_v28  ;;  %6012 = vmatprep.mubr.msk.f32.mxu0 %vm196_vm4, %v7299_v43  ;;  %v5337_v28 = vld [vmem:[%s7677_s9 + $0x5] ss:$0 sm:$0xff] }
0x14fd   :  { %6428 = vmatprep.subr.bf16.mxu0 %v6427_v45 }
0x1500   :  { %6430 = vmatpush3.bf16.msra.mxu0 %v6427_v45  ;;  %v5325_v45 = vld [vmem:[%s7673_s5 + $0xa8] sm:$0xff] }
0x1503   :  { %6013 = vmatmul.mubr.msk.f32.vlgmr.msra.gmra.mrb[28].mxu0 %vm196_vm4, %v7301_v44 }
0x15ce   :  { %v6003_v48 = vpop.f32.mrb[26].mxu0  ;;  %v6025_v49 = vpop.f32.mrb[22].mxu1 }
0x15cf   :  { %v2931_v52 = vadd.f32 %v6025_v49, %v5306_v46  ;;  %v2749_v53 = vpop.f32.mrb[27].mxu0  ;;  %v2925_v54 = vpop.f32.mrb[23].mxu1  ;;  %v2755_v5 = vadd.f32 %v6003_v48, %v5290_v47 }
0x15d0   :  { %v2750_v55 = vadd.f32 %v5290_v47, %v2749_v53  ;;  %v2926_v56 = vadd.f32 %v5306_v46, %v2925_v54  ;;  %v6457_v46 = vpack.c.bf16 %v5325_v45, %v5324_v42  ;;  %v5327_v53 = vld [vmem:[%s7673_s5 + $0xb8] sm:$0xff]  ;;  %v5359_v42 = vld [vmem:[%s7673_s5 + $0xc0] sm:$0xff]  ;;  %v5360_v45 = vld [vmem:[%s7673_s5 + $0xc8] sm:$0xff] }
0x15d2   :  { %v6445_v57 = vpack.c.bf16 %v2931_v52, %v2926_v56  ;;  %6030 = vmatprep.mubr.msk.f32.mxu0 %vm450_vm5, %v2750_v55  ;;  %v5326_v52 = vld [vmem:[%s7673_s5 + $0xb0] sm:$0xff] }
0x15d4   :  { %6446 = vmatprep.subr.bf16.mxu1 %v6445_v57 }
0x15d5   :  { %6448 = vmatpush3.bf16.msra.mxu1 %v6445_v57  ;;  %v6461_v57 = vpack.c.bf16 %v5327_v53, %v5326_v52  ;;  %v5361_v52 = vld [vmem:[%s7673_s5 + $0xd0] sm:$0xff]  ;;  %v5362_v53 = vld [vmem:[%s7673_s5 + $0xd8] sm:$0xff] }
0x15d6   :  { %v6014_v61 = vpop.f32.mrb[28].mxu0  ;;  %6458 = vmatprep.subr.bf16.mxu1 %v6457_v46 }
0x15d7   :  { %v2843_v62 = vadd.f32 %v6014_v61, %v5298_v58  ;;  %v2837_v63 = vpop.f32.mrb[29].mxu0 }
0x15d8   :  { %v2838_v50 = vadd.f32 %v5298_v58, %v2837_v63  ;;  %v5329_v63 = vld [vmem:[%s7676_s8 + $0x5] ss:$0 sm:$0xff] }
0x15da   :  { %v6439_v60 = vpack.c.bf16 %v2843_v62, %v2838_v50 }
0x15dc   :  { %6441 = vmatprep.subr.msk.bf16.mxu0 %vm6928_vm6, %v6439_v60 }
0x15dd   :  { %6444 = vmatpush3.bf16.xpose.msk.msra.mxu0 %vm6928_vm6, %v6439_v60 }
0x15de   :  { %6450 = vmatprep.subr.bf16.mxu0 %v6449_v2 }
0x15e4   :  { %6031 = vmatmul.mubr.msk.f32.vlgmr.msra.gmra.mrb[30].mxu0 %vm450_vm5, %v2755_v5 }
0x15e5   :  { %6452 = vmatpush3.bf16.msra.mxu0 %v6449_v2  ;;  %6048 = vmatprep.mubr.msk.f32.mxu0 %vm196_vm4, %v7299_v43 }
0x15e6   :  { %6454 = vmatprep.subr.bf16.mxu0 %v6453_v6 }
0x15e9   :  { %6456 = vmatpush3.bf16.msra.mxu0 %v6453_v6 }
0x15ea   :  { %6466 = vmatprep.subr.bf16.mxu0 %v6465_v8 }
0x15ec   :  { %6049 = vmatmul.mubr.msk.f32.vlgmr.msra.gmra.mrb[32].mxu0 %vm196_vm4, %v7301_v44 }
0x15ed   :  { %6468 = vmatpush3.bf16.msra.mxu0 %v6465_v8  ;;  %6070 = vmatprep.mubr.msk.f32.mxu0 %vm196_vm4, %v7299_v43 }
0x15ee   :  { %6470 = vmatprep.subr.bf16.mxu0 %v6469_v11 }
0x15f1   :  { %6472 = vmatpush3.bf16.msra.mxu0 %v6469_v11 }
0x15f4   :  { %6071 = vmatmul.mubr.msk.f32.vlgmr.msra.gmra.mrb[34].mxu0 %vm196_vm4, %v7301_v44 }
0x16b7   :  { %v6032_v12 = vpop.f32.mrb[30].mxu0 }
0x16b8   :  { %v3022_v13 = vmul.f32 0.35355338, %v6032_v12  ;;  %v3012_v14 = vpop.f32.mrb[31].mxu0 }
0x16b9   :  { %v3021_v16 = vmul.f32 0.35355338, %v3012_v14 }
0x16ba   :  { %v3024_v19 = vadd.f32 %v7365_v17, %v3022_v13 }
0x16bb   :  { %v3023_v21 = vadd.f32 %v7371_v20, %v3021_v16 }
0x16bc   :  { %v3028_v22 = vsel %vm542_vm7, %v3024_v19, -inf }
0x16bd   :  { %3029 = vmax.xlane.f32.xlu0 %v3028_v22  ;;  %v3025_v23 = vsel %vm542_vm7, %v3023_v21, -inf }
0x16be   :  { %3026 = vmax.xlane.f32.xlu1 %v3025_v23 }
0x16bf   :  { %v6050_v25 = vpop.f32.mrb[32].mxu0 }
0x16c0   :  { %v3215_v26 = vadd.f32 %v6050_v25, %v5321_v24  ;;  %v3209_v27 = vpop.f32.mrb[33].mxu0  ;;  %v5352_v25 = vld [vmem:[%s7703_s26 + $0xc8] sm:$0xff] }
0x16c1   :  { %v3210_v58 = vadd.f32 %v5321_v24, %v3209_v27  ;;  %v5351_v24 = vld [vmem:[%s7703_s26 + $0xc0] sm:$0xff]  ;;  %v5346_v27 = vld [vmem:[%s7678_s10 + $0x28] sm:$0xff] }
0x16c7   :  { %v6072_v29 = vpop.f32.mrb[34].mxu0 }
0x16c8   :  { %v3391_v30 = vadd.f32 %v6072_v29, %v5337_v28  ;;  %v3385_v31 = vpop.f32.mrb[35].mxu0 }
0x16c9   :  { %v3386_v32 = vadd.f32 %v5337_v28, %v3385_v31  ;;  %v5353_v31 = vld [vmem:[%s7703_s26 + $0xd0] sm:$0xff] }
0x16cb   :  { %v6479_v33 = vpack.c.bf16 %v3391_v30, %v3386_v32  ;;  %v5354_v32 = vld [vmem:[%s7703_s26 + $0xd8] sm:$0xff] }
0x16cd   :  { %6480 = vmatprep.subr.bf16.mxu0 %v6479_v33 }
0x16ce   :  { %6482 = vmatpush3.bf16.msra.mxu0 %v6479_v33 }
0x174a   :  { %v3030_v18 = vpop.xlane.xlu0 %3029 }
0x174b   :  { %v3032_v15 = vsub.f32 %v3024_v19, %v3030_v18  ;;  %v3027_v34 = vpop.xlane.xlu1 %3026 }
0x174c   :  { %v3031_v35 = vsub.f32 %v3023_v21, %v3027_v34  ;;  %v6487_v34 = vpack.c.bf16 %v5354_v32, %v5353_v31  ;;  %v5381_v31 = vld [vmem:[%s7678_s10 + $0x30] sm:$0xff] }
0x174d   :  { %v3035_v36 = vmul.f32 1.442695, %v3032_v15 }
0x174e   :  { %v3033_v37 = vmul.f32 1.442695, %v3031_v35  ;;  %v5367_v35 = vld [vmem:[%s7674_s6 + $0xc0] sm:$0xff] }
0x174f   :  { %6635 = vpow2.f32 %v3035_v36  ;;  %v5368_v36 = vld [vmem:[%s7674_s6 + $0xc8] sm:$0xff] }
0x1750   :  { %6637 = vpow2.f32 %v3033_v37  ;;  %v6499_v37 = vpack.c.bf16 %v5368_v36, %v5367_v35 }
0x1759   :  { %v6636_v38 = vpop.eup %6635 }
0x175a   :  { %v6638_v39 = vpop.eup %6637  ;;  %v3040_v40 = vsel %vm542_vm7, %v6636_v38, 0.0 }
0x175b   :  { %3041 = vadd.xlane.f32.xlu0 %v3040_v40  ;;  %v3037_v41 = vsel %vm542_vm7, %v6638_v39, 0.0 }
0x175c   :  { %3038 = vadd.xlane.f32.xlu1 %v3037_v41  ;;  %v5315_v41 = vld [vmem:[%s7678_s10 + $0x20] sm:$0xff] }
0x17e8   :  { %v3042_v47 = vpop.xlane.xlu0 %3041 }
0x17e9   :  { %6639 = vrcp.f32 %v3042_v47  ;;  %v3039_v48 = vpop.xlane.xlu1 %3038 }
0x17ea   :  { %6641 = vrcp.f32 %v3039_v48  ;;  %v6491_v48 = vpack.c.bf16 %v5360_v45, %v5359_v42  ;;  %v5402_v42 = vld [vmem:[%s7674_s6 + $0xf0] sm:$0xff]  ;;  %v5403_v45 = vld [vmem:[%s7674_s6 + $0xf8] sm:$0xff] }
0x17f3   :  { %v6640_v49 = vpop.eup %6639 }
0x17f4   :  { %v6642_v54 = vpop.eup %6641  ;;  %v3046_v56 = vmul.f32 %v6640_v49, %v6636_v38  ;;  %v5369_v38 = vld [vmem:[%s7674_s6 + $0xd0] sm:$0xff]  ;;  %v5356_v49 = vld [vmem:[%s7675_s7 + $0x6] ss:$0 sm:$0xff] }
0x17f5   :  { %v3045_v55 = vmul.f32 %v6642_v54, %v6638_v39  ;;  %v5370_v39 = vld [vmem:[%s7674_s6 + $0xd8] sm:$0xff] }
0x17f6   :  { %v6503_v40 = vpack.c.bf16 %v5370_v39, %v5369_v38  ;;  %v5400_v39 = vld [vmem:[%s7674_s6 + $0xe0] sm:$0xff] }
0x17f7   :  { %6037 = vmatprep.mubr.msk.f32.mxu1 %vm542_vm7, %v3045_v55 }
0x17f8   :  { %6038 = vmatmul.mubr.msk.f32.vlgmr.msra.gmra.mrb[24].mxu1 %vm542_vm7, %v3046_v56 }
0x17f9   :  { %6460 = vmatpush3.bf16.msra.mxu1 %v6457_v46  ;;  %6059 = vmatprep.mubr.msk.f32.mxu1 %vm196_vm4, %v7299_v43 }
0x17fa   :  { %6462 = vmatprep.subr.bf16.mxu1 %v6461_v57 }
0x17fd   :  { %6464 = vmatpush3.bf16.msra.mxu1 %v6461_v57  ;;  %v6495_v57 = vpack.c.bf16 %v5362_v53, %v5361_v52  ;;  %v5394_v52 = vld [vmem:[%s7673_s5 + $0xf0] sm:$0xff]  ;;  %v5395_v53 = vld [vmem:[%s7673_s5 + $0xf8] sm:$0xff] }
0x1800   :  { %6060 = vmatmul.mubr.msk.f32.vlgmr.msra.gmra.mrb[26].mxu1 %vm196_vm4, %v7301_v44 }
0x1801   :  { %6077 = vmatprep.mubr.msk.f32.mxu1 %vm450_vm5, %v3210_v58  ;;  %v5372_v58 = vld [vmem:[%s7677_s9 + $0x6] ss:$0 sm:$0xff] }
0x18cb   :  { %v7403_v61 = vpop.f32.mrb[24].mxu1 }
0x18cc   :  { %v7405_v62 = vpop.f32.mrb[25].mxu1 }
0x18d3   :  { %v6061_v1 = vpop.f32.mrb[26].mxu1 }
0x18d4   :  { %v3303_v51 = vadd.f32 %v6061_v1, %v5329_v63  ;;  %v3297_v50 = vpop.f32.mrb[27].mxu1 }
0x18d5   :  { %v3298_v60 = vadd.f32 %v5329_v63, %v3297_v50 }
0x18d7   :  { %v6473_v2 = vpack.c.bf16 %v3303_v51, %v3298_v60 }
0x18d9   :  { %6475 = vmatprep.subr.msk.bf16.mxu1 %vm6928_vm6, %v6473_v2 }
0x18da   :  { %6478 = vmatpush3.bf16.xpose.msk.msra.mxu1 %vm6928_vm6, %v6473_v2 }
0x18db   :  { %6087 = vmatprep.subr.mxu1 %v5346_v27 }
0x18e1   :  { %6078 = vmatmul.mubr.msk.f32.vlgmr.msra.gmra.mrb[28].mxu1 %vm450_vm5, %v3215_v26  ;;  %v6483_v26 = vpack.c.bf16 %v5352_v25, %v5351_v24 }
0x18e2   :  { %6088 = vmatpush3.msra.mxu1 %v5346_v27 }
0x18e3   :  { %6484 = vmatprep.subr.bf16.mxu0 %v6483_v26  ;;  %6092 = vmatprep.subr.mxu1 %v5315_v41 }
0x19b4   :  { %v6079_v3 = vpop.f32.mrb[28].mxu1 }
0x19b5   :  { %v3482_v4 = vmul.f32 0.35355338, %v6079_v3  ;;  %v3472_v5 = vpop.f32.mrb[29].mxu1 }
0x19b6   :  { %v3481_v6 = vmul.f32 0.35355338, %v3472_v5 }
0x19b7   :  { %v3484_v7 = vadd.f32 %v7365_v17, %v3482_v4 }
0x19b8   :  { %v3483_v59 = vadd.f32 %v7371_v20, %v3481_v6 }
0x19b9   :  { %v3488_v8 = vsel %vm542_vm7, %v3484_v7, -inf }
0x19ba   :  { %3489 = vmax.xlane.f32.xlu0 %v3488_v8  ;;  %v3485_v9 = vsel %vm542_vm7, %v3483_v59, -inf }
0x19bb   :  { %3486 = vmax.xlane.f32.xlu1 %v3485_v9 }
0x1a47   :  { %v3490_v10 = vpop.xlane.xlu0 %3489 }
0x1a48   :  { %v3492_v11 = vsub.f32 %v3484_v7, %v3490_v10  ;;  %v3487_v12 = vpop.xlane.xlu1 %3486 }
0x1a49   :  { %v3491_v13 = vsub.f32 %v3483_v59, %v3487_v12 }
0x1a4a   :  { %v3495_v14 = vmul.f32 1.442695, %v3492_v11 }
0x1a4b   :  { %v3493_v16 = vmul.f32 1.442695, %v3491_v13 }
0x1a4c   :  { %6643 = vpow2.f32 %v3495_v14 }
0x1a4d   :  { %6645 = vpow2.f32 %v3493_v16 }
0x1a56   :  { %v6644_v19 = vpop.eup %6643 }
0x1a57   :  { %v6646_v21 = vpop.eup %6645  ;;  %v3500_v22 = vsel %vm542_vm7, %v6644_v19, 0.0 }
0x1a58   :  { %3501 = vadd.xlane.f32.xlu0 %v3500_v22  ;;  %v3497_v23 = vsel %vm542_vm7, %v6646_v21, 0.0 }
0x1a59   :  { %3498 = vadd.xlane.f32.xlu1 %v3497_v23 }
0x1ae5   :  { %v3502_v28 = vpop.xlane.xlu0 %3501 }
0x1ae6   :  { %6647 = vrcp.f32 %v3502_v28  ;;  %v3499_v29 = vpop.xlane.xlu1 %3498  ;;  %v5384_v28 = vld [vmem:[%s7703_s26 + $0xe0] sm:$0xff] }
0x1ae7   :  { %6649 = vrcp.f32 %v3499_v29  ;;  %v5385_v29 = vld [vmem:[%s7703_s26 + $0xe8] sm:$0xff] }
0x1af0   :  { %v6648_v30 = vpop.eup %6647 }
0x1af1   :  { %v6650_v33 = vpop.eup %6649  ;;  %v3506_v15 = vmul.f32 %v6648_v30, %v6644_v19  ;;  %v6517_v30 = vpack.c.bf16 %v5385_v29, %v5384_v28  ;;  %v5414_v28 = vld [vmem:[%s7678_s10 + $0x38] sm:$0xff] }
0x1af2   :  { %v3505_v18 = vmul.f32 %v6650_v33, %v6646_v21 }
0x1af4   :  { %6084 = vmatprep.mubr.msk.f32.mxu0 %vm542_vm7, %v3505_v18 }
0x1af5   :  { %6085 = vmatmul.mubr.msk.f32.vlgmr.msra.gmra.mrb[36].mxu0 %vm542_vm7, %v3506_v15  ;;  %v5386_v15 = vld [vmem:[%s7703_s26 + $0xf0] sm:$0xff] }
0x1af6   :  { %6486 = vmatpush3.bf16.msra.mxu0 %v6483_v26  ;;  %6105 = vmatprep.mubr.msk.f32.mxu0 %vm196_vm4, %v7299_v43 }
0x1af7   :  { %6488 = vmatprep.subr.bf16.mxu0 %v6487_v34 }
0x1afa   :  { %6490 = vmatpush3.bf16.msra.mxu0 %v6487_v34  ;;  %v5387_v34 = vld [vmem:[%s7703_s26 + $0xf8] sm:$0xff] }
0x1afb   :  { %6500 = vmatprep.subr.bf16.mxu0 %v6499_v37  ;;  %v6521_v38 = vpack.c.bf16 %v5387_v34, %v5386_v15 }
0x1afd   :  { %6106 = vmatmul.mubr.msk.f32.vlgmr.msra.gmra.mrb[38].mxu0 %vm196_vm4, %v7301_v44 }
0x1afe   :  { %6502 = vmatpush3.bf16.msra.mxu0 %v6499_v37  ;;  %6127 = vmatprep.mubr.msk.f32.mxu0 %vm196_vm4, %v7299_v43 }
0x1aff   :  { %6504 = vmatprep.subr.bf16.mxu0 %v6503_v40 }
0x1b02   :  { %6506 = vmatpush3.bf16.msra.mxu0 %v6503_v40  ;;  %v5401_v40 = vld [vmem:[%s7674_s6 + $0xe8] sm:$0xff] }
0x1b05   :  { %6128 = vmatmul.mubr.msk.f32.vlgmr.msra.gmra.mrb[40].mxu0 %vm196_vm4, %v7301_v44 }
0x1bc8   :  { %v6086_v46 = vpop.f32.mrb[36].mxu0 }
0x1bc9   :  { %v3579_v47 = vpop.f32.mrb[37].mxu0 }
0x1bca   :  { %6089 = vmatprep.mubr.msk.f32.mxu1 %vm450_vm5, %v3579_v47  ;;  %v5392_v47 = vld [vmem:[%s7673_s5 + $0xe0] sm:$0xff] }
0x1bcb   :  { %6090 = vmatmul.mubr.msk.f32.vlgmr.msra.gmra.mrb[30].mxu1 %vm450_vm5, %v6086_v46  ;;  %v6537_v46 = vpack.c.bf16 %v5403_v45, %v5402_v42 }
0x1bcc   :  { %6093 = vmatpush3.msra.mxu1 %v5315_v41  ;;  %6094 = vmatprep.mubr.msk.f32.mxu1 %vm450_vm5, %v7405_v62  ;;  %v6533_v41 = vpack.c.bf16 %v5401_v40, %v5400_v39 }
0x1bcd   :  { %6492 = vmatprep.subr.bf16.mxu1 %v6491_v48 }
0x1bd0   :  { %v6107_v54 = vpop.f32.mrb[38].mxu0 }
0x1bd1   :  { %v3837_v55 = vadd.f32 %v6107_v54, %v5356_v49  ;;  %v3831_v56 = vpop.f32.mrb[39].mxu0 }
0x1bd2   :  { %v3832_v51 = vadd.f32 %v5356_v49, %v3831_v56  ;;  %v6529_v56 = vpack.c.bf16 %v5395_v53, %v5394_v52 }
0x1bd3   :  { %6095 = vmatmul.mubr.msk.f32.vlgmr.msra.gmra.mrb[30].mxu1 %vm450_vm5, %v7403_v61  ;;  %v5364_v61 = vld [vmem:[%s7676_s8 + $0x6] ss:$0 sm:$0xff] }
0x1bd4   :  { %6494 = vmatpush3.bf16.msra.mxu1 %v6491_v48  ;;  %6116 = vmatprep.mubr.msk.f32.mxu1 %vm196_vm4, %v7299_v43  ;;  %v5393_v48 = vld [vmem:[%s7673_s5 + $0xe8] sm:$0xff] }
0x1bd5   :  { %6496 = vmatprep.subr.bf16.mxu1 %v6495_v57  ;;  %v6525_v49 = vpack.c.bf16 %v5393_v48, %v5392_v47 }
0x1bd8   :  { %6498 = vmatpush3.bf16.msra.mxu1 %v6495_v57  ;;  %v6129_v62 = vpop.f32.mrb[40].mxu0  ;;  %v5389_v57 = vld [vmem:[%s7675_s7 + $0x7] ss:$0 sm:$0xff] }
0x1bd9   :  { %v4013_v63 = vadd.f32 %v6129_v62, %v5372_v58  ;;  %v4007_v1 = vpop.f32.mrb[41].mxu0 }
0x1bda   :  { %v4008_v50 = vadd.f32 %v5372_v58, %v4007_v1 }
0x1bdb   :  { %6117 = vmatmul.mubr.msk.f32.vlgmr.msra.gmra.mrb[32].mxu1 %vm196_vm4, %v7301_v44 }
0x1bdc   :  { %v6513_v60 = vpack.c.bf16 %v4013_v63, %v4008_v50  ;;  %6134 = vmatprep.mubr.msk.f32.mxu1 %vm450_vm5, %v3832_v51  ;;  %v5405_v51 = vld [vmem:[%s7677_s9 + $0x7] ss:$0 sm:$0xff] }
0x1bde   :  { %6514 = vmatprep.subr.bf16.mxu0 %v6513_v60 }
0x1bdf   :  { %6516 = vmatpush3.bf16.msra.mxu0 %v6513_v60 }
0x1be0   :  { %6518 = vmatprep.subr.bf16.mxu0 %v6517_v30 }
0x1cae   :  { %v6118_v2 = vpop.f32.mrb[32].mxu1 }
0x1caf   :  { %v3925_v3 = vadd.f32 %v6118_v2, %v5364_v61  ;;  %v3919_v4 = vpop.f32.mrb[33].mxu1 }
0x1cb0   :  { %v3920_v5 = vadd.f32 %v5364_v61, %v3919_v4  ;;  %v5397_v4 = vld [vmem:[%s7676_s8 + $0x7] ss:$0 sm:$0xff] }
0x1cb2   :  { %v6507_v6 = vpack.c.bf16 %v3925_v3, %v3920_v5 }
0x1cb4   :  { %6509 = vmatprep.subr.msk.bf16.mxu1 %vm6928_vm6, %v6507_v6 }
0x1cb5   :  { %6512 = vmatpush3.bf16.xpose.msk.msra.mxu1 %vm6928_vm6, %v6507_v6 }
0x1cb6   :  { %6144 = vmatprep.subr.mxu1 %v5381_v31 }
0x1cbc   :  { %6135 = vmatmul.mubr.msk.f32.vlgmr.msra.gmra.mrb[34].mxu1 %vm450_vm5, %v3837_v55 }
0x1cbd   :  { %6145 = vmatpush3.msra.mxu1 %v5381_v31 }
0x1cbe   :  { %6526 = vmatprep.subr.bf16.mxu1 %v6525_v49 }
0x1d8f   :  { %v6136_v7 = vpop.f32.mrb[34].mxu1 }
0x1d90   :  { %v4104_v59 = vmul.f32 0.35355338, %v6136_v7  ;;  %v4094_v8 = vpop.f32.mrb[35].mxu1 }
0x1d91   :  { %v4103_v9 = vmul.f32 0.35355338, %v4094_v8 }
0x1d92   :  { %v4106_v10 = vadd.f32 %v7365_v17, %v4104_v59 }
0x1d93   :  { %v4105_v11 = vadd.f32 %v7371_v20, %v4103_v9 }
0x1d94   :  { %v4110_v12 = vsel %vm542_vm7, %v4106_v10, -inf }
0x1d95   :  { %4111 = vmax.xlane.f32.xlu0 %v4110_v12  ;;  %v4107_v13 = vsel %vm542_vm7, %v4105_v11, -inf }
0x1d96   :  { %4108 = vmax.xlane.f32.xlu1 %v4107_v13 }
0x1e22   :  { %v4112_v14 = vpop.xlane.xlu0 %4111 }
0x1e23   :  { %v4114_v16 = vsub.f32 %v4106_v10, %v4112_v14  ;;  %v4109_v19 = vpop.xlane.xlu1 %4108 }
0x1e24   :  { %v4113_v21 = vsub.f32 %v4105_v11, %v4109_v19 }
0x1e25   :  { %v4117_v22 = vmul.f32 1.442695, %v4114_v16 }
0x1e26   :  { %v4115_v23 = vmul.f32 1.442695, %v4113_v21 }
0x1e27   :  { %6651 = vpow2.f32 %v4117_v22 }
0x1e28   :  { %6653 = vpow2.f32 %v4115_v23 }
0x1e31   :  { %v6652_v24 = vpop.eup %6651 }
0x1e32   :  { %v6654_v25 = vpop.eup %6653  ;;  %v4122_v26 = vsel %vm542_vm7, %v6652_v24, 0.0 }
0x1e33   :  { %4123 = vadd.xlane.f32.xlu0 %v4122_v26  ;;  %v4119_v27 = vsel %vm542_vm7, %v6654_v25, 0.0 }
0x1e34   :  { %4120 = vadd.xlane.f32.xlu1 %v4119_v27 }
0x1ec0   :  { %v4124_v32 = vpop.xlane.xlu0 %4123 }
0x1ec1   :  { %6655 = vrcp.f32 %v4124_v32  ;;  %v4121_v33 = vpop.xlane.xlu1 %4120 }
0x1ec2   :  { %6657 = vrcp.f32 %v4121_v33 }
0x1ecb   :  { %v6656_v18 = vpop.eup %6655 }
0x1ecc   :  { %v6658_v35 = vpop.eup %6657  ;;  %v4128_v37 = vmul.f32 %v6656_v18, %v6652_v24 }
0x1ecd   :  { %v4127_v36 = vmul.f32 %v6658_v35, %v6654_v25  ;;  %v5418_v35 = vld [vmem:[%s7679_s11 + $0x1] ss:$0 sm:$0xff] }
0x1ecf   :  { %6141 = vmatprep.mubr.msk.f32.mxu0 %vm542_vm7, %v4127_v36 }
0x1ed0   :  { %6142 = vmatmul.mubr.msk.f32.vlgmr.msra.gmra.mrb[42].mxu0 %vm542_vm7, %v4128_v37 }
0x1ed1   :  { %6520 = vmatpush3.bf16.msra.mxu0 %v6517_v30  ;;  %6157 = vmatprep.mubr.msk.f32.mxu0 %vm196_vm4, %v7299_v43 }
0x1ed2   :  { %6522 = vmatprep.subr.bf16.mxu0 %v6521_v38 }
0x1ed5   :  { %6524 = vmatpush3.bf16.msra.mxu0 %v6521_v38 }
0x1ed6   :  { %6534 = vmatprep.subr.bf16.mxu0 %v6533_v41 }
0x1ed8   :  { %6158 = vmatmul.mubr.msk.f32.vlgmr.msra.gmra.mrb[44].mxu0 %vm196_vm4, %v7301_v44 }
0x1ed9   :  { %6536 = vmatpush3.bf16.msra.mxu0 %v6533_v41  ;;  %6179 = vmatprep.mubr.msk.f32.mxu0 %vm196_vm4, %v7299_v43 }
0x1eda   :  { %6538 = vmatprep.subr.bf16.mxu0 %v6537_v46 }
0x1edd   :  { %6540 = vmatpush3.bf16.msra.mxu0 %v6537_v46 }
0x1ee0   :  { %6180 = vmatmul.mubr.msk.f32.vlgmr.msra.gmra.mrb[46].mxu0 %vm196_vm4, %v7301_v44 }
0x1fa3   :  { %v6143_v54 = vpop.f32.mrb[42].mxu0 }
0x1fa4   :  { %v4201_v55 = vpop.f32.mrb[43].mxu0 }
0x1fa5   :  { %6146 = vmatprep.mubr.msk.f32.mxu1 %vm450_vm5, %v4201_v55 }
0x1fa6   :  { %6147 = vmatmul.mubr.msk.f32.vlgmr.msra.gmra.mrb[30].mxu1 %vm450_vm5, %v6143_v54 }
0x1fa7   :  { %6528 = vmatpush3.bf16.msra.mxu1 %v6525_v49  ;;  %6168 = vmatprep.mubr.msk.f32.mxu1 %vm196_vm4, %v7299_v43 }
0x1fa8   :  { %6530 = vmatprep.subr.bf16.mxu1 %v6529_v56 }
0x1fab   :  { %v6159_v58 = vpop.f32.mrb[44].mxu0  ;;  %6532 = vmatpush3.bf16.msra.mxu1 %v6529_v56 }
0x1fac   :  { %v4380_v62 = vadd.f32 %v6159_v58, %v5389_v57  ;;  %v4374_v63 = vpop.f32.mrb[45].mxu0 }
0x1fad   :  { %v4375_v1 = vadd.f32 %v5389_v57, %v4374_v63  ;;  %v5424_v57 = vld [vmem:[%s7682_s14 + $0x28] sm:$0xff]  ;;  %v5426_v63 = vld [vmem:[%s7682_s14 + $0x38] sm:$0xff] }
0x1fae   :  { %6169 = vmatmul.mubr.msk.f32.vlgmr.msra.gmra.mrb[36].mxu1 %vm196_vm4, %v7301_v44 }
0x1faf   :  { %6186 = vmatprep.mubr.msk.f32.mxu1 %vm450_vm5, %v4375_v1 }
0x1fb3   :  { %v6181_v50 = vpop.f32.mrb[46].mxu0 }
0x1fb4   :  { %v4556_v60 = vadd.f32 %v6181_v50, %v5405_v51  ;;  %v4550_v61 = vpop.f32.mrb[47].mxu0 }
0x1fb5   :  { %v4551_v2 = vadd.f32 %v5405_v51, %v4550_v61 }
0x1fb7   :  { %v6547_v3 = vpack.c.bf16 %v4556_v60, %v4551_v2 }
0x1fb9   :  { %6548 = vmatprep.subr.bf16.mxu0 %v6547_v3 }
0x1fba   :  { %6550 = vmatpush3.bf16.msra.mxu0 %v6547_v3 }
0x2081   :  { %v6170_v5 = vpop.f32.mrb[36].mxu1 }
0x2082   :  { %v4468_v6 = vadd.f32 %v6170_v5, %v5397_v4  ;;  %v4462_v7 = vpop.f32.mrb[37].mxu1  ;;  %v5421_v5 = vld [vmem:[%s7680_s12 + $0x1] ss:$0 sm:$0xff] }
0x2083   :  { %v4463_v59 = vadd.f32 %v5397_v4, %v4462_v7 }
0x2085   :  { %v6541_v8 = vpack.c.bf16 %v4468_v6, %v4463_v59 }
0x2087   :  { %6543 = vmatprep.subr.msk.bf16.mxu1 %vm6928_vm6, %v6541_v8 }
0x2088   :  { %6546 = vmatpush3.bf16.xpose.msk.msra.mxu1 %vm6928_vm6, %v6541_v8  ;;  %v5422_v8 = vld [vmem:[%s7681_s13 + $0x1] ss:$0 sm:$0xff] }
0x2089   :  { %6196 = vmatprep.subr.mxu1 %v5414_v28 }
0x208f   :  { %6187 = vmatmul.mubr.msk.f32.vlgmr.msra.gmra.mrb[38].mxu1 %vm450_vm5, %v4380_v62  ;;  %v5425_v62 = vld [vmem:[%s7682_s14 + $0x30] sm:$0xff] }
0x2090   :  { %6197 = vmatpush3.msra.mxu1 %v5414_v28  ;;  %v6555_v1 = vpack.c.bf16 %v5426_v63, %v5425_v62 }
0x2162   :  { %v6188_v9 = vpop.f32.mrb[38].mxu1 }
0x2163   :  { %v4647_v10 = vmul.f32 0.35355338, %v6188_v9  ;;  %v4637_v11 = vpop.f32.mrb[39].mxu1 }
0x2164   :  { %v4646_v12 = vmul.f32 0.35355338, %v4637_v11 }
0x2165   :  { %v4649_v13 = vadd.f32 %v7365_v17, %v4647_v10 }
0x2166   :  { %v4648_v14 = vadd.f32 %v7371_v20, %v4646_v12 }
0x2167   :  { %v4653_v16 = vsel %vm542_vm7, %v4649_v13, -inf }
0x2168   :  { %4654 = vmax.xlane.f32.xlu0 %v4653_v16  ;;  %v4650_v19 = vsel %vm542_vm7, %v4648_v14, -inf }
0x2169   :  { %4651 = vmax.xlane.f32.xlu1 %v4650_v19  ;;  %v5433_v19 = vld [vmem:[%s7684_s16 + $0x50] sm:$0xff] }
0x21f5   :  { %v4655_v21 = vpop.xlane.xlu0 %4654 }
0x21f6   :  { %v4657_v22 = vsub.f32 %v4649_v13, %v4655_v21  ;;  %v4652_v0 = vpop.xlane.xlu1 %4651  ;;  %v5431_v13 = vld [vmem:[%s7684_s16 + $0x40] sm:$0xff]  ;;  %v5434_v21 = vld [vmem:[%s7684_s16 + $0x58] sm:$0xff] }
0x21f7   :  { %v4656_v23 = vsub.f32 %v4648_v14, %v4652_v0  ;;  %v5432_v14 = vld [vmem:[%s7684_s16 + $0x48] sm:$0xff]  ;;  %v5435_v0 = vld [vmem:[%s7684_s16 + $0x60] sm:$0xff] }
0x21f8   :  { %v4660_v24 = vmul.f32 1.442695, %v4657_v22  ;;  %v6559_v16 = vpack.c.bf16 %v5432_v14, %v5431_v13  ;;  %v6563_v22 = vpack.c.bf16 %v5434_v21, %v5433_v19 }
0x21f9   :  { %v4658_v25 = vmul.f32 1.442695, %v4656_v23  ;;  %v5436_v23 = vld [vmem:[%s7684_s16 + $0x68] sm:$0xff] }
0x21fa   :  { %6659 = vpow2.f32 %v4660_v24  ;;  %6560 = vmatprep.subr.bf16.mxu1 %v6559_v16  ;;  %v6567_v24 = vpack.c.bf16 %v5436_v23, %v5435_v0 }
0x21fb   :  { %6661 = vpow2.f32 %v4658_v25  ;;  %v5437_v25 = vld [vmem:[%s7684_s16 + $0x70] sm:$0xff] }
0x2204   :  { %v6660_v26 = vpop.eup %6659 }
0x2205   :  { %v6662_v27 = vpop.eup %6661  ;;  %v4665_v17 = vsel %vm542_vm7, %v6660_v26, 0.0 }
0x2206   :  { %4666 = vadd.xlane.f32.xlu0 %v4665_v17  ;;  %v4662_v20 = vsel %vm542_vm7, %v6662_v27, 0.0  ;;  %v5428_v17 = vld [vmem:[%s7708_s21 + $0x1] ss:$0 sm:$0xff] }
0x2207   :  { %4663 = vadd.xlane.f32.xlu1 %v4662_v20 }
0x2293   :  { %v4667_v29 = vpop.xlane.xlu0 %4666 }
0x2294   :  { %6663 = vrcp.f32 %v4667_v29  ;;  %v4664_v30 = vpop.xlane.xlu1 %4663 }
0x2295   :  { %6665 = vrcp.f32 %v4664_v30 }
0x229e   :  { %v6664_v31 = vpop.eup %6663 }
0x229f   :  { %v6666_v32 = vpop.eup %6665  ;;  %v4671_v18 = vmul.f32 %v6664_v31, %v6660_v26  ;;  %v5438_v26 = vld [vmem:[%s7684_s16 + $0x78] sm:$0xff] }
0x22a0   :  { %v4670_v33 = vmul.f32 %v6666_v32, %v6662_v27  ;;  %v6571_v27 = vpack.c.bf16 %v5438_v26, %v5437_v25 }
0x22a2   :  { %6193 = vmatprep.mubr.msk.f32.mxu0 %vm542_vm7, %v4670_v33 }
0x22a3   :  { %6194 = vmatmul.mubr.msk.f32.vlgmr.msra.gmra.mrb[48].mxu0 %vm542_vm7, %v4671_v18 }
0x2376   :  { %v6195_v15 = vpop.f32.mrb[48].mxu0 }
0x2377   :  { %v4744_v34 = vpop.f32.mrb[49].mxu0 }
0x2378   :  { %6198 = vmatprep.mubr.msk.f32.mxu1 %vm450_vm5, %v4744_v34 }
0x2379   :  { %6199 = vmatmul.mubr.msk.f32.vlgmr.msra.gmra.mrb[30].mxu1 %vm450_vm5, %v6195_v15 }
0x237a   :  { %6562 = vmatpush3.bf16.msra.mxu1 %v6559_v16 }
0x237b   :  { %6564 = vmatprep.subr.bf16.mxu1 %v6563_v22 }
0x237e   :  { %6566 = vmatpush3.bf16.msra.mxu1 %v6563_v22 }
0x237f   :  { %6568 = vmatprep.subr.bf16.mxu1 %v6567_v24 }
0x2382   :  { %6570 = vmatpush3.bf16.msra.mxu1 %v6567_v24 }
0x2383   :  { %6572 = vmatprep.subr.bf16.mxu1 %v6571_v27 }
0x2386   :  { %6574 = vmatpush3.bf16.msra.mxu1 %v6571_v27 }
0x244c   :  { %v6200_v36 = vpop.f32.mrb[30].mxu1 }
0x244d   :  { %v4847_v37 = vadd.f32 %v6200_v36, %v5418_v35  ;;  %v4827_v38 = vpop.f32.mrb[31].mxu1 }
0x244e   :  { %v4846_v39 = vadd.f32 %v5418_v35, %v4827_v38 }
0x244f   :  { %v4849_v40 = vadd.f32 %v4847_v37, %v7301_v44 }
0x2450   :  { %v4848_v41 = vadd.f32 %v4846_v39, %v7299_v43  ;;  %v5423_v43 = vld [vmem:[%s7682_s14 + $0x20] sm:$0xff]  ;;  %s6679_s14 = scalar_lea.vmem %s5146_s25, 32 }
0x2451   :  { %v4857_v42 = vsel %vm196_vm4, %v4849_v40, 0.0  ;;  %v6551_v58 = vpack.c.bf16 %v5424_v57, %v5423_v43  ;;  %p6680_p0 = scmp.ne.s32.totalorder %s5146_s25, %s6679_s14  ;;  %p6685_p2 = scmp.lt.s32.totalorder %s6679_s14, %s6679_s14 }
0x2452   :  { %4858 = vadd.xlane.f32.xlu0 %v4857_v42  ;;  %v4854_v45 = vsel %vm196_vm4, %v4848_v41, 0.0 }
0x2453   :  { %4855 = vadd.xlane.f32.xlu1 %v4854_v45  ;;  %6552 = vmatprep.subr.bf16.mxu0 %v6551_v58  ;;  %p6686_p3 = por %p6685_p2, %p6684_p1 }
0x2454   :  { %6554 = vmatpush3.bf16.msra.mxu0 %v6551_v58 }
0x2455   :  { %6556 = vmatprep.subr.bf16.mxu0 %v6555_v1  ;;  %p6687_p4 = pnand %p6686_p3, %p6680_p0 }
0x2458   :  { %6558 = vmatpush3.bf16.msra.mxu0 %v6555_v1 }
0x24df   :  { %v4859_v46 = vpop.xlane.xlu0 %4858 }
0x24e0   :  { %v4861_v47 = vmul.f32 0.03125, %v4859_v46  ;;  %v4856_v48 = vpop.xlane.xlu1 %4855 }
0x24e1   :  { %v4860_v49 = vmul.f32 0.03125, %v4856_v48 }
0x24e2   :  { %v4863_v52 = vsub.f32 %v4849_v40, %v4861_v47 }
0x24e3   :  { %v4862_v53 = vsub.f32 %v4848_v41, %v4860_v49  ;;  %v5440_v49 = vld [vmem:[%s7685_s17 + $0x1] ss:$0 sm:$0xff] }
0x24e4   :  { %v4865_v54 = vmul.f32 %v4863_v52, %v4863_v52 }
0x24e5   :  { %v4864_v55 = vmul.f32 %v4862_v53, %v4862_v53 }
0x24e6   :  { %v4869_v56 = vsel %vm196_vm4, %v4865_v54, 0.0 }
0x24e7   :  { %4870 = vadd.xlane.f32.xlu0 %v4869_v56  ;;  %v4866_v44 = vsel %vm196_vm4, %v4864_v55, 0.0 }
0x24e8   :  { %4867 = vadd.xlane.f32.xlu1 %v4866_v44 }
0x2574   :  { %v4871_v51 = vpop.xlane.xlu0 %4870 }
0x2575   :  { %v4873_v50 = vmul.f32 0.03125, %v4871_v51  ;;  %v4868_v60 = vpop.xlane.xlu1 %4867 }
0x2576   :  { %v4872_v61 = vmul.f32 0.03125, %v4868_v60  ;;  %v5445_v60 = vld [vmem:[%s7686_s18 + $0x1] ss:$0 sm:$0xff] }
0x2577   :  { %v4875_v2 = vadd.f32 1e-05, %v4873_v50 }
0x2578   :  { %v4874_v3 = vadd.f32 1e-05, %v4872_v61 }
0x2579   :  { %6667 = vrsqrt.f32 %v4875_v2  ;;  %v5446_v2 = vld [vmem:[%s7687_s19 + $0x1] ss:$0 sm:$0xff] }
0x257a   :  { %6669 = vrsqrt.f32 %v4874_v3 }
0x2583   :  { %v6668_v4 = vpop.eup %6667 }
0x2584   :  { %v6670_v6 = vpop.eup %6669  ;;  %v4879_v7 = vmul.f32 %v6668_v4, %v4863_v52 }
0x2585   :  { %v4878_v59 = vmul.f32 %v6670_v6, %v4862_v53 }
0x2586   :  { %v4887_v9 = vmul.f32 %v5421_v5, %v4879_v7 }
0x2587   :  { %v4886_v10 = vmul.f32 %v5421_v5, %v4878_v59 }
0x2588   :  { %v4895_v12 = vadd.f32 %v5422_v8, %v4887_v9 }
0x2589   :  { %v4894_v11 = vadd.f32 %v5422_v8, %v4886_v10 }
0x258b   :  { %6209 = vmatprep.mubr.msk.f32.mxu0 %vm196_vm4, %v4894_v11 }
0x258c   :  { %6210 = vmatmul.mubr.msk.f32.vlgmr.msra.gmra.mrb[50].mxu0 %vm196_vm4, %v4895_v12 }
0x265f   :  { %v6211_v20 = vpop.f32.mrb[50].mxu0 }
0x2660   :  { %v4987_v28 = vadd.f32 %v6211_v20, %v5428_v17  ;;  %v4981_v29 = vpop.f32.mrb[51].mxu0 }
0x2661   :  { %v4982_v30 = vadd.f32 %v5428_v17, %v4981_v29 }
0x2662   :  { %v4991_v31 = vmul.f32 %v4987_v28, %v4987_v28 }
0x2663   :  { %v4990_v32 = vmul.f32 %v4982_v30, %v4982_v30 }
0x2664   :  { %v4993_v33 = vmul.f32 %v4991_v31, %v4987_v28 }
0x2665   :  { %v4992_v18 = vmul.f32 %v4990_v32, %v4982_v30 }
0x2666   :  { %v4995_v15 = vmul.f32 0.044715, %v4993_v33 }
0x2667   :  { %v4994_v34 = vmul.f32 0.044715, %v4992_v18 }
0x2668   :  { %v4997_v35 = vadd.f32 %v4995_v15, %v4987_v28 }
0x2669   :  { %v4996_v36 = vadd.f32 %v4994_v34, %v4982_v30 }
0x266a   :  { %v4999_v37 = vmul.f32 0.7978846, %v4997_v35 }
0x266b   :  { %v4998_v38 = vmul.f32 0.7978846, %v4996_v36 }
0x266c   :  { %6671 = vtanh.f32 %v4999_v37 }
0x266d   :  { %6673 = vtanh.f32 %v4998_v38 }
0x2676   :  { %v6672_v39 = vpop.eup %6671 }
0x2677   :  { %v6674_v40 = vpop.eup %6673  ;;  %v5003_v41 = vadd.f32 1.0, %v6672_v39 }
0x2678   :  { %v5002_v42 = vadd.f32 1.0, %v6674_v40 }
0x2679   :  { %v5005_v45 = vmul.f32 0.5, %v5003_v41 }
0x267a   :  { %v5004_v46 = vmul.f32 0.5, %v5002_v42 }
0x267b   :  { %v5007_v48 = vmul.f32 %v5005_v45, %v4987_v28 }
0x267c   :  { %v5006_v47 = vmul.f32 %v5004_v46, %v4982_v30 }
0x267e   :  { %6228 = vmatprep.mubr.msk.f32.mxu1 %vm2536_vm8, %v5006_v47 }
0x267f   :  { %6229 = vmatmul.mubr.msk.f32.vlgmr.msra.gmra.mrb[40].mxu1 %vm2536_vm8, %v5007_v48 }
0x2752   :  { %v6230_v52 = vpop.f32.mrb[40].mxu1 }
0x2753   :  { %v5097_v53 = vpop.f32.mrb[41].mxu1 }
0x2754   :  { %v5098_v54 = vadd.f32 %v5440_v49, %v5097_v53 }
0x2756   :  { %v5105_v55 = vadd.f32 %v5098_v54, %v4894_v11 }
0x2758   :  { %v5110_v56 = vsel %vm196_vm4, %v5105_v55, 0.0 }
0x2759   :  { %5111 = vadd.xlane.f32.xlu1 %v5110_v56 }
0x27e6   :  { %v5112_v44 = vpop.xlane.xlu1 %5111 }
0x27e7   :  { %v5113_v43 = vmul.f32 0.03125, %v5112_v44 }
0x27e9   :  { %v5114_v57 = vsub.f32 %v5105_v55, %v5113_v43 }
0x27eb   :  { %v5115_v58 = vmul.f32 %v5114_v57, %v5114_v57 }
0x27ed   :  { %v5116_v62 = vsel %vm196_vm4, %v5115_v58, 0.0 }
0x27ee   :  { %5117 = vadd.xlane.f32.xlu0 %v5116_v62 }
0x287b   :  { %v5118_v63 = vpop.xlane.xlu0 %5117 }
0x287c   :  { %v5119_v1 = vmul.f32 0.03125, %v5118_v63 }
0x287e   :  { %v5120_v51 = vadd.f32 1e-05, %v5119_v1 }
0x2880   :  { %6675 = vrsqrt.f32 %v5120_v51 }
0x288a   :  { %v6676_v50 = vpop.eup %6675 }
0x288b   :  { %v5122_v61 = vmul.f32 %v6676_v50, %v5114_v57 }
0x288d   :  { %v5129_v3 = vmul.f32 %v5445_v60, %v5122_v61 }
0x288f   :  { %v5136_v4 = vadd.f32 %v5446_v2, %v5129_v3 }
0x2891   :  { %5138 = vst.msk [vmem:[#allocation2] sm:$0x3] %vm5137_vm9, %v5136_v4 }
0x2892   :  { %6690 = shalt.err (!%p6687_p4)
}
0x2893   :  { %s6691_s3 = scalar_lea.hbm %s7688_s20, 32 }
0x2894   :  { %p6692_p5 = scmp.ne.s32.totalorder %s7688_s20, %s6691_s3  ;;  %p6695_p6 = scmp.lt.u32.totalorder %s6691_s3, %s7688_s20 }
0x2896   :  { %p6697_p7 = pnand %p6695_p6, %p6692_p5 }
0x2898   :  { %6700 = shalt.err (!%p6697_p7)
}
0x2899   :  { %5148 = dma.vmem_to_hbm [thread:$0]  %s5146_s25, 32, %s7688_s20, [#allocation3]  }
0x289a   :  { %6701 = dma.done.wait [#allocation3], 32  }
0x289b   :  { %6702 = vsyncadd [#allocation3], 4294967264 }
0x289c   :  { %5152 = vsyncpa [#allocation3], 1 }

</bundles_post_ra>
